<compile_context>
chip_gen: v7x
topology: tpu7x:2x2x1
jax: 0.10.0
libtpu: 0.0.40
codegen_flags: <defaults>
</compile_context>

<pallas_src>
import functools

import jax
import jax.numpy as jnp
from jax import lax
from jax.experimental import pallas as pl
from jax.experimental.pallas import tpu as pltpu


_TILE_GRANULE = 128                      # lane width; keeps every BlockSpec legal


def _layernorm(h, gamma, beta, eps=1e-5):
    mean = jnp.mean(h, axis=-1, keepdims=True)
    var = jnp.mean(jnp.square(h - mean), axis=-1, keepdims=True)
    return (h - mean) * lax.rsqrt(var + eps) * gamma + beta


def _leaky_relu(h, negative_slope=0.01):
    return jnp.where(h > 0, h, negative_slope * h)


def decoder_mlp_kernel(xp_ref,      # (T, 2H)  bf16 : layer-1 pre-activation stream
                       pvec_ref,    # (6, 2H)  f32  : g1, be1, b2, g2, be2, w3
                       w2_ref,      # (2H, 2H) bf16
                       b3_ref,      # (1,)     f32  : SMEM scalar
                       o_ref):      # (1, T)   f32  : lane-dense output row
    pv = pvec_ref[...]
    g1, be1 = pv[0:1], pv[1:2]
    b2 = pv[2:3]
    g2, be2 = pv[3:4], pv[4:5]
    w3 = pv[5:6]

    # Layer 1: Linear(4H->2H)+bias was folded into the streamed pre-activation
    # (per-node work in the wrapper).  Here: LayerNorm + LeakyReLU.
    # Dropout layers are identity (eval mode).
    h = xp_ref[...].astype(jnp.float32)
    h = _leaky_relu(_layernorm(h, g1, be1))

    # Layer 2: Linear(2H->2H) on the MXU, bf16 operands / f32 accumulation.
    h = jnp.dot(h.astype(jnp.bfloat16), w2_ref[...],
                preferred_element_type=jnp.float32) + b2
    h = _leaky_relu(_layernorm(h, g2, be2))

    # Layer 3: Linear(2H->1) as VPU multiply + lane (XLU) reduction; the
    # per-row scalars are written as a single lane-dense (1, T) row so every
    # output store is a dense vst and the writeback DMA carries 4 B/edge.
    out = jnp.sum(h * w3, axis=-1) + b3_ref[0]          # (T,)
    o_ref[0, :] = out.astype(o_ref.dtype)


def _round_up(x, m):
    return ((x + m - 1) // m) * m


@functools.partial(jax.jit, static_argnames=("tile_e",))
def decoder_forward(z, total_edge_index, params, *, tile_e=8192):
    """z: [N, 2H] float32, total_edge_index: [2, E] int -> [E] float32."""
    w1, b1, g1, be1, w2, b2, g2, be2, w3, b3 = params
    _, two_h = z.shape                       # 2H
    F_mid = w1.shape[1]                      # 2H
    E = total_edge_index.shape[1]

    # --- per-node projections (cheap O(N) XLA work) --------------------------
    zp_src = (z @ w1[:two_h, :] + b1).astype(jnp.bfloat16)   # (N, 2H)
    zp_dst = (z @ w1[two_h:, :]).astype(jnp.bfloat16)        # (N, 2H)

    # --- edge tile selection --------------------------------------------------
    tile_e = max(_TILE_GRANULE, (tile_e // _TILE_GRANULE) * _TILE_GRANULE)
    # Per-row VMEM: double-buffered bf16 input stream + double-buffered f32
    # lane-dense output row; constants (w2, packed params) counted separately.
    bytes_per_row = 2 * (F_mid * 2) + 2 * 4
    const_bytes = 2 * (F_mid * F_mid * 2 + 6 * F_mid * 4) + 4096
    vmem_budget = 12 * 1024 * 1024 - const_bytes   # stay under v5e's 16 MiB default
    tile_cap = max(_TILE_GRANULE,
                   (vmem_budget // bytes_per_row) // _TILE_GRANULE * _TILE_GRANULE)
    tile = min(tile_e, _round_up(E, _TILE_GRANULE), tile_cap)
    num_tiles = pl.cdiv(E, tile)
    e_pad = num_tiles * tile

    # Ragged tail: pad the edge list with node index 0 (valid row); padded
    # rows produce finite values that are sliced away below.
    idx = total_edge_index.astype(jnp.int32)
    if e_pad != E:
        idx = jnp.pad(idx, ((0, 0), (0, e_pad - E)))

    # (E_pad, 2H) bf16 layer-1 pre-activation stream.
    # TODO(synk): this gather+add is the remaining HBM round trip (see header).
    xp = (jnp.take(zp_src, idx[0], axis=0).astype(jnp.float32)
          + jnp.take(zp_dst, idx[1], axis=0).astype(jnp.float32)
          ).astype(jnp.bfloat16)

    # Constants: one packed (6, 2H) f32 block + bf16 w2 + SMEM scalar b3.
    pvec = jnp.stack(
        [g1, be1, b2, g2, be2, w3.reshape(F_mid)]).astype(jnp.float32)   # (6, 2H)
    w2_bf = w2.astype(jnp.bfloat16)
    b3_s = b3.reshape(1).astype(jnp.float32)

    out = pl.pallas_call(
        decoder_mlp_kernel,
        out_shape=jax.ShapeDtypeStruct((1, e_pad), jnp.float32),
        grid_spec=pltpu.PrefetchScalarGridSpec(
            num_scalar_prefetch=0,
            grid=(num_tiles,),
            in_specs=[
                pl.BlockSpec((tile, F_mid), lambda i: (i, 0)),   # edge stream
                pl.BlockSpec((6, F_mid), lambda i: (0, 0)),      # packed LN/bias/w3
                pl.BlockSpec((F_mid, F_mid), lambda i: (0, 0)),  # w2
                pl.BlockSpec(memory_space=pltpu.MemorySpace.SMEM),  # b3 scalar
            ],
            out_specs=pl.BlockSpec((1, tile), lambda i: (0, i)),
        ),
        compiler_params=pltpu.CompilerParams(
            dimension_semantics=("parallel",)),
    )(xp, pvec, w2_bf, b3_s)

    return out[0, :E]                                          # squeeze(-1)


def init_params(key, hidden_dim):
    """Deterministic init matching nn.Linear / nn.LayerNorm shapes.
    Weights stored as [in, out] (transpose of PyTorch's [out, in])."""
    h4, h2 = 4 * hidden_dim, 2 * hidden_dim
    k1, k2, k3 = jax.random.split(key, 3)

    def linear(k, fan_in, fan_out):
        bound = 1.0 / jnp.sqrt(fan_in)
        kw, kb = jax.random.split(k)
        w = jax.random.uniform(kw, (fan_in, fan_out), jnp.float32, -bound, bound)
        b = jax.random.uniform(kb, (fan_out,), jnp.float32, -bound, bound)
        return w, b

    w1, b1 = linear(k1, h4, h2)
    w2, b2 = linear(k2, h2, h2)
    w3, b3 = linear(k3, h2, 1)
    g1, be1 = jnp.ones((h2,), jnp.float32), jnp.zeros((h2,), jnp.float32)
    g2, be2 = jnp.ones((h2,), jnp.float32), jnp.zeros((h2,), jnp.float32)
    return (w1, b1, g1, be1, w2, b2, g2, be2, w3, b3)


def reference_forward(z, total_edge_index, params):
    """Pure-JAX f32 reference following the PyTorch module literally."""
    w1, b1, g1, be1, w2, b2, g2, be2, w3, b3 = params
    src = z[total_edge_index[0]]
    dst = z[total_edge_index[1]]
    h = jnp.concatenate([src, dst], axis=1)
    h = h @ w1 + b1
    h = _leaky_relu(_layernorm(h, g1, be1))
    h = h @ w2 + b2
    h = _leaky_relu(_layernorm(h, g2, be2))
    h = h @ w3 + b3
    return h[:, 0]


if __name__ == "__main__":
    hidden_dim = 32          # MLP: 4H=128 -> 2H=64 -> 2H=64 -> 1
    num_nodes = 64
    num_edges = 200          # deliberately not a multiple of the tile size

    key = jax.random.PRNGKey(0)
    kz, ke, kp = jax.random.split(key, 3)

    z = jax.random.normal(kz, (num_nodes, 2 * hidden_dim), jnp.float32)
    total_edge_index = jax.random.randint(
        ke, (2, num_edges), 0, num_nodes, jnp.int32)
    params = init_params(kp, hidden_dim)

    ref = reference_forward(z, total_edge_index, params)

    # Default (single-tile) path.
    out = jax.block_until_ready(decoder_forward(z, total_edge_index, params))
    assert out.shape == (num_edges,)
    # bf16 streaming of the edge features (and bf16 node tables) loosens the
    # tolerance vs the f32 reference; LN stats / matmul accumulation are f32.
    assert jnp.allclose(out, ref, atol=5e-2, rtol=5e-2), float(
        jnp.max(jnp.abs(out - ref)))

    # Small-tile path: exercises a multi-step grid (ragged tail + pipelining).
    out_mt = jax.block_until_ready(
        decoder_forward(z, total_edge_index, params, tile_e=128))
    assert out_mt.shape == (num_edges,)
    assert jnp.allclose(out_mt, ref, atol=5e-2, rtol=5e-2), float(
        jnp.max(jnp.abs(out_mt - ref)))

    print("KERNEL_OK")
</pallas_src>

<mosaic_0001>
module attributes {stable_mosaic.version = 11 : i64} {
  func.func @decoder_mlp_kernel(%arg0: i32, %arg1: memref<256x64xbf16, #tpu.memory_space<vmem>>, %arg2: memref<6x64xf32, #tpu.memory_space<vmem>>, %arg3: memref<64x64xbf16, #tpu.memory_space<vmem>>, %arg4: memref<1xf32, #tpu.memory_space<smem>>, %arg5: memref<1x256xf32, #tpu.memory_space<vmem>>) attributes {dimension_semantics = [#tpu.dimension_semantics<parallel>], iteration_bounds = array<i64: 1>, scalar_prefetch = 0 : i64, scratch_operands = 0 : i64, tpu.core_type = #tpu.core_type<tc>, window_params = [{transform_indices = @transform_0, window_bounds = array<i64: 256, 64>}, {pipeline_mode = #tpu.pipeline_mode<synchronous>, transform_indices = @transform_1, window_bounds = array<i64: 6, 64>}, {pipeline_mode = #tpu.pipeline_mode<synchronous>, transform_indices = @transform_2, window_bounds = array<i64: 64, 64>}, {transform_indices = @transform_3, window_bounds = array<i64: 1>}, {transform_indices = @transform_4, window_bounds = array<i64: 1, 256>}]} {
    %c0 = arith.constant 0 : index
    %c0_0 = arith.constant 0 : index
    %0 = vector.load %arg2[%c0, %c0_0] : memref<6x64xf32, #tpu.memory_space<vmem>>, vector<6x64xf32>
    %1 = vector.extract_strided_slice %0 {offsets = [0, 0], sizes = [1, 64], strides = [1, 1]} : vector<6x64xf32> to vector<1x64xf32>
    %2 = vector.extract_strided_slice %0 {offsets = [1, 0], sizes = [1, 64], strides = [1, 1]} : vector<6x64xf32> to vector<1x64xf32>
    %3 = vector.extract_strided_slice %0 {offsets = [2, 0], sizes = [1, 64], strides = [1, 1]} : vector<6x64xf32> to vector<1x64xf32>
    %4 = vector.extract_strided_slice %0 {offsets = [3, 0], sizes = [1, 64], strides = [1, 1]} : vector<6x64xf32> to vector<1x64xf32>
    %5 = vector.extract_strided_slice %0 {offsets = [4, 0], sizes = [1, 64], strides = [1, 1]} : vector<6x64xf32> to vector<1x64xf32>
    %6 = vector.extract_strided_slice %0 {offsets = [5, 0], sizes = [1, 64], strides = [1, 1]} : vector<6x64xf32> to vector<1x64xf32>
    %c0_1 = arith.constant 0 : index
    %c0_2 = arith.constant 0 : index
    %7 = vector.load %arg1[%c0_1, %c0_2] : memref<256x64xbf16, #tpu.memory_space<vmem>>, vector<256x64xbf16>
    %8 = arith.extf %7 : vector<256x64xbf16> to vector<256x64xf32>
    %cst = arith.constant dense<0.000000e+00> : vector<256xf32>
    %9 = vector.multi_reduction <add>, %8, %cst [1] : vector<256x64xf32> to vector<256xf32>
    %10 = vector.shape_cast %9 : vector<256xf32> to vector<256x1xf32>
    %cst_3 = arith.constant 6.400000e+01 : f32
    %11 = vector.broadcast %cst_3 : f32 to vector<256x1xf32>
    %12 = arith.divf %10, %11 : vector<256x1xf32>
    %13 = vector.broadcast %12 : vector<256x1xf32> to vector<256x64xf32>
    %14 = arith.subf %8, %13 : vector<256x64xf32>
    %15 = arith.mulf %14, %14 : vector<256x64xf32>
    %cst_4 = arith.constant dense<0.000000e+00> : vector<256xf32>
    %16 = vector.multi_reduction <add>, %15, %cst_4 [1] : vector<256x64xf32> to vector<256xf32>
    %17 = vector.shape_cast %16 : vector<256xf32> to vector<256x1xf32>
    %cst_5 = arith.constant 6.400000e+01 : f32
    %18 = vector.broadcast %cst_5 : f32 to vector<256x1xf32>
    %19 = arith.divf %17, %18 : vector<256x1xf32>
    %20 = vector.broadcast %12 : vector<256x1xf32> to vector<256x64xf32>
    %21 = arith.subf %8, %20 : vector<256x64xf32>
    %cst_6 = arith.constant 9.99999974E-6 : f32
    %22 = vector.broadcast %cst_6 : f32 to vector<256x1xf32>
    %23 = arith.addf %19, %22 : vector<256x1xf32>
    %24 = math.rsqrt %23 : vector<256x1xf32>
    %25 = vector.broadcast %24 : vector<256x1xf32> to vector<256x64xf32>
    %26 = arith.mulf %21, %25 : vector<256x64xf32>
    %27 = vector.broadcast %1 : vector<1x64xf32> to vector<256x64xf32>
    %28 = arith.mulf %26, %27 : vector<256x64xf32>
    %29 = vector.broadcast %2 : vector<1x64xf32> to vector<256x64xf32>
    %30 = arith.addf %28, %29 : vector<256x64xf32>
    %cst_7 = arith.constant 0.000000e+00 : f32
    %31 = vector.broadcast %cst_7 : f32 to vector<256x64xf32>
    %32 = arith.cmpf ogt, %30, %31 : vector<256x64xf32>
    %cst_8 = arith.constant 0.00999999977 : f32
    %33 = vector.broadcast %cst_8 : f32 to vector<256x64xf32>
    %34 = arith.mulf %33, %30 : vector<256x64xf32>
    %35 = arith.select %32, %30, %34 : vector<256x64xi1>, vector<256x64xf32>
    %36 = arith.truncf %35 : vector<256x64xf32> to vector<256x64xbf16>
    %c0_9 = arith.constant 0 : index
    %c0_10 = arith.constant 0 : index
    %37 = vector.load %arg3[%c0_9, %c0_10] : memref<64x64xbf16, #tpu.memory_space<vmem>>, vector<64x64xbf16>
    %cst_11 = arith.constant dense<0.000000e+00> : vector<256x64xf32>
    %38 = tpu.matmul %36, %37, %cst_11 {dimension_numbers = #tpu.dot_dimension_numbers<[1], [0], [0], [1], [0, 0, 1, 1], [], []>} : vector<256x64xbf16>, vector<64x64xbf16>, vector<256x64xf32> -> vector<256x64xf32>
    %39 = vector.broadcast %3 : vector<1x64xf32> to vector<256x64xf32>
    %40 = arith.addf %38, %39 : vector<256x64xf32>
    %cst_12 = arith.constant dense<0.000000e+00> : vector<256xf32>
    %41 = vector.multi_reduction <add>, %40, %cst_12 [1] : vector<256x64xf32> to vector<256xf32>
    %42 = vector.shape_cast %41 : vector<256xf32> to vector<256x1xf32>
    %cst_13 = arith.constant 6.400000e+01 : f32
    %43 = vector.broadcast %cst_13 : f32 to vector<256x1xf32>
    %44 = arith.divf %42, %43 : vector<256x1xf32>
    %45 = vector.broadcast %44 : vector<256x1xf32> to vector<256x64xf32>
    %46 = arith.subf %40, %45 : vector<256x64xf32>
    %47 = arith.mulf %46, %46 : vector<256x64xf32>
    %cst_14 = arith.constant dense<0.000000e+00> : vector<256xf32>
    %48 = vector.multi_reduction <add>, %47, %cst_14 [1] : vector<256x64xf32> to vector<256xf32>
    %49 = vector.shape_cast %48 : vector<256xf32> to vector<256x1xf32>
    %cst_15 = arith.constant 6.400000e+01 : f32
    %50 = vector.broadcast %cst_15 : f32 to vector<256x1xf32>
    %51 = arith.divf %49, %50 : vector<256x1xf32>
    %52 = vector.broadcast %44 : vector<256x1xf32> to vector<256x64xf32>
    %53 = arith.subf %40, %52 : vector<256x64xf32>
    %cst_16 = arith.constant 9.99999974E-6 : f32
    %54 = vector.broadcast %cst_16 : f32 to vector<256x1xf32>
    %55 = arith.addf %51, %54 : vector<256x1xf32>
    %56 = math.rsqrt %55 : vector<256x1xf32>
    %57 = vector.broadcast %56 : vector<256x1xf32> to vector<256x64xf32>
    %58 = arith.mulf %53, %57 : vector<256x64xf32>
    %59 = vector.broadcast %4 : vector<1x64xf32> to vector<256x64xf32>
    %60 = arith.mulf %58, %59 : vector<256x64xf32>
    %61 = vector.broadcast %5 : vector<1x64xf32> to vector<256x64xf32>
    %62 = arith.addf %60, %61 : vector<256x64xf32>
    %cst_17 = arith.constant 0.000000e+00 : f32
    %63 = vector.broadcast %cst_17 : f32 to vector<256x64xf32>
    %64 = arith.cmpf ogt, %62, %63 : vector<256x64xf32>
    %cst_18 = arith.constant 0.00999999977 : f32
    %65 = vector.broadcast %cst_18 : f32 to vector<256x64xf32>
    %66 = arith.mulf %65, %62 : vector<256x64xf32>
    %67 = arith.select %64, %62, %66 : vector<256x64xi1>, vector<256x64xf32>
    %68 = vector.broadcast %6 : vector<1x64xf32> to vector<256x64xf32>
    %69 = arith.mulf %67, %68 : vector<256x64xf32>
    %cst_19 = arith.constant dense<0.000000e+00> : vector<256xf32>
    %70 = vector.multi_reduction <add>, %69, %cst_19 [1] : vector<256x64xf32> to vector<256xf32>
    %c0_20 = arith.constant 0 : index
    %71 = memref.load %arg4[%c0_20] : memref<1xf32, #tpu.memory_space<smem>>
    %72 = vector.broadcast %71 : f32 to vector<256xf32>
    %73 = arith.addf %70, %72 : vector<256xf32>
    %c0_21 = arith.constant 0 : index
    %c0_22 = arith.constant 0 : index
    %74 = vector.load %arg5[%c0_21, %c0_22] : memref<1x256xf32, #tpu.memory_space<vmem>>, vector<1x256xf32>
    %75 = vector.shape_cast %74 : vector<1x256xf32> to vector<256xf32>
    %76 = vector.shape_cast %73 : vector<256xf32> to vector<1x256xf32>
    tpu.vector_store %arg5[%c0_21, %c0_22], %76 {strides = array<i32>} : memref<1x256xf32, #tpu.memory_space<vmem>>, vector<1x256xf32>,
    return
  }
  func.func @transform_0(%arg0: i32) -> (i32, i32) {
    %c0_i32 = arith.constant 0 : i32
    %c0_i32_0 = arith.constant 0 : i32
    return %arg0, %c0_i32 : i32, i32
  }
  func.func @transform_1(%arg0: i32) -> (i32, i32) {
    %c0_i32 = arith.constant 0 : i32
    %c0_i32_0 = arith.constant 0 : i32
    %c0_i32_1 = arith.constant 0 : i32
    return %c0_i32, %c0_i32_0 : i32, i32
  }
  func.func @transform_2(%arg0: i32) -> (i32, i32) {
    %c0_i32 = arith.constant 0 : i32
    %c0_i32_0 = arith.constant 0 : i32
    %c0_i32_1 = arith.constant 0 : i32
    return %c0_i32, %c0_i32_0 : i32, i32
  }
  func.func @transform_3(%arg0: i32) -> i32 {
    %c0_i32 = arith.constant 0 : i32
    %c0_i32_0 = arith.constant 0 : i32
    return %c0_i32 : i32
  }
  func.func @transform_4(%arg0: i32) -> (i32, i32) {
    %c0_i32 = arith.constant 0 : i32
    %c0_i32_0 = arith.constant 0 : i32
    return %c0_i32, %arg0 : i32, i32
  }
}

</mosaic_0001>

<bundles_post_ra>
// kernel: decoder_forward.1
= control target key start
LH: loop header
LB: loop body
LE: loop exit
PB: predicated region body
PF: predicated region fallthrough
CT: control target
= control target key end

     0   :  { %vm85_vm0 = vcmask 523264   ;;  %s7018_s0 = inlined_call_operand.vmem [shape: bf16[256,64], index: 0, kind: input, shape index: {}]   ;;  %s7019_s1 = inlined_call_operand.vmem [shape: f32[6,64], index: 1, kind: input, shape index: {}]   ;;  %s7020_s2 = inlined_call_operand.vmem [shape: bf16[64,64], index: 2, kind: input, shape index: {}]   ;;  %s7021_s3 = inlined_call_operand.<no memory space> [shape: f32[1], index: 3, kind: input, shape index: {}]   ;;  %s7022_s4 = inlined_call_operand.hbm [shape: f32[1,256], index: 4, kind: output, shape index: {}]  }
   0x1   :  { %v4987_v0 = vld [vmem:[%s7018_s0] sm:$0xff]   ;;  %v5001_v6 = vld [vmem:[%s7018_s0 + $0x8] sm:$0xff]   ;;  %v5033_v18 = vld [vmem:[%s7018_s0 + $0x10] sm:$0xff]  }
   0x2   :  { %v4992_v1 = vld [vmem:[%s7018_s0 + $0x40] sm:$0xff]   ;;  %v4649_v2 = vunpack.c.l.bf16 %v4987_v0  ;;  %v4650_v4 = vunpack.c.h.bf16 %v4987_v0  ;;  %v4653_v9 = vunpack.c.l.bf16 %v5001_v6  ;;  %v4654_v10 = vunpack.c.h.bf16 %v5001_v6  ;;  %v5020_v13 = vld [vmem:[%s7018_s0 + $0x48] sm:$0xff]  }
   0x3   :  { %v4681_v3 = vunpack.c.l.bf16 %v4992_v1  ;;  %v4682_v5 = vunpack.c.h.bf16 %v4992_v1  ;;  %v4685_v16 = vunpack.c.l.bf16 %v5020_v13  ;;  %v4686_v17 = vunpack.c.h.bf16 %v5020_v13 }
   0x4   :  { %v86_v7 = vsel %vm85_vm0, %v4649_v2, 0.0  ;;  %v89_v11 = vsel %vm85_vm0, %v4650_v4, 0.0  ;;  %v92_v14 = vsel %vm85_vm0, %v4653_v9, 0.0  ;;  %v95_v15 = vsel %vm85_vm0, %v4654_v10, 0.0 }
   0x5   :  { %v134_v8 = vsel %vm85_vm0, %v4681_v3, 0.0  ;;  %87 = vadd.xlane.f32.xlu0 %v86_v7  ;;  %v137_v12 = vsel %vm85_vm0, %v4682_v5, 0.0 }
   0x6   :  { %135 = vadd.xlane.f32.xlu1 %v134_v8 }
   0x9   :  { %90 = vadd.xlane.f32.xlu0 %v89_v11 }
   0xa   :  { %138 = vadd.xlane.f32.xlu1 %v137_v12 }
   0xb   :  { %10 = vsyncpa [#allocation4], 0  ;;  %v140_v19 = vsel %vm85_vm0, %v4685_v16, 0.0  ;;  %v143_v20 = vsel %vm85_vm0, %v4686_v17, 0.0  ;;  %v4657_v21 = vunpack.c.l.bf16 %v5033_v18  ;;  %v4658_v22 = vunpack.c.h.bf16 %v5033_v18  ;;  %v5046_v23 = vld [vmem:[%s7018_s0 + $0x50] sm:$0xff]   ;;  %v5059_v28 = vld [vmem:[%s7018_s0 + $0x18] sm:$0xff]  }
   0xc   :  { %v4689_v26 = vunpack.c.l.bf16 %v5046_v23  ;;  %v4690_v27 = vunpack.c.h.bf16 %v5046_v23  ;;  %v4661_v31 = vunpack.c.l.bf16 %v5059_v28  ;;  %v4662_v32 = vunpack.c.h.bf16 %v5059_v28  ;;  %v5072_v33 = vld [vmem:[%s7018_s0 + $0x58] sm:$0xff]   ;;  %v5085_v38 = vld [vmem:[%s7018_s0 + $0x20] sm:$0xff]   ;;  %v5111_v48 = vld [vmem:[%s7018_s0 + $0x28] sm:$0xff]  }
   0xd   :  { %93 = vadd.xlane.f32.xlu0 %v92_v14  ;;  %v98_v24 = vsel %vm85_vm0, %v4657_v21, 0.0  ;;  %v101_v25 = vsel %vm85_vm0, %v4658_v22, 0.0  ;;  %v4693_v36 = vunpack.c.l.bf16 %v5072_v33  ;;  %v4694_v37 = vunpack.c.h.bf16 %v5072_v33  ;;  %v5098_v43 = vld [vmem:[%s7018_s0 + $0x60] sm:$0xff]   ;;  %v5124_v53 = vld [vmem:[%s7018_s0 + $0x68] sm:$0xff]   ;;  %v5137_v58 = vld [vmem:[%s7018_s0 + $0x30] sm:$0xff]  }
   0xe   :  { %96 = vadd.xlane.f32.xlu1 %v95_v15  ;;  %v146_v29 = vsel %vm85_vm0, %v4689_v26, 0.0  ;;  %v149_v30 = vsel %vm85_vm0, %v4690_v27, 0.0  ;;  %v104_v34 = vsel %vm85_vm0, %v4661_v31, 0.0  ;;  %v107_v35 = vsel %vm85_vm0, %v4662_v32, 0.0  ;;  %v5150_v63 = vld [vmem:[%s7018_s0 + $0x70] sm:$0xff]   ;;  %v5163_v14 = vld [vmem:[%s7018_s0 + $0x38] sm:$0xff]  }
   0xf   :  { %v152_v39 = vsel %vm85_vm0, %v4693_v36, 0.0  ;;  %v155_v40 = vsel %vm85_vm0, %v4694_v37, 0.0  ;;  %v4665_v41 = vunpack.c.l.bf16 %v5085_v38  ;;  %v4666_v42 = vunpack.c.h.bf16 %v5085_v38 }
  0x10   :  { %v4697_v46 = vunpack.c.l.bf16 %v5098_v43  ;;  %v4698_v47 = vunpack.c.h.bf16 %v5098_v43  ;;  %v4669_v51 = vunpack.c.l.bf16 %v5111_v48  ;;  %v4670_v52 = vunpack.c.h.bf16 %v5111_v48 }
  0x11   :  { %141 = vadd.xlane.f32.xlu0 %v140_v19  ;;  %v110_v44 = vsel %vm85_vm0, %v4665_v41, 0.0  ;;  %v113_v45 = vsel %vm85_vm0, %v4666_v42, 0.0  ;;  %v4701_v56 = vunpack.c.l.bf16 %v5124_v53  ;;  %v4702_v57 = vunpack.c.h.bf16 %v5124_v53 }
  0x12   :  { %144 = vadd.xlane.f32.xlu1 %v143_v20  ;;  %v158_v49 = vsel %vm85_vm0, %v4697_v46, 0.0  ;;  %v161_v50 = vsel %vm85_vm0, %v4698_v47, 0.0  ;;  %v116_v54 = vsel %vm85_vm0, %v4669_v51, 0.0  ;;  %v119_v55 = vsel %vm85_vm0, %v4670_v52, 0.0 }
  0x13   :  { %v164_v59 = vsel %vm85_vm0, %v4701_v56, 0.0  ;;  %v167_v60 = vsel %vm85_vm0, %v4702_v57, 0.0  ;;  %v4673_v61 = vunpack.c.l.bf16 %v5137_v58  ;;  %v4674_v62 = vunpack.c.h.bf16 %v5137_v58 }
  0x14   :  { %v4705_v11 = vunpack.c.l.bf16 %v5150_v63  ;;  %v4706_v12 = vunpack.c.h.bf16 %v5150_v63  ;;  %v4677_v20 = vunpack.c.l.bf16 %v5163_v14 }
  0x15   :  { %99 = vadd.xlane.f32.xlu0 %v98_v24  ;;  %v122_v7 = vsel %vm85_vm0, %v4673_v61, 0.0  ;;  %v125_v8 = vsel %vm85_vm0, %v4674_v62, 0.0  ;;  %v4678_v24 = vunpack.c.h.bf16 %v5163_v14 }
  0x16   :  { %102 = vadd.xlane.f32.xlu1 %v101_v25  ;;  %v170_v15 = vsel %vm85_vm0, %v4705_v11, 0.0  ;;  %v173_v19 = vsel %vm85_vm0, %v4706_v12, 0.0  ;;  %v5176_v25 = vld [vmem:[%s7018_s0 + $0x78] sm:$0xff]  }
  0x19   :  { %147 = vadd.xlane.f32.xlu0 %v146_v29  ;;  %v128_v29 = vsel %vm85_vm0, %v4677_v20, 0.0 }
  0x1a   :  { %150 = vadd.xlane.f32.xlu1 %v149_v30  ;;  %v131_v30 = vsel %vm85_vm0, %v4678_v24, 0.0 }
  0x1d   :  { %105 = vadd.xlane.f32.xlu0 %v104_v34  ;;  %v4709_v34 = vunpack.c.l.bf16 %v5176_v25 }
  0x1e   :  { %108 = vadd.xlane.f32.xlu1 %v107_v35  ;;  %v4710_v35 = vunpack.c.h.bf16 %v5176_v25 }
  0x21   :  { %153 = vadd.xlane.f32.xlu0 %v152_v39  ;;  %v176_v39 = vsel %vm85_vm0, %v4709_v34, 0.0 }
  0x22   :  { %156 = vadd.xlane.f32.xlu1 %v155_v40  ;;  %v179_v40 = vsel %vm85_vm0, %v4710_v35, 0.0 }
  0x25   :  { %111 = vadd.xlane.f32.xlu0 %v110_v44 }
  0x26   :  { %114 = vadd.xlane.f32.xlu1 %v113_v45 }
  0x29   :  { %159 = vadd.xlane.f32.xlu0 %v158_v49 }
  0x2a   :  { %162 = vadd.xlane.f32.xlu1 %v161_v50 }
  0x2d   :  { %117 = vadd.xlane.f32.xlu0 %v116_v54 }
  0x2e   :  { %120 = vadd.xlane.f32.xlu1 %v119_v55 }
  0x31   :  { %165 = vadd.xlane.f32.xlu0 %v164_v59 }
  0x32   :  { %168 = vadd.xlane.f32.xlu1 %v167_v60 }
  0x35   :  { %123 = vadd.xlane.f32.xlu0 %v122_v7 }
  0x36   :  { %126 = vadd.xlane.f32.xlu1 %v125_v8 }
  0x39   :  { %171 = vadd.xlane.f32.xlu0 %v170_v15 }
  0x3a   :  { %174 = vadd.xlane.f32.xlu1 %v173_v19 }
  0x3d   :  { %129 = vadd.xlane.f32.xlu0 %v128_v29 }
  0x3e   :  { %132 = vadd.xlane.f32.xlu1 %v131_v30 }
  0x41   :  { %177 = vadd.xlane.f32.xlu0 %v176_v39 }
  0x42   :  { %180 = vadd.xlane.f32.xlu1 %v179_v40 }
  0x92   :  { %v88_v44 = vpop.xlane.xlu0 %87 }
  0x93   :  { %v136_v45 = vpop.xlane.xlu1 %135  ;;  %v183_v49 = vmul.f32 0.015625, %v88_v44 }
  0x94   :  { %v199_v50 = vmul.f32 0.015625, %v136_v45 }
  0x95   :  { %v5194_v54 = vsub.f32 %v4649_v2, %v183_v49 }
  0x96   :  { %v5198_v55 = vsub.f32 %v4681_v3, %v199_v50  ;;  %v91_v59 = vpop.xlane.xlu0 %90 }
  0x97   :  { %v139_v60 = vpop.xlane.xlu1 %138  ;;  %v184_v7 = vmul.f32 0.015625, %v91_v59  ;;  %v247_v15 = vmul.f32 %v5194_v54, %v5194_v54 }
  0x98   :  { %v200_v8 = vmul.f32 0.015625, %v139_v60  ;;  %v263_v19 = vmul.f32 %v5198_v55, %v5198_v55 }
  0x99   :  { %v5206_v29 = vsub.f32 %v4650_v4, %v184_v7  ;;  %v279_v3 = vsel %vm85_vm0, %v247_v15, 0.0 }
  0x9a   :  { %v5210_v2 = vsub.f32 %v4682_v5, %v200_v8  ;;  %280 = vadd.xlane.f32.xlu0 %v279_v3  ;;  %v94_v30 = vpop.xlane.xlu0 %93  ;;  %v327_v40 = vsel %vm85_vm0, %v263_v19, 0.0 }
  0x9b   :  { %v97_v39 = vpop.xlane.xlu1 %96  ;;  %v185_v44 = vmul.f32 0.015625, %v94_v30  ;;  %v248_v49 = vmul.f32 %v5206_v29, %v5206_v29 }
  0x9c   :  { %v186_v45 = vmul.f32 0.015625, %v97_v39  ;;  %v264_v0 = vmul.f32 %v5210_v2, %v5210_v2 }
  0x9d   :  { %v5220_v1 = vsub.f32 %v4653_v9, %v185_v44  ;;  %v282_v5 = vsel %vm85_vm0, %v248_v49, 0.0 }
  0x9e   :  { %v5224_v4 = vsub.f32 %v4654_v10, %v186_v45  ;;  %328 = vadd.xlane.f32.xlu0 %v327_v40  ;;  %283 = vadd.xlane.f32.xlu1 %v282_v5  ;;  %v142_v50 = vpop.xlane.xlu0 %141  ;;  %v330_v60 = vsel %vm85_vm0, %v264_v0, 0.0 }
  0x9f   :  { %v145_v59 = vpop.xlane.xlu1 %144  ;;  %v201_v7 = vmul.f32 0.015625, %v142_v50  ;;  %v249_v15 = vmul.f32 %v5220_v1, %v5220_v1 }
  0xa0   :  { %v202_v8 = vmul.f32 0.015625, %v145_v59  ;;  %v250_v9 = vmul.f32 %v5224_v4, %v5224_v4 }
  0xa1   :  { %v5234_v6 = vsub.f32 %v4685_v16, %v201_v7  ;;  %v285_v19 = vsel %vm85_vm0, %v249_v15, 0.0 }
  0xa2   :  { %v5238_v10 = vsub.f32 %v4686_v17, %v202_v8  ;;  %331 = vadd.xlane.f32.xlu1 %v330_v60  ;;  %286 = vadd.xlane.f32.xlu0 %v285_v19  ;;  %v100_v3 = vpop.xlane.xlu0 %99  ;;  %v288_v39 = vsel %vm85_vm0, %v250_v9, 0.0 }
  0xa3   :  { %v103_v30 = vpop.xlane.xlu1 %102  ;;  %v187_v40 = vmul.f32 0.015625, %v100_v3  ;;  %v265_v45 = vmul.f32 %v5234_v6, %v5234_v6 }
  0xa4   :  { %v188_v44 = vmul.f32 0.015625, %v103_v30  ;;  %v266_v16 = vmul.f32 %v5238_v10, %v5238_v10 }
  0xa5   :  { %v5248_v13 = vsub.f32 %v4657_v21, %v187_v40  ;;  %v333_v49 = vsel %vm85_vm0, %v265_v45, 0.0 }
  0xa6   :  { %v5252_v17 = vsub.f32 %v4658_v22, %v188_v44  ;;  %289 = vadd.xlane.f32.xlu1 %v288_v39  ;;  %334 = vadd.xlane.f32.xlu0 %v333_v49  ;;  %v148_v0 = vpop.xlane.xlu0 %147  ;;  %v336_v50 = vsel %vm85_vm0, %v266_v16, 0.0 }
  0xa7   :  { %v151_v5 = vpop.xlane.xlu1 %150  ;;  %v203_v59 = vmul.f32 0.015625, %v148_v0  ;;  %v251_v7 = vmul.f32 %v5248_v13, %v5248_v13 }
  0xa8   :  { %v204_v60 = vmul.f32 0.015625, %v151_v5  ;;  %v252_v21 = vmul.f32 %v5252_v17, %v5252_v17 }
  0xa9   :  { %v5262_v18 = vsub.f32 %v4689_v26, %v203_v59  ;;  %v291_v8 = vsel %vm85_vm0, %v251_v7, 0.0 }
  0xaa   :  { %v5266_v22 = vsub.f32 %v4690_v27, %v204_v60  ;;  %337 = vadd.xlane.f32.xlu1 %v336_v50  ;;  %292 = vadd.xlane.f32.xlu0 %v291_v8  ;;  %v106_v15 = vpop.xlane.xlu0 %105  ;;  %v294_v19 = vsel %vm85_vm0, %v252_v21, 0.0 }
  0xab   :  { %v109_v9 = vpop.xlane.xlu1 %108  ;;  %v189_v3 = vmul.f32 0.015625, %v106_v15  ;;  %v267_v39 = vmul.f32 %v5262_v18, %v5262_v18 }
  0xac   :  { %v190_v30 = vmul.f32 0.015625, %v109_v9  ;;  %v268_v26 = vmul.f32 %v5266_v22, %v5266_v22 }
  0xad   :  { %v5276_v23 = vsub.f32 %v4661_v31, %v189_v3  ;;  %v339_v40 = vsel %vm85_vm0, %v267_v39, 0.0 }
  0xae   :  { %v5280_v27 = vsub.f32 %v4662_v32, %v190_v30  ;;  %295 = vadd.xlane.f32.xlu1 %v294_v19  ;;  %340 = vadd.xlane.f32.xlu0 %v339_v40  ;;  %v154_v44 = vpop.xlane.xlu0 %153  ;;  %v342_v16 = vsel %vm85_vm0, %v268_v26, 0.0 }
  0xaf   :  { %v157_v45 = vpop.xlane.xlu1 %156  ;;  %v205_v49 = vmul.f32 0.015625, %v154_v44  ;;  %v253_v5 = vmul.f32 %v5276_v23, %v5276_v23 }
  0xb0   :  { %v206_v0 = vmul.f32 0.015625, %v157_v45  ;;  %v254_v31 = vmul.f32 %v5280_v27, %v5280_v27 }
  0xb1   :  { %v5290_v28 = vsub.f32 %v4693_v36, %v205_v49  ;;  %v297_v50 = vsel %vm85_vm0, %v253_v5, 0.0 }
  0xb2   :  { %v5294_v32 = vsub.f32 %v4694_v37, %v206_v0  ;;  %343 = vadd.xlane.f32.xlu1 %v342_v16  ;;  %298 = vadd.xlane.f32.xlu0 %v297_v50  ;;  %v112_v59 = vpop.xlane.xlu0 %111  ;;  %v300_v7 = vsel %vm85_vm0, %v254_v31, 0.0 }
  0xb3   :  { %v115_v60 = vpop.xlane.xlu1 %114  ;;  %v191_v21 = vmul.f32 0.015625, %v112_v59  ;;  %v269_v15 = vmul.f32 %v5290_v28, %v5290_v28  ;;  %v4799_v59 = vld [vmem:[%s7020_s2] sm:$0xff]  }
  0xb4   :  { %v192_v8 = vmul.f32 0.015625, %v115_v60  ;;  %v270_v36 = vmul.f32 %v5294_v32, %v5294_v32  ;;  %4746 = vmatprep.subr.bf16.mxu0 %v4799_v59  ;;  %4786 = vmatprep.subr.bf16.mxu1 %v4799_v59 }
  0xb5   :  { %v5304_v33 = vsub.f32 %v4665_v41, %v191_v21  ;;  %v345_v9 = vsel %vm85_vm0, %v269_v15, 0.0  ;;  %4747 = vmatpush3.bf16.msra.mxu0 %v4799_v59  ;;  %4790 = vmatpush3.bf16.msra.mxu1 %v4799_v59  ;;  %v4802_v59 = vld [vmem:[%s7020_s2 + $0x18] sm:$0xff]  }
  0xb6   :  { %v5308_v37 = vsub.f32 %v4666_v42, %v192_v8  ;;  %301 = vadd.xlane.f32.xlu1 %v300_v7  ;;  %346 = vadd.xlane.f32.xlu0 %v345_v9  ;;  %v160_v19 = vpop.xlane.xlu0 %159  ;;  %v348_v30 = vsel %vm85_vm0, %v270_v36, 0.0 }
  0xb7   :  { %v163_v3 = vpop.xlane.xlu1 %162  ;;  %v207_v39 = vmul.f32 0.015625, %v160_v19  ;;  %v255_v40 = vmul.f32 %v5304_v33, %v5304_v33  ;;  %v4800_v19 = vld [vmem:[%s7020_s2 + $0x8] sm:$0xff]  }
  0xb8   :  { %v208_v26 = vmul.f32 0.015625, %v163_v3  ;;  %v256_v41 = vmul.f32 %v5308_v37, %v5308_v37  ;;  %4748 = vmatprep.subr.bf16.mxu0 %v4800_v19  ;;  %4787 = vmatprep.subr.bf16.mxu1 %v4800_v19 }
  0xb9   :  { %v5318_v38 = vsub.f32 %v4697_v46, %v207_v39  ;;  %v303_v44 = vsel %vm85_vm0, %v255_v40, 0.0  ;;  %4749 = vmatpush3.bf16.msra.mxu0 %v4800_v19  ;;  %4791 = vmatpush3.bf16.msra.mxu1 %v4800_v19 }
  0xba   :  { %v5322_v42 = vsub.f32 %v4698_v47, %v208_v26  ;;  %349 = vadd.xlane.f32.xlu1 %v348_v30  ;;  %304 = vadd.xlane.f32.xlu0 %v303_v44  ;;  %v118_v45 = vpop.xlane.xlu0 %117  ;;  %v306_v49 = vsel %vm85_vm0, %v256_v41, 0.0 }
  0xbb   :  { %v121_v16 = vpop.xlane.xlu1 %120  ;;  %v193_v0 = vmul.f32 0.015625, %v118_v45  ;;  %v271_v31 = vmul.f32 %v5318_v38, %v5318_v38  ;;  %v4801_v45 = vld [vmem:[%s7020_s2 + $0x10] sm:$0xff]  }
  0xbc   :  { %v194_v5 = vmul.f32 0.015625, %v121_v16  ;;  %v272_v46 = vmul.f32 %v5322_v42, %v5322_v42  ;;  %4750 = vmatprep.subr.bf16.mxu0 %v4801_v45  ;;  %4788 = vmatprep.subr.bf16.mxu1 %v4801_v45 }
  0xbd   :  { %v5332_v43 = vsub.f32 %v4669_v51, %v193_v0  ;;  %v351_v50 = vsel %vm85_vm0, %v271_v31, 0.0  ;;  %4751 = vmatpush3.bf16.msra.mxu0 %v4801_v45  ;;  %4792 = vmatpush3.bf16.msra.mxu1 %v4801_v45 }
  0xbe   :  { %v5336_v47 = vsub.f32 %v4670_v52, %v194_v5  ;;  %307 = vadd.xlane.f32.xlu1 %v306_v49  ;;  %352 = vadd.xlane.f32.xlu0 %v351_v50  ;;  %v166_v60 = vpop.xlane.xlu0 %165  ;;  %v354_v21 = vsel %vm85_vm0, %v272_v46, 0.0 }
  0xbf   :  { %v169_v7 = vpop.xlane.xlu1 %168  ;;  %v209_v8 = vmul.f32 0.015625, %v166_v60  ;;  %v257_v51 = vmul.f32 %v5332_v43, %v5332_v43  ;;  %4752 = vmatprep.subr.bf16.mxu0 %v4802_v59  ;;  %4789 = vmatprep.subr.bf16.mxu1 %v4802_v59 }
  0xc0   :  { %v210_v15 = vmul.f32 0.015625, %v169_v7  ;;  %v258_v48 = vmul.f32 %v5336_v47, %v5336_v47 }
  0xc1   :  { %v5349_v52 = vsub.f32 %v4701_v56, %v209_v8  ;;  %v309_v9 = vsel %vm85_vm0, %v257_v51, 0.0  ;;  %4753 = vmatpush3.bf16.msra.mxu0 %v4802_v59  ;;  %4793 = vmatpush3.bf16.msra.mxu1 %v4802_v59 }
  0xc2   :  { %v5353_v36 = vsub.f32 %v4702_v57, %v210_v15  ;;  %355 = vadd.xlane.f32.xlu1 %v354_v21  ;;  %310 = vadd.xlane.f32.xlu0 %v309_v9  ;;  %v124_v3 = vpop.xlane.xlu0 %123  ;;  %v312_v39 = vsel %vm85_vm0, %v258_v48, 0.0 }
  0xc3   :  { %v127_v30 = vpop.xlane.xlu1 %126  ;;  %v195_v26 = vmul.f32 0.015625, %v124_v3  ;;  %v273_v56 = vmul.f32 %v5349_v52, %v5349_v52 }
  0xc4   :  { %v196_v40 = vmul.f32 0.015625, %v127_v30  ;;  %v274_v53 = vmul.f32 %v5353_v36, %v5353_v36 }
  0xc5   :  { %v5366_v57 = vsub.f32 %v4673_v61, %v195_v26  ;;  %v357_v44 = vsel %vm85_vm0, %v273_v56, 0.0 }
  0xc6   :  { %v5370_v41 = vsub.f32 %v4674_v62, %v196_v40  ;;  %313 = vadd.xlane.f32.xlu1 %v312_v39  ;;  %358 = vadd.xlane.f32.xlu0 %v357_v44  ;;  %v172_v16 = vpop.xlane.xlu0 %171  ;;  %v360_v0 = vsel %vm85_vm0, %v274_v53, 0.0 }
  0xc7   :  { %v175_v49 = vpop.xlane.xlu1 %174  ;;  %v211_v5 = vmul.f32 0.015625, %v172_v16  ;;  %v259_v61 = vmul.f32 %v5366_v57, %v5366_v57  ;;  %v503_v16 = vlaneseq }
  0xc8   :  { %v212_v31 = vmul.f32 0.015625, %v175_v49  ;;  %v260_v58 = vmul.f32 %v5370_v41, %v5370_v41 }
  0xc9   :  { %v5383_v62 = vsub.f32 %v4705_v11, %v211_v5  ;;  %v315_v50 = vsel %vm85_vm0, %v259_v61, 0.0 }
  0xca   :  { %v5387_v46 = vsub.f32 %v4706_v12, %v212_v31  ;;  %361 = vadd.xlane.f32.xlu1 %v360_v0  ;;  %316 = vadd.xlane.f32.xlu0 %v315_v50  ;;  %v130_v60 = vpop.xlane.xlu0 %129  ;;  %v318_v21 = vsel %vm85_vm0, %v260_v58, 0.0  ;;  %v5429_v58 = vshrl.u32 %v503_v16, 7 }
  0xcb   :  { %v133_v7 = vpop.xlane.xlu1 %132  ;;  %v197_v8 = vmul.f32 0.015625, %v130_v60  ;;  %v275_v11 = vmul.f32 %v5383_v62, %v5383_v62 }
  0xcc   :  { %v198_v15 = vmul.f32 0.015625, %v133_v7  ;;  %v276_v63 = vmul.f32 %v5387_v46, %v5387_v46 }
  0xcd   :  { %v5400_v12 = vsub.f32 %v4677_v20, %v197_v8  ;;  %v363_v48 = vsel %vm85_vm0, %v275_v11, 0.0 }
  0xce   :  { %v5404_v51 = vsub.f32 %v4678_v24, %v198_v15  ;;  %319 = vadd.xlane.f32.xlu1 %v318_v21  ;;  %364 = vadd.xlane.f32.xlu0 %v363_v48  ;;  %v178_v9 = vpop.xlane.xlu0 %177  ;;  %v366_v3 = vsel %vm85_vm0, %v276_v63, 0.0  ;;  %v5432_v15 = vsub.s32 0, %v5429_v58  ;;  %v5437_v48 = vld [vmem:[%s7019_s1] sm:$0x3f] }
  0xcf   :  { %v181_v19 = vpop.xlane.xlu1 %180  ;;  %v213_v30 = vmul.f32 0.015625, %v178_v9  ;;  %v261_v26 = vmul.f32 %v5400_v12, %v5400_v12 }
  0xd0   :  { %v214_v39 = vmul.f32 0.015625, %v181_v19  ;;  %v262_v20 = vmul.f32 %v5404_v51, %v5404_v51 }
  0xd1   :  { %v5414_v14 = vsub.f32 %v4709_v34, %v213_v30  ;;  %v321_v40 = vsel %vm85_vm0, %v261_v26, 0.0  ;;  %v5444_v26 = vrot.slane %v5437_v48, %v5432_v15 }
  0xd2   :  { %v5418_v24 = vsub.f32 %v4710_v35, %v214_v39  ;;  %367 = vadd.xlane.f32.xlu1 %v366_v3  ;;  %322 = vadd.xlane.f32.xlu0 %v321_v40  ;;  %v324_v56 = vsel %vm85_vm0, %v262_v20, 0.0  ;;  %v5440_v3 = vsub.s32 1, %v5429_v58 }
  0xd3   :  { %v277_v53 = vmul.f32 %v5414_v14, %v5414_v14 }
  0xd4   :  { %v278_v44 = vmul.f32 %v5418_v24, %v5418_v24 }
  0xd5   :  { %v369_v45 = vsel %vm85_vm0, %v277_v53, 0.0 }
  0xd6   :  { %325 = vadd.xlane.f32.xlu1 %v324_v56  ;;  %370 = vadd.xlane.f32.xlu0 %v369_v45  ;;  %v372_v25 = vsel %vm85_vm0, %v278_v44, 0.0 }
  0xda   :  { %373 = vadd.xlane.f32.xlu1 %v372_v25  ;;  %v5449_v25 = vrot.slane %v5437_v48, %v5440_v3 }
 0x127   :  { %v281_v34 = vpop.xlane.xlu0 %280 }
 0x128   :  { %v375_v35 = vmul.f32 0.015625, %v281_v34 }
 0x12a   :  { %v407_v49 = vadd.f32 1e-05, %v375_v35 }
 0x12b   :  { %v284_v0 = vpop.xlane.xlu1 %283  ;;  %v329_v5 = vpop.xlane.xlu0 %328 }
 0x12c   :  { %4803 = vrsqrt.f32 %v407_v49  ;;  %v376_v31 = vmul.f32 0.015625, %v284_v0  ;;  %v391_v61 = vmul.f32 0.015625, %v329_v5 }
 0x12e   :  { %v408_v50 = vadd.f32 1e-05, %v376_v31  ;;  %v423_v59 = vadd.f32 1e-05, %v391_v61 }
 0x12f   :  { %v332_v60 = vpop.xlane.xlu1 %331  ;;  %v287_v7 = vpop.xlane.xlu0 %286 }
 0x130   :  { %4805 = vrsqrt.f32 %v408_v50  ;;  %v392_v21 = vmul.f32 0.015625, %v332_v60  ;;  %v377_v8 = vmul.f32 0.015625, %v287_v7 }
 0x131   :  { %4807 = vrsqrt.f32 %v423_v59 }
 0x132   :  { %v424_v11 = vadd.f32 1e-05, %v392_v21  ;;  %v409_v63 = vadd.f32 1e-05, %v377_v8 }
 0x133   :  { %v290_v9 = vpop.xlane.xlu1 %289  ;;  %v335_v19 = vpop.xlane.xlu0 %334 }
 0x134   :  { %4809 = vrsqrt.f32 %v424_v11  ;;  %v378_v30 = vmul.f32 0.015625, %v290_v9  ;;  %v393_v39 = vmul.f32 0.015625, %v335_v19 }
 0x135   :  { %4811 = vrsqrt.f32 %v409_v63 }
 0x136   :  { %v4804_v20 = vpop.eup %4803  ;;  %v410_v40 = vadd.f32 1e-05, %v378_v30  ;;  %v425_v56 = vadd.f32 1e-05, %v393_v39 }
 0x137   :  { %v338_v53 = vpop.xlane.xlu1 %337  ;;  %v293_v44 = vpop.xlane.xlu0 %292  ;;  %v471_v45 = vmul.f32 %v4804_v20, %v5194_v54 }
 0x138   :  { %4813 = vrsqrt.f32 %v410_v40  ;;  %v394_v34 = vmul.f32 0.015625, %v338_v53  ;;  %v379_v35 = vmul.f32 0.015625, %v293_v44 }
 0x139   :  { %4815 = vrsqrt.f32 %v425_v56  ;;  %v507_v49 = vmul.f32 %v5444_v26, %v471_v45 }
 0x13a   :  { %v4806_v0 = vpop.eup %4805  ;;  %v426_v5 = vadd.f32 1e-05, %v394_v34  ;;  %v411_v31 = vadd.f32 1e-05, %v379_v35 }
 0x13b   :  { %v4808_v61 = vpop.eup %4807  ;;  %v296_v50 = vpop.xlane.xlu1 %295  ;;  %v472_v60 = vmul.f32 %v4806_v0, %v5206_v29  ;;  %v543_v54 = vadd.f32 %v5449_v25, %v507_v49 }
 0x13c   :  { %v341_v59 = vpop.xlane.xlu0 %340  ;;  %4817 = vrsqrt.f32 %v426_v5  ;;  %v380_v7 = vmul.f32 0.015625, %v296_v50  ;;  %v487_v8 = vmul.f32 %v4808_v61, %v5198_v55 }
 0x13d   :  { %v395_v21 = vmul.f32 0.015625, %v341_v59  ;;  %4819 = vrsqrt.f32 %v411_v31  ;;  %v508_v11 = vmul.f32 %v5444_v26, %v472_v60  ;;  %v607_v30 = vmul.f32 0.01, %v543_v54 }
 0x13e   :  { %v4810_v63 = vpop.eup %4809  ;;  %v412_v9 = vadd.f32 1e-05, %v380_v7  ;;  %v523_v39 = vmul.f32 %v5444_v26, %v487_v8  ;;  %vm575_vm1 = vcmp.gt.f32.partialorder %v543_v54, 0.0 }
 0x13f   :  { %v427_v19 = vadd.f32 1e-05, %v395_v21  ;;  %v4812_v20 = vpop.eup %4811  ;;  %v344_v40 = vpop.xlane.xlu1 %343  ;;  %v544_v29 = vadd.f32 %v5449_v25, %v508_v11  ;;  %v488_v53 = vmul.f32 %v4810_v63, %v5210_v2  ;;  %v639_v31 = vsel %vm575_vm1, %v543_v54, %v607_v30 }
 0x140   :  { %v299_v56 = vpop.xlane.xlu0 %298  ;;  %v473_v44 = vmul.f32 %v4812_v20, %v5220_v1  ;;  %4821 = vrsqrt.f32 %v412_v9  ;;  %v396_v55 = vmul.f32 0.015625, %v344_v40  ;;  %v559_v61 = vadd.f32 %v5449_v25, %v523_v39 }
 0x141   :  { %v381_v45 = vmul.f32 0.015625, %v299_v56  ;;  %4823 = vrsqrt.f32 %v427_v19  ;;  %vm576_vm2 = vcmp.gt.f32.partialorder %v544_v29, 0.0  ;;  %v608_v34 = vmul.f32 0.01, %v544_v29 }
 0x142   :  { %v524_v35 = vmul.f32 %v5444_v26, %v488_v53  ;;  %v4814_v49 = vpop.eup %4813  ;;  %v428_v0 = vadd.f32 1e-05, %v396_v55  ;;  %v509_v21 = vmul.f32 %v5444_v26, %v473_v44  ;;  %vm591_vm3 = vcmp.gt.f32.partialorder %v559_v61, 0.0 }
 0x143   :  { %v413_v5 = vadd.f32 1e-05, %v381_v45  ;;  %v4816_v50 = vpop.eup %4815  ;;  %v474_v59 = vmul.f32 %v4814_v49, %v5224_v4  ;;  %v302_v2 = vpop.xlane.xlu1 %301  ;;  %v640_v1 = vsel %vm576_vm2, %v544_v29, %v608_v34  ;;  %v623_v4 = vmul.f32 0.01, %v559_v61 }
 0x144   :  { %v347_v60 = vpop.xlane.xlu0 %346  ;;  %v560_v7 = vadd.f32 %v5449_v25, %v524_v35  ;;  %v489_v8 = vmul.f32 %v4816_v50, %v5234_v6  ;;  %4825 = vrsqrt.f32 %v428_v0  ;;  %v382_v11 = vmul.f32 0.015625, %v302_v2 }
 0x145   :  { %v397_v63 = vmul.f32 0.015625, %v347_v60  ;;  %4827 = vrsqrt.f32 %v413_v5  ;;  %v671_v9 = vpack.c.bf16 %v640_v1, %v639_v31  ;;  %v510_v39 = vmul.f32 %v5444_v26, %v474_v59 }
 0x146   :  { %vm592_vm4 = vcmp.gt.f32.partialorder %v560_v7, 0.0  ;;  %v4818_v54 = vpop.eup %4817  ;;  %v414_v19 = vadd.f32 1e-05, %v382_v11  ;;  %v624_v29 = vmul.f32 0.01, %v560_v7  ;;  %v545_v53 = vadd.f32 %v5449_v25, %v509_v21 }
 0x147   :  { %v429_v30 = vadd.f32 1e-05, %v397_v63  ;;  %v4820_v20 = vpop.eup %4819  ;;  %v490_v40 = vmul.f32 %v4818_v54, %v5238_v10  ;;  %4754 = vmatprep.mubr.msk.bf16.mxu0 %vm85_vm0, %v671_v9  ;;  %v350_v56 = vpop.xlane.xlu1 %349  ;;  %v525_v44 = vmul.f32 %v5444_v26, %v489_v8  ;;  %v655_v35 = vsel %vm591_vm3, %v559_v61, %v623_v4 }
 0x148   :  { %v305_v6 = vpop.xlane.xlu0 %304  ;;  %v475_v55 = vmul.f32 %v4820_v20, %v5248_v13  ;;  %4829 = vrsqrt.f32 %v414_v19  ;;  %v398_v45 = vmul.f32 0.015625, %v350_v56  ;;  %v656_v49 = vsel %vm592_vm4, %v560_v7, %v624_v29 }
 0x149   :  { %v383_v34 = vmul.f32 0.015625, %v305_v6  ;;  %4831 = vrsqrt.f32 %v429_v30  ;;  %v546_v10 = vadd.f32 %v5449_v25, %v510_v39  ;;  %v679_v50 = vpack.c.bf16 %v656_v49, %v655_v35 }
 0x14a   :  { %v4822_v0 = vpop.eup %4821  ;;  %v430_v5 = vadd.f32 1e-05, %v398_v45  ;;  %vm577_vm5 = vcmp.gt.f32.partialorder %v545_v53, 0.0  ;;  %v609_v1 = vmul.f32 0.01, %v545_v53  ;;  %v526_v9 = vmul.f32 %v5444_v26, %v490_v40 }
 0x14b   :  { %v415_v31 = vadd.f32 1e-05, %v383_v34  ;;  %v4824_v59 = vpop.eup %4823  ;;  %v476_v2 = vmul.f32 %v4822_v0, %v5252_v17  ;;  %v308_v60 = vpop.xlane.xlu1 %307  ;;  %vm578_vm6 = vcmp.gt.f32.partialorder %v546_v10, 0.0  ;;  %v610_v21 = vmul.f32 0.01, %v546_v10  ;;  %4770 = vmatprep.mubr.msk.bf16.mxu1 %vm85_vm0, %v679_v50 }
 0x14c   :  { %v353_v13 = vpop.xlane.xlu0 %352  ;;  %v491_v8 = vmul.f32 %v4824_v59, %v5262_v18  ;;  %4833 = vrsqrt.f32 %v430_v5  ;;  %v384_v61 = vmul.f32 0.015625, %v308_v60  ;;  %v641_v11 = vsel %vm577_vm5, %v545_v53, %v609_v1 }
 0x14d   :  { %v399_v7 = vmul.f32 0.015625, %v353_v13  ;;  %4835 = vrsqrt.f32 %v415_v31  ;;  %v642_v63 = vsel %vm578_vm6, %v546_v10, %v610_v21  ;;  %v561_v4 = vadd.f32 %v5449_v25, %v525_v44 }
 0x14e   :  { %v4826_v54 = vpop.eup %4825  ;;  %v416_v19 = vadd.f32 1e-05, %v384_v61  ;;  %v672_v30 = vpack.c.bf16 %v642_v63, %v641_v11  ;;  %v562_v6 = vadd.f32 %v5449_v25, %v526_v9  ;;  %v511_v29 = vmul.f32 %v5444_v26, %v475_v55 }
 0x14f   :  { %v431_v17 = vadd.f32 1e-05, %v399_v7  ;;  %v4828_v39 = vpop.eup %4827  ;;  %v492_v20 = vmul.f32 %v4826_v54, %v5266_v22  ;;  %v356_v18 = vpop.xlane.xlu1 %355  ;;  %v512_v53 = vmul.f32 %v5444_v26, %v476_v2  ;;  %vm593_vm7 = vcmp.gt.f32.partialorder %v561_v4, 0.0 }
 0x150   :  { %v311_v56 = vpop.xlane.xlu0 %310  ;;  %v5485_v45 = vmul.f32 %v4828_v39, %v5276_v23  ;;  %4837 = vrsqrt.f32 %v416_v19  ;;  %4755 = vmatmul.mubr.msk.bf16.vlgmr.msra.gmra.mrb[0].mxu0 %vm85_vm0, %v672_v30  ;;  %v400_v40 = vmul.f32 0.015625, %v356_v18  ;;  %vm594_vm8 = vcmp.gt.f32.partialorder %v562_v6, 0.0 }
 0x151   :  { %v385_v34 = vmul.f32 0.015625, %v311_v56  ;;  %4839 = vrsqrt.f32 %v431_v17  ;;  %v625_v22 = vmul.f32 0.01, %v561_v4  ;;  %v626_v10 = vmul.f32 0.01, %v562_v6 }
 0x152   :  { %v4830_v44 = vpop.eup %4829  ;;  %v432_v35 = vadd.f32 1e-05, %v400_v40  ;;  %v547_v55 = vadd.f32 %v5449_v25, %v511_v29  ;;  %v548_v59 = vadd.f32 %v5449_v25, %v512_v53  ;;  %v527_v2 = vmul.f32 %v5444_v26, %v491_v8 }
 0x153   :  { %v417_v49 = vadd.f32 1e-05, %v385_v34  ;;  %v4832_v0 = vpop.eup %4831  ;;  %v478_v5 = vmul.f32 %v4830_v44, %v5280_v27  ;;  %v657_v23 = vsel %vm593_vm7, %v561_v4, %v625_v22  ;;  %v314_v31 = vpop.xlane.xlu1 %313  ;;  %v658_v13 = vsel %vm594_vm8, %v562_v6, %v626_v10 }
 0x154   :  { %v359_v50 = vpop.xlane.xlu0 %358  ;;  %v493_v60 = vmul.f32 %v4832_v0, %v5290_v28  ;;  %4841 = vrsqrt.f32 %v432_v35  ;;  %v386_v1 = vmul.f32 0.015625, %v314_v31  ;;  %v680_v21 = vpack.c.bf16 %v658_v13, %v657_v23 }
 0x155   :  { %4843 = vrsqrt.f32 %v417_v49  ;;  %v401_v61 = vmul.f32 0.015625, %v359_v50  ;;  %vm579_vm9 = vcmp.gt.f32.partialorder %v547_v55, 0.0  ;;  %vm580_vm10 = vcmp.gt.f32.partialorder %v548_v59, 0.0 }
 0x156   :  { %v4834_v7 = vpop.eup %4833  ;;  %v418_v11 = vadd.f32 1e-05, %v386_v1  ;;  %v611_v27 = vmul.f32 0.01, %v547_v55  ;;  %v528_v63 = vmul.f32 %v5444_v26, %v492_v20  ;;  %4771 = vmatmul.mubr.msk.bf16.vlgmr.msra.gmra.mrb[0].mxu1 %vm85_vm0, %v680_v21  ;;  %v612_v8 = vmul.f32 0.01, %v548_v59 }
 0x157   :  { %v4836_v9 = vpop.eup %4835  ;;  %v494_v54 = vmul.f32 %v4834_v7, %v5294_v32  ;;  %v433_v28 = vadd.f32 1e-05, %v401_v61  ;;  %v362_v19 = vpop.xlane.xlu1 %361  ;;  %v563_v30 = vadd.f32 %v5449_v25, %v527_v2  ;;  %v513_v50 = vmul.f32 %v5444_v26, %v5485_v45 }
 0x158   :  { %v317_v17 = vpop.xlane.xlu0 %316  ;;  %v5499_v4 = vmul.f32 %v4836_v9, %v5304_v33  ;;  %4845 = vrsqrt.f32 %v418_v11  ;;  %v643_v39 = vsel %vm579_vm9, %v547_v55, %v611_v27  ;;  %v402_v18 = vmul.f32 0.015625, %v362_v19 }
 0x159   :  { %4847 = vrsqrt.f32 %v433_v28  ;;  %v644_v20 = vsel %vm580_vm10, %v548_v59, %v612_v8  ;;  %v387_v56 = vmul.f32 0.015625, %v317_v17  ;;  %v564_v32 = vadd.f32 %v5449_v25, %v528_v63 }
 0x15a   :  { %v4838_v6 = vpop.eup %4837  ;;  %v673_v29 = vpack.c.bf16 %v644_v20, %v643_v39  ;;  %v434_v53 = vadd.f32 1e-05, %v402_v18  ;;  %vm595_vm11 = vcmp.gt.f32.partialorder %v563_v30, 0.0  ;;  %v627_v40 = vmul.f32 0.01, %v563_v30 }
 0x15b   :  { %v4840_v34 = vpop.eup %4839  ;;  %v5505_v22 = vmul.f32 %v4838_v6, %v5308_v37  ;;  %v419_v33 = vadd.f32 1e-05, %v387_v56  ;;  %vm596_vm12 = vcmp.gt.f32.partialorder %v564_v32, 0.0  ;;  %v628_v44 = vmul.f32 0.01, %v564_v32  ;;  %v320_v35 = vpop.xlane.xlu1 %319 }
 0x15c   :  { %v365_v49 = vpop.xlane.xlu0 %364  ;;  %v495_v10 = vmul.f32 %v4840_v34, %v5318_v38  ;;  %4758 = vmatprep.mubr.msk.bf16.mxu0 %vm85_vm0, %v673_v29  ;;  %4849 = vrsqrt.f32 %v434_v53  ;;  %v659_v55 = vsel %vm595_vm11, %v563_v30, %v627_v40  ;;  %v388_v0 = vmul.f32 0.015625, %v320_v35 }
 0x15d   :  { %4851 = vrsqrt.f32 %v419_v33  ;;  %v660_v23 = vsel %vm596_vm12, %v564_v32, %v628_v44  ;;  %v403_v31 = vmul.f32 0.015625, %v365_v49  ;;  %v514_v13 = vmul.f32 %v5444_v26, %v478_v5 }
 0x15e   :  { %v4842_v37 = vpop.eup %4841  ;;  %v681_v59 = vpack.c.bf16 %v660_v23, %v659_v55  ;;  %v420_v2 = vadd.f32 1e-05, %v388_v0  ;;  %v529_v1 = vmul.f32 %v5444_v26, %v493_v60  ;;  %v549_v7 = vadd.f32 %v5449_v25, %v513_v50 }
 0x15f   :  { %v4844_v21 = vpop.eup %4843  ;;  %v496_v38 = vmul.f32 %v4842_v37, %v5322_v42  ;;  %v435_v61 = vadd.f32 1e-05, %v403_v31  ;;  %v368_v11 = vpop.xlane.xlu1 %367  ;;  %v530_v63 = vmul.f32 %v5444_v26, %v494_v54  ;;  %v550_v45 = vadd.f32 %v5449_v25, %v514_v13 }
 0x160   :  { %v323_v27 = vpop.xlane.xlu0 %322  ;;  %v481_v9 = vmul.f32 %v4844_v21, %v5332_v43  ;;  %4774 = vmatprep.mubr.msk.bf16.mxu1 %vm85_vm0, %v681_v59  ;;  %4853 = vrsqrt.f32 %v420_v2  ;;  %v404_v5 = vmul.f32 0.015625, %v368_v11  ;;  %vm581_vm13 = vcmp.gt.f32.partialorder %v549_v7, 0.0 }
 0x161   :  { %4855 = vrsqrt.f32 %v435_v61  ;;  %v613_v60 = vmul.f32 0.01, %v549_v7  ;;  %v389_v28 = vmul.f32 0.015625, %v323_v27  ;;  %vm582_vm14 = vcmp.gt.f32.partialorder %v550_v45, 0.0 }
 0x162   :  { %v4846_v42 = vpop.eup %4845  ;;  %v614_v8 = vmul.f32 0.01, %v550_v45  ;;  %v436_v19 = vadd.f32 1e-05, %v404_v5  ;;  %v565_v17 = vadd.f32 %v5449_v25, %v529_v1  ;;  %v566_v18 = vadd.f32 %v5449_v25, %v530_v63 }
 0x163   :  { %v4848_v30 = vpop.eup %4847  ;;  %v482_v54 = vmul.f32 %v4846_v42, %v5336_v47  ;;  %v645_v43 = vsel %vm581_vm13, %v549_v7, %v613_v60  ;;  %v421_v39 = vadd.f32 1e-05, %v389_v28  ;;  %v326_v20 = vpop.xlane.xlu1 %325  ;;  %v515_v44 = vmul.f32 %v5444_v26, %v5499_v4 }
 0x164   :  { %v371_v56 = vpop.xlane.xlu0 %370  ;;  %v5523_v32 = vmul.f32 %v4848_v30, %v5349_v52  ;;  %v646_v6 = vsel %vm582_vm14, %v550_v45, %v614_v8  ;;  %4857 = vrsqrt.f32 %v436_v19  ;;  %vm597_vm15 = vcmp.gt.f32.partialorder %v565_v17, 0.0 }
 0x165   :  { %v674_v29 = vpack.c.bf16 %v646_v6, %v645_v43  ;;  %4859 = vrsqrt.f32 %v421_v39  ;;  %vm598_vm1 = vcmp.gt.f32.partialorder %v566_v18, 0.0  ;;  %v629_v53 = vmul.f32 0.01, %v565_v17 }
 0x166   :  { %v4850_v40 = vpop.eup %4849  ;;  %v630_v34 = vmul.f32 0.01, %v566_v18  ;;  %v390_v33 = vmul.f32 0.015625, %v326_v20  ;;  %v405_v47 = vmul.f32 0.015625, %v371_v56  ;;  %v516_v55 = vmul.f32 %v5444_v26, %v5505_v22 }
 0x167   :  { %v4852_v35 = vpop.eup %4851  ;;  %v498_v49 = vmul.f32 %v4850_v40, %v5353_v36  ;;  %4759 = vmatmul.mubr.msk.bf16.gmra.mrb[4].mxu0 %vm85_vm0, %v674_v29  ;;  %v661_v52 = vsel %vm597_vm15, %v565_v17, %v629_v53  ;;  %v374_v0 = vpop.xlane.xlu1 %373  ;;  %v531_v23 = vmul.f32 %v5444_v26, %v495_v10  ;;  %v551_v4 = vadd.f32 %v5449_v25, %v515_v44 }
 0x168   :  { %v483_v31 = vmul.f32 %v4852_v35, %v5366_v57  ;;  %v662_v50 = vsel %vm598_vm1, %v566_v18, %v630_v34  ;;  %v422_v37 = vadd.f32 1e-05, %v390_v33  ;;  %v437_v59 = vadd.f32 1e-05, %v405_v47 }
 0x169   :  { %v682_v2 = vpack.c.bf16 %v662_v50, %v661_v52  ;;  %v552_v13 = vadd.f32 %v5449_v25, %v516_v55  ;;  %v406_v36 = vmul.f32 0.015625, %v374_v0  ;;  %v532_v21 = vmul.f32 %v5444_v26, %v496_v38 }
 0x16a   :  { %v4854_v1 = vpop.eup %4853  ;;  %4861 = vrsqrt.f32 %v422_v37  ;;  %v567_v22 = vadd.f32 %v5449_v25, %v531_v23  ;;  %v517_v61 = vmul.f32 %v5444_v26, %v481_v9  ;;  %vm583_vm2 = vcmp.gt.f32.partialorder %v551_v4, 0.0 }
 0x16b   :  { %v4856_v10 = vpop.eup %4855  ;;  %v484_v57 = vmul.f32 %v4854_v1, %v5370_v41  ;;  %4775 = vmatmul.mubr.msk.bf16.gmra.mrb[4].mxu1 %vm85_vm0, %v682_v2  ;;  %4863 = vrsqrt.f32 %v437_v59  ;;  %vm584_vm3 = vcmp.gt.f32.partialorder %v552_v13, 0.0  ;;  %v615_v11 = vmul.f32 0.01, %v551_v4 }
 0x16c   :  { %v499_v7 = vmul.f32 %v4856_v10, %v5383_v62  ;;  %v616_v27 = vmul.f32 0.01, %v552_v13  ;;  %v438_v63 = vadd.f32 1e-05, %v406_v36  ;;  %v568_v45 = vadd.f32 %v5449_v25, %v532_v21 }
 0x16d   :  { %vm599_vm4 = vcmp.gt.f32.partialorder %v567_v22, 0.0  ;;  %v631_v38 = vmul.f32 0.01, %v567_v22  ;;  %v518_v5 = vmul.f32 %v5444_v26, %v482_v54  ;;  %v647_v60 = vsel %vm583_vm2, %v551_v4, %v615_v11 }
 0x16e   :  { %v4858_v9 = vpop.eup %4857  ;;  %v648_v28 = vsel %vm584_vm3, %v552_v13, %v616_v27  ;;  %4865 = vrsqrt.f32 %v438_v63  ;;  %v553_v41 = vadd.f32 %v5449_v25, %v517_v61  ;;  %vm600_vm5 = vcmp.gt.f32.partialorder %v568_v45, 0.0 }
 0x16f   :  { %v4860_v42 = vpop.eup %4859  ;;  %v500_v8 = vmul.f32 %v4858_v9, %v5387_v46  ;;  %v675_v19 = vpack.c.bf16 %v648_v28, %v647_v60  ;;  %v632_v62 = vmul.f32 0.01, %v568_v45  ;;  %v663_v30 = vsel %vm599_vm4, %v567_v22, %v631_v38 }
 0x170   :  { %v485_v17 = vmul.f32 %v4860_v42, %v5400_v12  ;;  %v554_v43 = vadd.f32 %v5449_v25, %v518_v5  ;;  %vm585_vm6 = vcmp.gt.f32.partialorder %v553_v41, 0.0  ;;  %v617_v39 = vmul.f32 0.01, %v553_v41 }
 0x171   :  { %4762 = vmatprep.mubr.msk.bf16.mxu0 %vm85_vm0, %v675_v19  ;;  %v664_v54 = vsel %vm600_vm5, %v568_v45, %v632_v62  ;;  %v533_v18 = vmul.f32 %v5444_v26, %v5523_v32  ;;  %v534_v20 = vmul.f32 %v5444_v26, %v498_v49  ;;  %v519_v6 = vmul.f32 %v5444_v26, %v483_v31 }
 0x172   :  { %v683_v56 = vpack.c.bf16 %v664_v54, %v663_v30  ;;  %vm586_vm7 = vcmp.gt.f32.partialorder %v554_v43, 0.0  ;;  %v618_v46 = vmul.f32 0.01, %v554_v43  ;;  %v649_v29 = vsel %vm585_vm6, %v553_v41, %v617_v39 }
 0x173   :  { %v569_v12 = vadd.f32 %v5449_v25, %v533_v18  ;;  %v570_v53 = vadd.f32 %v5449_v25, %v534_v20  ;;  %v520_v40 = vmul.f32 %v5444_v26, %v484_v57  ;;  %v555_v32 = vadd.f32 %v5449_v25, %v519_v6 }
 0x174   :  { %v4862_v34 = vpop.eup %4861  ;;  %4778 = vmatprep.mubr.msk.bf16.mxu1 %vm85_vm0, %v683_v56  ;;  %v650_v33 = vsel %vm586_vm7, %v554_v43, %v618_v46  ;;  %v535_v47 = vmul.f32 %v5444_v26, %v499_v7  ;;  %v536_v44 = vmul.f32 %v5444_v26, %v500_v8  ;;  %v521_v57 = vmul.f32 %v5444_v26, %v485_v17 }
 0x175   :  { %v4864_v35 = vpop.eup %4863  ;;  %v486_v49 = vmul.f32 %v4862_v34, %v5404_v51  ;;  %v676_v52 = vpack.c.bf16 %v650_v33, %v649_v29  ;;  %vm601_vm8 = vcmp.gt.f32.partialorder %v569_v12, 0.0  ;;  %vm602_vm9 = vcmp.gt.f32.partialorder %v570_v53, 0.0 }
 0x176   :  { %v501_v55 = vmul.f32 %v4864_v35, %v5414_v14  ;;  %v633_v0 = vmul.f32 0.01, %v569_v12  ;;  %v634_v23 = vmul.f32 0.01, %v570_v53  ;;  %v556_v31 = vadd.f32 %v5449_v25, %v520_v40 }
 0x177   :  { %4763 = vmatmul.mubr.msk.bf16.gmra.mrb[8].mxu0 %vm85_vm0, %v676_v52  ;;  %vm587_vm10 = vcmp.gt.f32.partialorder %v555_v32, 0.0  ;;  %v619_v50 = vmul.f32 0.01, %v555_v32  ;;  %v571_v37 = vadd.f32 %v5449_v25, %v535_v47  ;;  %v572_v59 = vadd.f32 %v5449_v25, %v536_v44 }
 0x178   :  { %v4866_v2 = vpop.eup %4865  ;;  %v665_v4 = vsel %vm601_vm8, %v569_v12, %v633_v0  ;;  %v666_v51 = vsel %vm602_vm9, %v570_v53, %v634_v23  ;;  %vm588_vm11 = vcmp.gt.f32.partialorder %v556_v31, 0.0  ;;  %v620_v13 = vmul.f32 0.01, %v556_v31 }
 0x179   :  { %v502_v36 = vmul.f32 %v4866_v2, %v5418_v24  ;;  %v684_v14 = vpack.c.bf16 %v666_v51, %v665_v4  ;;  %v651_v1 = vsel %vm587_vm10, %v555_v32, %v619_v50  ;;  %vm603_vm12 = vcmp.gt.f32.partialorder %v571_v37, 0.0 }
 0x17a   :  { %v652_v21 = vsel %vm588_vm11, %v556_v31, %v620_v13  ;;  %vm604_vm13 = vcmp.gt.f32.partialorder %v572_v59, 0.0  ;;  %v635_v22 = vmul.f32 0.01, %v571_v37  ;;  %v636_v61 = vmul.f32 0.01, %v572_v59 }
 0x17b   :  { %4779 = vmatmul.mubr.msk.bf16.gmra.mrb[8].mxu1 %vm85_vm0, %v684_v14  ;;  %v677_v10 = vpack.c.bf16 %v652_v21, %v651_v1  ;;  %v522_v7 = vmul.f32 %v5444_v26, %v486_v49  ;;  %v537_v11 = vmul.f32 %v5444_v26, %v501_v55  ;;  %v538_v24 = vmul.f32 %v5444_v26, %v502_v36 }
 0x17c   :  { %v667_v27 = vsel %vm603_vm12, %v571_v37, %v635_v22  ;;  %v668_v63 = vsel %vm604_vm13, %v572_v59, %v636_v61  ;;  %v557_v38 = vadd.f32 %v5449_v25, %v521_v57 }
 0x17d   :  { %4766 = vmatprep.mubr.msk.bf16.mxu0 %vm85_vm0, %v677_v10  ;;  %v685_v45 = vpack.c.bf16 %v668_v63, %v667_v27  ;;  %v558_v5 = vadd.f32 %v5449_v25, %v522_v7  ;;  %v573_v9 = vadd.f32 %v5449_v25, %v537_v11  ;;  %v574_v60 = vadd.f32 %v5449_v25, %v538_v24 }
 0x17e   :  { %vm589_vm14 = vcmp.gt.f32.partialorder %v557_v38, 0.0  ;;  %v621_v28 = vmul.f32 0.01, %v557_v38  ;;  %v5580_v25 = vsub.s32 2, %v5429_v58 }
 0x17f   :  { %4782 = vmatprep.mubr.msk.bf16.mxu1 %vm85_vm0, %v685_v45  ;;  %vm590_vm15 = vcmp.gt.f32.partialorder %v558_v5, 0.0  ;;  %v622_v41 = vmul.f32 0.01, %v558_v5  ;;  %vm605_vm1 = vcmp.gt.f32.partialorder %v573_v9, 0.0  ;;  %vm606_vm2 = vcmp.gt.f32.partialorder %v574_v60, 0.0 }
 0x180   :  { %v637_v26 = vmul.f32 0.01, %v573_v9  ;;  %v638_v42 = vmul.f32 0.01, %v574_v60  ;;  %v653_v8 = vsel %vm589_vm14, %v557_v38, %v621_v28  ;;  %v5584_v54 = vrot.slane %v5437_v48, %v5580_v25 }
 0x181   :  { %v654_v19 = vsel %vm590_vm15, %v558_v5, %v622_v41 }
 0x182   :  { %v678_v62 = vpack.c.bf16 %v654_v19, %v653_v8  ;;  %v669_v17 = vsel %vm605_vm1, %v573_v9, %v637_v26  ;;  %v670_v30 = vsel %vm606_vm2, %v574_v60, %v638_v42 }
 0x183   :  { %v686_v43 = vpack.c.bf16 %v670_v30, %v669_v17 }
 0x184   :  { %4767 = vmatmul.mubr.msk.bf16.gmra.mrb[12].mxu0 %vm85_vm0, %v678_v62 }
 0x185   :  { %4783 = vmatmul.mubr.msk.bf16.gmra.mrb[12].mxu1 %vm85_vm0, %v686_v43 }
 0x223   :  { %v4756_v39 = vpop.f32.mrb[0].mxu0 }
 0x224   :  { %v5587_v18 = vadd.f32 %v4756_v39, %v5584_v54  ;;  %v805_v20 = vpop.f32.mrb[1].mxu0 }
 0x225   :  { %v4757_v56 = vpop.f32.mrb[2].mxu0  ;;  %v5590_v46 = vadd.f32 %v805_v20, %v5584_v54 }
 0x226   :  { %v808_v6 = vpop.f32.mrb[3].mxu0  ;;  %v938_v29 = vsel %vm85_vm0, %v5587_v18, 0.0  ;;  %v5608_v35 = vadd.f32 %v4757_v56, %v5584_v54 }
 0x227   :  { %939 = vadd.xlane.f32.xlu0 %v938_v29  ;;  %v932_v53 = vsel %vm85_vm0, %v5590_v46, 0.0  ;;  %v5613_v52 = vadd.f32 %v808_v6, %v5584_v54 }
 0x228   :  { %v941_v0 = vsel %vm85_vm0, %v5608_v35, 0.0 }
 0x229   :  { %v4772_v12 = vpop.f32.mrb[0].mxu1  ;;  %v935_v31 = vsel %vm85_vm0, %v5613_v52, 0.0 }
 0x22a   :  { %v5597_v48 = vadd.f32 %v4772_v12, %v5584_v54  ;;  %v869_v40 = vpop.f32.mrb[1].mxu1 }
 0x22b   :  { %933 = vadd.xlane.f32.xlu0 %v932_v53  ;;  %v5600_v34 = vadd.f32 %v869_v40, %v5584_v54  ;;  %v4773_v33 = vpop.f32.mrb[2].mxu1 }
 0x22c   :  { %v5603_v32 = vadd.f32 %v4773_v33, %v5584_v54  ;;  %v872_v47 = vpop.f32.mrb[3].mxu1  ;;  %v986_v44 = vsel %vm85_vm0, %v5597_v48, 0.0 }
 0x22d   :  { %987 = vadd.xlane.f32.xlu1 %v986_v44  ;;  %v980_v49 = vsel %vm85_vm0, %v5600_v34, 0.0  ;;  %v5620_v23 = vadd.f32 %v872_v47, %v5584_v54 }
 0x22e   :  { %v989_v55 = vsel %vm85_vm0, %v5603_v32, 0.0 }
 0x22f   :  { %981 = vadd.xlane.f32.xlu0 %v980_v49  ;;  %v983_v50 = vsel %vm85_vm0, %v5620_v23, 0.0 }
 0x231   :  { %990 = vadd.xlane.f32.xlu1 %v989_v55 }
 0x233   :  { %942 = vadd.xlane.f32.xlu0 %v941_v0 }
 0x235   :  { %936 = vadd.xlane.f32.xlu1 %v935_v31 }
 0x239   :  { %984 = vadd.xlane.f32.xlu1 %v983_v50 }
 0x23a   :  { %v4760_v37 = vpop.f32.mrb[4].mxu0 }
 0x23b   :  { %v5627_v59 = vadd.f32 %v4760_v37, %v5584_v54  ;;  %v821_v2 = vpop.f32.mrb[5].mxu0 }
 0x23c   :  { %v4761_v4 = vpop.f32.mrb[6].mxu0  ;;  %v5630_v51 = vadd.f32 %v821_v2, %v5584_v54 }
 0x23d   :  { %v824_v13 = vpop.f32.mrb[7].mxu0  ;;  %v950_v36 = vsel %vm85_vm0, %v5627_v59, 0.0  ;;  %v5638_v61 = vadd.f32 %v4761_v4, %v5584_v54 }
 0x23e   :  { %v4776_v14 = vpop.f32.mrb[4].mxu1  ;;  %951 = vadd.xlane.f32.xlu0 %v950_v36  ;;  %v944_v11 = vsel %vm85_vm0, %v5630_v51, 0.0  ;;  %v5648_v27 = vadd.f32 %v824_v13, %v5584_v54 }
 0x23f   :  { %v5635_v1 = vadd.f32 %v4776_v14, %v5584_v54  ;;  %v885_v21 = vpop.f32.mrb[5].mxu1  ;;  %v953_v45 = vsel %vm85_vm0, %v5638_v61, 0.0 }
 0x240   :  { %v4777_v22 = vpop.f32.mrb[6].mxu1  ;;  %v5641_v10 = vadd.f32 %v885_v21, %v5584_v54  ;;  %v947_v9 = vsel %vm85_vm0, %v5648_v27, 0.0 }
 0x241   :  { %v888_v57 = vpop.f32.mrb[7].mxu1  ;;  %v998_v7 = vsel %vm85_vm0, %v5635_v1, 0.0  ;;  %v5651_v63 = vadd.f32 %v4777_v22, %v5584_v54 }
 0x242   :  { %999 = vadd.xlane.f32.xlu1 %v998_v7  ;;  %945 = vadd.xlane.f32.xlu0 %v944_v11  ;;  %v992_v24 = vsel %vm85_vm0, %v5641_v10, 0.0  ;;  %v5658_v38 = vadd.f32 %v888_v57, %v5584_v54 }
 0x243   :  { %v1001_v5 = vsel %vm85_vm0, %v5651_v63, 0.0 }
 0x244   :  { %v995_v19 = vsel %vm85_vm0, %v5658_v38, 0.0 }
 0x246   :  { %993 = vadd.xlane.f32.xlu1 %v992_v24  ;;  %954 = vadd.xlane.f32.xlu0 %v953_v45 }
 0x24a   :  { %v4764_v60 = vpop.f32.mrb[8].mxu0  ;;  %1002 = vadd.xlane.f32.xlu1 %v1001_v5  ;;  %948 = vadd.xlane.f32.xlu0 %v947_v9 }
 0x24b   :  { %v5665_v28 = vadd.f32 %v4764_v60, %v5584_v54  ;;  %v837_v41 = vpop.f32.mrb[9].mxu0 }
 0x24c   :  { %v4765_v26 = vpop.f32.mrb[10].mxu0  ;;  %v5668_v42 = vadd.f32 %v837_v41, %v5584_v54 }
 0x24d   :  { %v840_v8 = vpop.f32.mrb[11].mxu0  ;;  %v962_v62 = vsel %vm85_vm0, %v5665_v28, 0.0  ;;  %v5678_v20 = vadd.f32 %v4765_v26, %v5584_v54 }
 0x24e   :  { %v4780_v17 = vpop.f32.mrb[8].mxu1  ;;  %996 = vadd.xlane.f32.xlu1 %v995_v19  ;;  %963 = vadd.xlane.f32.xlu0 %v962_v62  ;;  %v956_v12 = vsel %vm85_vm0, %v5668_v42, 0.0  ;;  %v5688_v53 = vadd.f32 %v840_v8, %v5584_v54 }
 0x24f   :  { %v5675_v30 = vadd.f32 %v4780_v17, %v5584_v54  ;;  %v901_v43 = vpop.f32.mrb[9].mxu1  ;;  %v965_v47 = vsel %vm85_vm0, %v5678_v20, 0.0 }
 0x250   :  { %v4781_v39 = vpop.f32.mrb[10].mxu1  ;;  %v5681_v56 = vadd.f32 %v901_v43, %v5584_v54  ;;  %v959_v37 = vsel %vm85_vm0, %v5688_v53, 0.0 }
 0x251   :  { %v904_v6 = vpop.f32.mrb[11].mxu1  ;;  %v1010_v29 = vsel %vm85_vm0, %v5675_v30, 0.0  ;;  %v5691_v40 = vadd.f32 %v4781_v39, %v5584_v54 }
 0x252   :  { %1011 = vadd.xlane.f32.xlu1 %v1010_v29  ;;  %957 = vadd.xlane.f32.xlu0 %v956_v12  ;;  %v1004_v33 = vsel %vm85_vm0, %v5681_v56, 0.0  ;;  %v5701_v31 = vadd.f32 %v904_v6, %v5584_v54 }
 0x253   :  { %v1013_v50 = vsel %vm85_vm0, %v5691_v40, 0.0 }
 0x254   :  { %v1007_v9 = vsel %vm85_vm0, %v5701_v31, 0.0 }
 0x256   :  { %1005 = vadd.xlane.f32.xlu1 %v1004_v33  ;;  %966 = vadd.xlane.f32.xlu0 %v965_v47 }
 0x257   :  { %v4768_v44 = vpop.f32.mrb[12].mxu0 }
 0x258   :  { %v5698_v49 = vadd.f32 %v4768_v44, %v5584_v54  ;;  %v853_v55 = vpop.f32.mrb[13].mxu0  ;;  %v4784_v0 = vpop.f32.mrb[12].mxu1 }
 0x259   :  { %v4769_v2 = vpop.f32.mrb[14].mxu0  ;;  %v917_v4 = vpop.f32.mrb[13].mxu1  ;;  %v5717_v57 = vadd.f32 %v4784_v0, %v5584_v54  ;;  %v5728_v5 = vadd.f32 %v853_v55, %v5584_v54 }
 0x25a   :  { %1014 = vadd.xlane.f32.xlu1 %v1013_v50  ;;  %960 = vadd.xlane.f32.xlu0 %v959_v37  ;;  %v5708_v13 = vadd.f32 %v4769_v2, %v5584_v54  ;;  %v856_v36 = vpop.f32.mrb[15].mxu0  ;;  %v5711_v14 = vadd.f32 %v917_v4, %v5584_v54  ;;  %v4785_v21 = vpop.f32.mrb[14].mxu1  ;;  %v974_v7 = vsel %vm85_vm0, %v5698_v49, 0.0 }
 0x25b   :  { %v5714_v22 = vadd.f32 %v856_v36, %v5584_v54  ;;  %v5722_v11 = vadd.f32 %v4785_v21, %v5584_v54  ;;  %v920_v24 = vpop.f32.mrb[15].mxu1  ;;  %v1022_v60 = vsel %vm85_vm0, %v5717_v57, 0.0  ;;  %v968_v41 = vsel %vm85_vm0, %v5728_v5, 0.0 }
 0x25c   :  { %v5725_v45 = vadd.f32 %v920_v24, %v5584_v54  ;;  %v1016_v26 = vsel %vm85_vm0, %v5711_v14, 0.0  ;;  %v977_v19 = vsel %vm85_vm0, %v5708_v13, 0.0 }
 0x25d   :  { %v971_v54 = vsel %vm85_vm0, %v5714_v22, 0.0  ;;  %v1025_v62 = vsel %vm85_vm0, %v5722_v11, 0.0 }
 0x25e   :  { %1008 = vadd.xlane.f32.xlu1 %v1007_v9  ;;  %975 = vadd.xlane.f32.xlu0 %v974_v7  ;;  %v1019_v8 = vsel %vm85_vm0, %v5725_v45, 0.0 }
 0x262   :  { %1023 = vadd.xlane.f32.xlu1 %v1022_v60  ;;  %969 = vadd.xlane.f32.xlu0 %v968_v41 }
 0x266   :  { %1017 = vadd.xlane.f32.xlu1 %v1016_v26  ;;  %972 = vadd.xlane.f32.xlu0 %v971_v54 }
 0x26a   :  { %1020 = vadd.xlane.f32.xlu1 %v1019_v8  ;;  %978 = vadd.xlane.f32.xlu0 %v977_v19 }
 0x26e   :  { %1026 = vadd.xlane.f32.xlu1 %v1025_v62 }
 0x2b4   :  { %v940_v17 = vpop.xlane.xlu0 %939 }
 0x2b5   :  { %v1030_v43 = vmul.f32 0.015625, %v940_v17 }
 0x2b7   :  { %v5747_v39 = vsub.f32 %v5587_v18, %v1030_v43 }
 0x2b8   :  { %v934_v6 = vpop.xlane.xlu0 %933 }
 0x2b9   :  { %v1028_v29 = vmul.f32 0.015625, %v934_v6  ;;  %v1094_v12 = vmul.f32 %v5747_v39, %v5747_v39 }
 0x2ba   :  { %v988_v33 = vpop.xlane.xlu1 %987 }
 0x2bb   :  { %v5752_v47 = vsub.f32 %v5590_v46, %v1028_v29  ;;  %v1130_v44 = vsel %vm85_vm0, %v1094_v12, 0.0  ;;  %v1046_v55 = vmul.f32 0.015625, %v988_v33 }
 0x2bc   :  { %1131 = vadd.xlane.f32.xlu0 %v1130_v44  ;;  %v982_v0 = vpop.xlane.xlu0 %981 }
 0x2bd   :  { %v1044_v50 = vmul.f32 0.015625, %v982_v0  ;;  %v1092_v37 = vmul.f32 %v5752_v47, %v5752_v47  ;;  %v5758_v18 = vsub.f32 %v5597_v48, %v1046_v55 }
 0x2be   :  { %v991_v2 = vpop.xlane.xlu1 %990 }
 0x2bf   :  { %v5761_v4 = vsub.f32 %v5600_v34, %v1044_v50  ;;  %v1124_v36 = vsel %vm85_vm0, %v1092_v37, 0.0  ;;  %v1047_v46 = vmul.f32 0.015625, %v991_v2  ;;  %v1110_v21 = vmul.f32 %v5758_v18, %v5758_v18 }
 0x2c0   :  { %1125 = vadd.xlane.f32.xlu0 %v1124_v36  ;;  %v943_v7 = vpop.xlane.xlu0 %942 }
 0x2c1   :  { %v1031_v24 = vmul.f32 0.015625, %v943_v7  ;;  %v1108_v9 = vmul.f32 %v5761_v4, %v5761_v4  ;;  %v5769_v60 = vsub.f32 %v5603_v32, %v1047_v46  ;;  %v1178_v48 = vsel %vm85_vm0, %v1110_v21, 0.0 }
 0x2c2   :  { %1179 = vadd.xlane.f32.xlu1 %v1178_v48  ;;  %v937_v34 = vpop.xlane.xlu1 %936 }
 0x2c3   :  { %v5773_v41 = vsub.f32 %v5608_v35, %v1031_v24  ;;  %v1172_v26 = vsel %vm85_vm0, %v1108_v9, 0.0  ;;  %v1029_v54 = vmul.f32 0.015625, %v937_v34  ;;  %v1111_v8 = vmul.f32 %v5769_v60, %v5769_v60 }
 0x2c4   :  { %1173 = vadd.xlane.f32.xlu0 %v1172_v26 }
 0x2c5   :  { %v1095_v19 = vmul.f32 %v5773_v41, %v5773_v41  ;;  %v5781_v32 = vsub.f32 %v5613_v52, %v1029_v54  ;;  %v1181_v62 = vsel %vm85_vm0, %v1111_v8, 0.0 }
 0x2c6   :  { %1182 = vadd.xlane.f32.xlu1 %v1181_v62  ;;  %v985_v17 = vpop.xlane.xlu1 %984 }
 0x2c7   :  { %v1133_v35 = vsel %vm85_vm0, %v1095_v19, 0.0  ;;  %v1045_v43 = vmul.f32 0.015625, %v985_v17  ;;  %v1093_v6 = vmul.f32 %v5781_v32, %v5781_v32 }
 0x2c8   :  { %1134 = vadd.xlane.f32.xlu0 %v1133_v35 }
 0x2c9   :  { %v5788_v29 = vsub.f32 %v5620_v23, %v1045_v43  ;;  %v1127_v12 = vsel %vm85_vm0, %v1093_v6, 0.0 }
 0x2ca   :  { %1128 = vadd.xlane.f32.xlu1 %v1127_v12 }
 0x2cb   :  { %v952_v33 = vpop.xlane.xlu0 %951  ;;  %v1109_v44 = vmul.f32 %v5788_v29, %v5788_v29 }
 0x2cc   :  { %v1034_v52 = vmul.f32 0.015625, %v952_v33 }
 0x2cd   :  { %v1175_v0 = vsel %vm85_vm0, %v1109_v44, 0.0 }
 0x2ce   :  { %v5794_v55 = vsub.f32 %v5627_v59, %v1034_v52  ;;  %1176 = vadd.xlane.f32.xlu1 %v1175_v0 }
 0x2cf   :  { %v1000_v50 = vpop.xlane.xlu1 %999  ;;  %v946_v37 = vpop.xlane.xlu0 %945 }
 0x2d0   :  { %v1050_v2 = vmul.f32 0.015625, %v1000_v50  ;;  %v1032_v36 = vmul.f32 0.015625, %v946_v37  ;;  %v1098_v23 = vmul.f32 %v5794_v55, %v5794_v55 }
 0x2d2   :  { %v5800_v46 = vsub.f32 %v5635_v1, %v1050_v2  ;;  %v5803_v21 = vsub.f32 %v5630_v51, %v1032_v36  ;;  %v1142_v7 = vsel %vm85_vm0, %v1098_v23, 0.0 }
 0x2d3   :  { %v994_v59 = vpop.xlane.xlu1 %993  ;;  %1143 = vadd.xlane.f32.xlu0 %v1142_v7  ;;  %v955_v24 = vpop.xlane.xlu0 %954 }
 0x2d4   :  { %v1048_v9 = vmul.f32 0.015625, %v994_v59  ;;  %v1035_v48 = vmul.f32 0.015625, %v955_v24  ;;  %v1114_v34 = vmul.f32 %v5800_v46, %v5800_v46  ;;  %v1096_v26 = vmul.f32 %v5803_v21, %v5803_v21 }
 0x2d6   :  { %v5811_v54 = vsub.f32 %v5641_v10, %v1048_v9  ;;  %v5814_v1 = vsub.f32 %v5638_v61, %v1035_v48  ;;  %v1190_v51 = vsel %vm85_vm0, %v1114_v34, 0.0  ;;  %v1136_v8 = vsel %vm85_vm0, %v1096_v26, 0.0 }
 0x2d7   :  { %1191 = vadd.xlane.f32.xlu1 %v1190_v51  ;;  %v1003_v19 = vpop.xlane.xlu1 %1002  ;;  %1137 = vadd.xlane.f32.xlu0 %v1136_v8  ;;  %v949_v62 = vpop.xlane.xlu0 %948 }
 0x2d8   :  { %v1051_v17 = vmul.f32 0.015625, %v1003_v19  ;;  %v1033_v35 = vmul.f32 0.015625, %v949_v62  ;;  %v1112_v43 = vmul.f32 %v5811_v54, %v5811_v54  ;;  %v1099_v10 = vmul.f32 %v5814_v1, %v5814_v1 }
 0x2da   :  { %v5823_v6 = vsub.f32 %v5651_v63, %v1051_v17  ;;  %v5826_v61 = vsub.f32 %v5648_v27, %v1033_v35  ;;  %v1184_v12 = vsel %vm85_vm0, %v1112_v43, 0.0  ;;  %v1145_v33 = vsel %vm85_vm0, %v1099_v10, 0.0 }
 0x2db   :  { %1185 = vadd.xlane.f32.xlu1 %v1184_v12  ;;  %v997_v52 = vpop.xlane.xlu1 %996  ;;  %1146 = vadd.xlane.f32.xlu0 %v1145_v33  ;;  %v964_v44 = vpop.xlane.xlu0 %963 }
 0x2dc   :  { %v1049_v0 = vmul.f32 0.015625, %v997_v52  ;;  %v1038_v50 = vmul.f32 0.015625, %v964_v44  ;;  %v1115_v37 = vmul.f32 %v5823_v6, %v5823_v6  ;;  %v1097_v63 = vmul.f32 %v5826_v61, %v5826_v61 }
 0x2de   :  { %v5835_v2 = vsub.f32 %v5658_v38, %v1049_v0  ;;  %v5838_v27 = vsub.f32 %v5665_v28, %v1038_v50  ;;  %v1193_v36 = vsel %vm85_vm0, %v1115_v37, 0.0  ;;  %v1139_v23 = vsel %vm85_vm0, %v1097_v63, 0.0 }
 0x2df   :  { %1194 = vadd.xlane.f32.xlu1 %v1193_v36  ;;  %v1012_v7 = vpop.xlane.xlu1 %1011  ;;  %1140 = vadd.xlane.f32.xlu0 %v1139_v23  ;;  %v958_v59 = vpop.xlane.xlu0 %957 }
 0x2e0   :  { %v1054_v24 = vmul.f32 0.015625, %v1012_v7  ;;  %v1036_v9 = vmul.f32 0.015625, %v958_v59  ;;  %v1113_v48 = vmul.f32 %v5835_v2, %v5835_v2  ;;  %v1102_v38 = vmul.f32 %v5838_v27, %v5838_v27 }
 0x2e2   :  { %v5847_v34 = vsub.f32 %v5675_v30, %v1054_v24  ;;  %v5850_v28 = vsub.f32 %v5668_v42, %v1036_v9  ;;  %v1187_v26 = vsel %vm85_vm0, %v1113_v48, 0.0  ;;  %v1154_v51 = vsel %vm85_vm0, %v1102_v38, 0.0 }
 0x2e3   :  { %1188 = vadd.xlane.f32.xlu1 %v1187_v26  ;;  %v1006_v8 = vpop.xlane.xlu1 %1005  ;;  %1155 = vadd.xlane.f32.xlu0 %v1154_v51  ;;  %v967_v19 = vpop.xlane.xlu0 %966 }
 0x2e4   :  { %v1052_v62 = vmul.f32 0.015625, %v1006_v8  ;;  %v1039_v17 = vmul.f32 0.015625, %v967_v19  ;;  %v1118_v35 = vmul.f32 %v5847_v34, %v5847_v34  ;;  %v1100_v30 = vmul.f32 %v5850_v28, %v5850_v28 }
 0x2e6   :  { %v5859_v43 = vsub.f32 %v5681_v56, %v1052_v62  ;;  %v5862_v42 = vsub.f32 %v5678_v20, %v1039_v17  ;;  %v1202_v10 = vsel %vm85_vm0, %v1118_v35, 0.0  ;;  %v1148_v12 = vsel %vm85_vm0, %v1100_v30, 0.0 }
 0x2e7   :  { %1203 = vadd.xlane.f32.xlu1 %v1202_v10  ;;  %v1015_v33 = vpop.xlane.xlu1 %1014  ;;  %1149 = vadd.xlane.f32.xlu0 %v1148_v12  ;;  %v961_v52 = vpop.xlane.xlu0 %960 }
 0x2e8   :  { %v1055_v44 = vmul.f32 0.015625, %v1015_v33  ;;  %v1037_v0 = vmul.f32 0.015625, %v961_v52  ;;  %v1116_v50 = vmul.f32 %v5859_v43, %v5859_v43  ;;  %v1103_v56 = vmul.f32 %v5862_v42, %v5862_v42 }
 0x2ea   :  { %v5871_v37 = vsub.f32 %v5691_v40, %v1055_v44  ;;  %v5874_v20 = vsub.f32 %v5688_v53, %v1037_v0  ;;  %v1196_v63 = vsel %vm85_vm0, %v1116_v50, 0.0  ;;  %v1157_v36 = vsel %vm85_vm0, %v1103_v56, 0.0 }
 0x2eb   :  { %1197 = vadd.xlane.f32.xlu1 %v1196_v63  ;;  %v1009_v23 = vpop.xlane.xlu1 %1008  ;;  %1158 = vadd.xlane.f32.xlu0 %v1157_v36  ;;  %v976_v7 = vpop.xlane.xlu0 %975 }
 0x2ec   :  { %v1053_v59 = vmul.f32 0.015625, %v1009_v23  ;;  %v1042_v24 = vmul.f32 0.015625, %v976_v7  ;;  %v1119_v9 = vmul.f32 %v5871_v37, %v5871_v37  ;;  %v1101_v40 = vmul.f32 %v5874_v20, %v5874_v20 }
 0x2ee   :  { %v5883_v48 = vsub.f32 %v5701_v31, %v1053_v59  ;;  %v5886_v53 = vsub.f32 %v5698_v49, %v1042_v24  ;;  %v1205_v38 = vsel %vm85_vm0, %v1119_v9, 0.0  ;;  %v1151_v26 = vsel %vm85_vm0, %v1101_v40, 0.0 }
 0x2ef   :  { %1206 = vadd.xlane.f32.xlu1 %v1205_v38  ;;  %v1024_v51 = vpop.xlane.xlu1 %1023  ;;  %1152 = vadd.xlane.f32.xlu0 %v1151_v26  ;;  %v970_v8 = vpop.xlane.xlu0 %969 }
 0x2f0   :  { %v1058_v19 = vmul.f32 0.015625, %v1024_v51  ;;  %v1040_v62 = vmul.f32 0.015625, %v970_v8  ;;  %v1117_v17 = vmul.f32 %v5883_v48, %v5883_v48  ;;  %v1106_v31 = vmul.f32 %v5886_v53, %v5886_v53 }
 0x2f2   :  { %v5895_v35 = vsub.f32 %v5717_v57, %v1058_v19  ;;  %v5898_v49 = vsub.f32 %v5728_v5, %v1040_v62  ;;  %v1199_v30 = vsel %vm85_vm0, %v1117_v17, 0.0  ;;  %v1166_v10 = vsel %vm85_vm0, %v1106_v31, 0.0 }
 0x2f3   :  { %1200 = vadd.xlane.f32.xlu1 %v1199_v30  ;;  %v1018_v12 = vpop.xlane.xlu1 %1017  ;;  %1167 = vadd.xlane.f32.xlu0 %v1166_v10  ;;  %v973_v33 = vpop.xlane.xlu0 %972 }
 0x2f4   :  { %v1056_v52 = vmul.f32 0.015625, %v1018_v12  ;;  %v1041_v44 = vmul.f32 0.015625, %v973_v33  ;;  %v1122_v0 = vmul.f32 %v5895_v35, %v5895_v35  ;;  %v1104_v57 = vmul.f32 %v5898_v49, %v5898_v49 }
 0x2f6   :  { %v5907_v50 = vsub.f32 %v5711_v14, %v1056_v52  ;;  %v5910_v5 = vsub.f32 %v5714_v22, %v1041_v44  ;;  %v1214_v56 = vsel %vm85_vm0, %v1122_v0, 0.0  ;;  %v1160_v63 = vsel %vm85_vm0, %v1104_v57, 0.0 }
 0x2f7   :  { %1215 = vadd.xlane.f32.xlu1 %v1214_v56  ;;  %v1021_v36 = vpop.xlane.xlu1 %1020  ;;  %1161 = vadd.xlane.f32.xlu0 %v1160_v63  ;;  %v979_v23 = vpop.xlane.xlu0 %978 }
 0x2f8   :  { %v1057_v7 = vmul.f32 0.015625, %v1021_v36  ;;  %v1043_v59 = vmul.f32 0.015625, %v979_v23  ;;  %v1120_v24 = vmul.f32 %v5907_v50, %v5907_v50  ;;  %v1105_v14 = vmul.f32 %v5910_v5, %v5910_v5 }
 0x2f9   :  { %v5939_v36 = vsub.s32 3, %v5429_v58 }
 0x2fa   :  { %v5919_v9 = vsub.f32 %v5725_v45, %v1057_v7  ;;  %v5922_v22 = vsub.f32 %v5708_v13, %v1043_v59  ;;  %v1208_v40 = vsel %vm85_vm0, %v1120_v24, 0.0  ;;  %v1163_v38 = vsel %vm85_vm0, %v1105_v14, 0.0 }
 0x2fb   :  { %1209 = vadd.xlane.f32.xlu1 %v1208_v40  ;;  %v1027_v26 = vpop.xlane.xlu1 %1026  ;;  %1164 = vadd.xlane.f32.xlu0 %v1163_v38  ;;  %v5942_v24 = vsub.s32 4, %v5429_v58  ;;  %v4931_v38 = vld [vmem:[%s7019_s1] sm:$0x3f] }
 0x2fc   :  { %v1059_v51 = vmul.f32 0.015625, %v1027_v26  ;;  %v1121_v8 = vmul.f32 %v5919_v9, %v5919_v9  ;;  %v1107_v19 = vmul.f32 %v5922_v22, %v5922_v22  ;;  %v5948_v26 = vrot.slane %v4931_v38, %v5939_v36 }
 0x2fe   :  { %v5931_v45 = vsub.f32 %v5722_v11, %v1059_v51  ;;  %v1211_v13 = vsel %vm85_vm0, %v1121_v8, 0.0  ;;  %v1169_v62 = vsel %vm85_vm0, %v1107_v19, 0.0 }
 0x2ff   :  { %1212 = vadd.xlane.f32.xlu1 %v1211_v13  ;;  %1170 = vadd.xlane.f32.xlu0 %v1169_v62 }
 0x300   :  { %v1123_v17 = vmul.f32 %v5931_v45, %v5931_v45 }
 0x302   :  { %v1217_v31 = vsel %vm85_vm0, %v1123_v17, 0.0  ;;  %v5952_v17 = vrot.slane %v4931_v38, %v5942_v24 }
 0x303   :  { %1218 = vadd.xlane.f32.xlu1 %v1217_v31 }
 0x349   :  { %v1132_v30 = vpop.xlane.xlu0 %1131 }
 0x34a   :  { %v1222_v10 = vmul.f32 0.015625, %v1132_v30  ;;  %v5955_v30 = vsub.s32 5, %v5429_v58 }
 0x34c   :  { %v1254_v12 = vadd.f32 1e-05, %v1222_v10 }
 0x34d   :  { %v1126_v33 = vpop.xlane.xlu0 %1125 }
 0x34e   :  { %4867 = vrsqrt.f32 %v1254_v12  ;;  %v1220_v52 = vmul.f32 0.015625, %v1126_v33 }
 0x34f   :  { %v1180_v11 = vpop.xlane.xlu1 %1179 }
 0x350   :  { %v1252_v44 = vadd.f32 1e-05, %v1220_v52  ;;  %v1238_v0 = vmul.f32 0.015625, %v1180_v11 }
 0x351   :  { %v1174_v57 = vpop.xlane.xlu0 %1173 }
 0x352   :  { %4869 = vrsqrt.f32 %v1252_v44  ;;  %v1236_v56 = vmul.f32 0.015625, %v1174_v57  ;;  %v1270_v63 = vadd.f32 1e-05, %v1238_v0  ;;  %v5961_v0 = vrot.slane %v4931_v38, %v5955_v30 }
 0x353   :  { %v1183_v23 = vpop.xlane.xlu1 %1182 }
 0x354   :  { %v1268_v7 = vadd.f32 1e-05, %v1236_v56  ;;  %4871 = vrsqrt.f32 %v1270_v63  ;;  %v1239_v14 = vmul.f32 0.015625, %v1183_v23 }
 0x355   :  { %v1135_v59 = vpop.xlane.xlu0 %1134 }
 0x356   :  { %4873 = vrsqrt.f32 %v1268_v7  ;;  %v1223_v40 = vmul.f32 0.015625, %v1135_v59  ;;  %v1271_v31 = vadd.f32 1e-05, %v1239_v14 }
 0x357   :  { %v1129_v8 = vpop.xlane.xlu1 %1128 }
 0x358   :  { %v4868_v51 = vpop.eup %4867  ;;  %v1255_v19 = vadd.f32 1e-05, %v1223_v40  ;;  %v1221_v62 = vmul.f32 0.015625, %v1129_v8 }
 0x359   :  { %v1318_v13 = vmul.f32 %v4868_v51, %v5747_v39 }
 0x35a   :  { %4875 = vrsqrt.f32 %v1255_v19  ;;  %v1253_v10 = vadd.f32 1e-05, %v1221_v62 }
 0x35b   :  { %v1354_v12 = vmul.f32 %v5948_v26, %v1318_v13  ;;  %v1177_v52 = vpop.xlane.xlu1 %1176 }
 0x35c   :  { %v4870_v33 = vpop.eup %4869  ;;  %4877 = vrsqrt.f32 %v1253_v10  ;;  %v1237_v44 = vmul.f32 0.015625, %v1177_v52 }
 0x35d   :  { %v1316_v11 = vmul.f32 %v4870_v33, %v5752_v47  ;;  %v1390_v39 = vadd.f32 %v5952_v17, %v1354_v12  ;;  %4879 = vrsqrt.f32 %v1271_v31 }
 0x35e   :  { %v4872_v57 = vpop.eup %4871  ;;  %v1269_v56 = vadd.f32 1e-05, %v1237_v44 }
 0x35f   :  { %vm1422_vm3 = vcmp.gt.f32.partialorder %v1390_v39, 0.0  ;;  %v1454_v63 = vmul.f32 0.01, %v1390_v39  ;;  %v1352_v23 = vmul.f32 %v5948_v26, %v1316_v11  ;;  %v1334_v14 = vmul.f32 %v4872_v57, %v5758_v18 }
 0x360   :  { %v4874_v7 = vpop.eup %4873  ;;  %v1144_v59 = vpop.xlane.xlu0 %1143  ;;  %4881 = vrsqrt.f32 %v1269_v56 }
 0x361   :  { %v1332_v47 = vmul.f32 %v4874_v7, %v5761_v4  ;;  %v1226_v40 = vmul.f32 0.015625, %v1144_v59  ;;  %v1486_v51 = vsel %vm1422_vm3, %v1390_v39, %v1454_v63  ;;  %v1370_v38 = vmul.f32 %v5948_v26, %v1334_v14 }
 0x362   :  { %v1522_v8 = vmul.f32 %v5961_v0, %v1486_v51  ;;  %v1388_v19 = vadd.f32 %v5952_v17, %v1352_v23 }
 0x363   :  { %v1258_v13 = vadd.f32 1e-05, %v1226_v40  ;;  %v1368_v62 = vmul.f32 %v5948_v26, %v1332_v47  ;;  %v1406_v18 = vadd.f32 %v5952_v17, %v1370_v38 }
 0x364   :  { %v4876_v31 = vpop.eup %4875  ;;  %v1192_v10 = vpop.xlane.xlu1 %1191  ;;  %v1558_v33 = vsel %vm85_vm0, %v1522_v8, 0.0  ;;  %vm1420_vm4 = vcmp.gt.f32.partialorder %v1388_v19, 0.0  ;;  %v1452_v4 = vmul.f32 0.01, %v1388_v19 }
 0x365   :  { %v1138_v12 = vpop.xlane.xlu0 %1137  ;;  %v1319_v52 = vmul.f32 %v4876_v31, %v5773_v41  ;;  %4883 = vrsqrt.f32 %v1258_v13  ;;  %v1242_v11 = vmul.f32 0.015625, %v1192_v10  ;;  %1559 = vadd.xlane.f32.xlu0 %v1558_v33  ;;  %vm1438_vm5 = vcmp.gt.f32.partialorder %v1406_v18, 0.0 }
 0x366   :  { %v1224_v44 = vmul.f32 0.015625, %v1138_v12  ;;  %v1470_v39 = vmul.f32 0.01, %v1406_v18  ;;  %v1484_v57 = vsel %vm1420_vm4, %v1388_v19, %v1452_v4  ;;  %v1404_v56 = vadd.f32 %v5952_v17, %v1368_v62  ;;  %v4878_v63 = vpop.eup %4877 }
 0x367   :  { %v1274_v23 = vadd.f32 1e-05, %v1242_v11  ;;  %v1355_v59 = vmul.f32 %v5948_v26, %v1319_v52  ;;  %v4880_v14 = vpop.eup %4879  ;;  %v1520_v41 = vmul.f32 %v5961_v0, %v1484_v57  ;;  %v1317_v62 = vmul.f32 %v4878_v63, %v5781_v32 }
 0x368   :  { %v1256_v7 = vadd.f32 1e-05, %v1224_v44  ;;  %v1186_v47 = vpop.xlane.xlu1 %1185  ;;  %v1502_v51 = vsel %vm1438_vm5, %v1406_v18, %v1470_v39  ;;  %vm1436_vm6 = vcmp.gt.f32.partialorder %v1404_v56, 0.0  ;;  %v1468_v8 = vmul.f32 0.01, %v1404_v56 }
 0x369   :  { %v1147_v40 = vpop.xlane.xlu0 %1146  ;;  %4885 = vrsqrt.f32 %v1274_v23  ;;  %v1240_v38 = vmul.f32 0.015625, %v1186_v47  ;;  %v1538_v19 = vmul.f32 %v5961_v0, %v1502_v51  ;;  %v1391_v10 = vadd.f32 %v5952_v17, %v1355_v59 }
 0x36a   :  { %v1227_v13 = vmul.f32 0.015625, %v1147_v40  ;;  %4887 = vrsqrt.f32 %v1256_v7  ;;  %v1500_v31 = vsel %vm1436_vm6, %v1404_v56, %v1468_v8  ;;  %v4882_v12 = vpop.eup %4881  ;;  %v1335_v32 = vmul.f32 %v4880_v14, %v5769_v60 }
 0x36b   :  { %v1272_v33 = vadd.f32 1e-05, %v1240_v38  ;;  %v1606_v18 = vsel %vm85_vm0, %v1538_v19, 0.0  ;;  %v1536_v52 = vmul.f32 %v5961_v0, %v1500_v31  ;;  %v1333_v11 = vmul.f32 %v4882_v12, %v5788_v29 }
 0x36c   :  { %v1259_v4 = vadd.f32 1e-05, %v1227_v13  ;;  %v1195_v44 = vpop.xlane.xlu1 %1194  ;;  %1607 = vadd.xlane.f32.xlu0 %v1606_v18  ;;  %vm1423_vm7 = vcmp.gt.f32.partialorder %v1391_v10, 0.0  ;;  %v1455_v57 = vmul.f32 0.01, %v1391_v10  ;;  %v1552_v23 = vsel %vm85_vm0, %v1520_v41, 0.0 }
 0x36d   :  { %v1141_v39 = vpop.xlane.xlu0 %1140  ;;  %4889 = vrsqrt.f32 %v1272_v33  ;;  %v1243_v56 = vmul.f32 0.015625, %v1195_v44  ;;  %v1371_v59 = vmul.f32 %v5948_v26, %v1335_v32  ;;  %v1353_v47 = vmul.f32 %v5948_v26, %v1317_v62 }
 0x36e   :  { %v1225_v63 = vmul.f32 0.015625, %v1141_v39  ;;  %4891 = vrsqrt.f32 %v1259_v4  ;;  %v1487_v7 = vsel %vm1423_vm7, %v1391_v10, %v1455_v57  ;;  %v1369_v38 = vmul.f32 %v5948_v26, %v1333_v11 }
 0x36f   :  { %v4884_v40 = vpop.eup %4883  ;;  %v1275_v29 = vadd.f32 1e-05, %v1243_v56  ;;  %v1523_v8 = vmul.f32 %v5961_v0, %v1487_v7  ;;  %v1600_v41 = vsel %vm85_vm0, %v1536_v52, 0.0  ;;  %v1407_v19 = vadd.f32 %v5952_v17, %v1371_v59 }
 0x370   :  { %v1257_v51 = vadd.f32 1e-05, %v1225_v63  ;;  %v1322_v60 = vmul.f32 %v4884_v40, %v5794_v55  ;;  %v1189_v14 = vpop.xlane.xlu1 %1188  ;;  %1553 = vadd.xlane.f32.xlu0 %v1552_v23  ;;  %v1389_v31 = vadd.f32 %v5952_v17, %v1353_v47  ;;  %v5995_v52 = vadd.f32 %v5952_v17, %v1369_v38 }
 0x371   :  { %v1156_v13 = vpop.xlane.xlu0 %1155  ;;  %4893 = vrsqrt.f32 %v1275_v29  ;;  %v1241_v62 = vmul.f32 0.015625, %v1189_v14  ;;  %v1561_v12 = vsel %vm85_vm0, %v1523_v8, 0.0  ;;  %vm1439_vm8 = vcmp.gt.f32.partialorder %v1407_v19, 0.0 }
 0x372   :  { %v1230_v10 = vmul.f32 0.015625, %v1156_v13  ;;  %4895 = vrsqrt.f32 %v1257_v51  ;;  %1562 = vadd.xlane.f32.xlu1 %v1561_v12  ;;  %v1471_v33 = vmul.f32 0.01, %v1407_v19  ;;  %v1358_v55 = vmul.f32 %v5948_v26, %v1322_v60 }
 0x373   :  { %v4886_v4 = vpop.eup %4885  ;;  %v1273_v18 = vadd.f32 1e-05, %v1241_v62  ;;  %vm1421_vm9 = vcmp.gt.f32.partialorder %v1389_v31, 0.0  ;;  %v1453_v23 = vmul.f32 0.01, %v1389_v31  ;;  %vm1437_vm11 = vcmp.gt.f32.partialorder %v5995_v52, 0.0 }
 0x374   :  { %v1262_v11 = vadd.f32 1e-05, %v1230_v10  ;;  %v4888_v44 = vpop.eup %4887  ;;  %v1338_v39 = vmul.f32 %v4886_v4, %v5800_v46  ;;  %v1204_v57 = vpop.xlane.xlu1 %1203  ;;  %1601 = vadd.xlane.f32.xlu0 %v1600_v41  ;;  %v1503_v56 = vsel %vm1439_vm8, %v1407_v19, %v1471_v33  ;;  %v1394_v63 = vadd.f32 %v5952_v17, %v1358_v55 }
 0x375   :  { %v1150_v32 = vpop.xlane.xlu0 %1149  ;;  %v1320_v7 = vmul.f32 %v4888_v44, %v5803_v21  ;;  %4897 = vrsqrt.f32 %v1273_v18  ;;  %v1246_v59 = vmul.f32 0.015625, %v1204_v57  ;;  %v1539_v40 = vmul.f32 %v5961_v0, %v1503_v56 }
 0x376   :  { %v1228_v47 = vmul.f32 0.015625, %v1150_v32  ;;  %4899 = vrsqrt.f32 %v1262_v11  ;;  %vm1426_vm10 = vcmp.gt.f32.partialorder %v1394_v63, 0.0  ;;  %v1458_v29 = vmul.f32 0.01, %v1394_v63 }
 0x377   :  { %v4890_v51 = vpop.eup %4889  ;;  %v1278_v8 = vadd.f32 1e-05, %v1246_v59  ;;  %v1485_v38 = vsel %vm1421_vm9, %v1389_v31, %v1453_v23  ;;  %v1374_v60 = vmul.f32 %v5948_v26, %v1338_v39  ;;  %v1609_v19 = vsel %vm85_vm0, %v1539_v40, 0.0 }
 0x378   :  { %v1260_v46 = vadd.f32 1e-05, %v1228_v47  ;;  %v4892_v14 = vpop.eup %4891  ;;  %v1336_v13 = vmul.f32 %v4890_v51, %v5811_v54  ;;  %v1198_v41 = vpop.xlane.xlu1 %1197  ;;  %v1490_v62 = vsel %vm1426_vm10, %v1394_v63, %v1458_v29  ;;  %v1521_v10 = vmul.f32 %v5961_v0, %v1485_v38  ;;  %1610 = vadd.xlane.f32.xlu1 %v1609_v19 }
 0x379   :  { %v1159_v21 = vpop.xlane.xlu0 %1158  ;;  %v1323_v12 = vmul.f32 %v4892_v14, %v5814_v1  ;;  %4901 = vrsqrt.f32 %v1278_v8  ;;  %v1244_v33 = vmul.f32 0.015625, %v1198_v41  ;;  %v1526_v31 = vmul.f32 %v5961_v0, %v1490_v62 }
 0x37a   :  { %v1231_v55 = vmul.f32 0.015625, %v1159_v21  ;;  %4903 = vrsqrt.f32 %v1260_v46  ;;  %v1555_v4 = vsel %vm85_vm0, %v1521_v10, 0.0  ;;  %v1410_v54 = vadd.f32 %v5952_v17, %v1374_v60 }
 0x37b   :  { %v4894_v18 = vpop.eup %4893  ;;  %v1276_v11 = vadd.f32 1e-05, %v1244_v33  ;;  %v1356_v39 = vmul.f32 %v5948_v26, %v1320_v7  ;;  %v1570_v56 = vsel %vm85_vm0, %v1526_v31, 0.0  ;;  %v1469_v7 = vmul.f32 0.01, %v5995_v52 }
 0x37c   :  { %v1263_v44 = vadd.f32 1e-05, %v1231_v55  ;;  %v4896_v57 = vpop.eup %4895  ;;  %v1339_v1 = vmul.f32 %v4894_v18, %v5823_v6  ;;  %v1207_v32 = vpop.xlane.xlu1 %1206  ;;  %vm1442_vm12 = vcmp.gt.f32.partialorder %v1410_v54, 0.0  ;;  %v1474_v23 = vmul.f32 0.01, %v1410_v54  ;;  %1571 = vadd.xlane.f32.xlu0 %v1570_v56  ;;  %1556 = vadd.xlane.f32.xlu1 %v1555_v4 }
 0x37d   :  { %v1153_v63 = vpop.xlane.xlu0 %1152  ;;  %v6015_v59 = vmul.f32 %v4896_v57, %v5826_v61  ;;  %4905 = vrsqrt.f32 %v1276_v11  ;;  %v1247_v47 = vmul.f32 0.015625, %v1207_v32  ;;  %v1392_v6 = vadd.f32 %v5952_v17, %v1356_v39 }
 0x37e   :  { %v1229_v40 = vmul.f32 0.015625, %v1153_v63  ;;  %4907 = vrsqrt.f32 %v1263_v44  ;;  %v1506_v29 = vsel %vm1442_vm12, %v1410_v54, %v1474_v23  ;;  %v1372_v60 = vmul.f32 %v5948_v26, %v1336_v13 }
 0x37f   :  { %v4898_v51 = vpop.eup %4897  ;;  %v1279_v8 = vadd.f32 1e-05, %v1247_v47  ;;  %v1542_v38 = vmul.f32 %v5961_v0, %v1506_v29  ;;  %v1501_v19 = vsel %vm1437_vm11, %v5995_v52, %v1469_v7  ;;  %vm1424_vm13 = vcmp.gt.f32.partialorder %v1392_v6, 0.0 }
 0x380   :  { %v1261_v46 = vadd.f32 1e-05, %v1229_v40  ;;  %v4900_v61 = vpop.eup %4899  ;;  %v6022_v14 = vmul.f32 %v4898_v51, %v5835_v2  ;;  %v1201_v41 = vpop.xlane.xlu1 %1200  ;;  %v1456_v62 = vmul.f32 0.01, %v1392_v6  ;;  %v1537_v2 = vmul.f32 %v5961_v0, %v1501_v19 }
 0x381   :  { %v1168_v21 = vpop.xlane.xlu0 %1167  ;;  %v1326_v10 = vmul.f32 %v4900_v61, %v5838_v27  ;;  %4909 = vrsqrt.f32 %v1279_v8  ;;  %v1245_v33 = vmul.f32 0.015625, %v1201_v41  ;;  %v1618_v55 = vsel %vm85_vm0, %v1542_v38, 0.0 }
 0x382   :  { %4911 = vrsqrt.f32 %v1261_v46  ;;  %1619 = vadd.xlane.f32.xlu0 %v1618_v55  ;;  %v1234_v13 = vmul.f32 0.015625, %v1168_v21  ;;  %v1488_v31 = vsel %vm1424_vm13, %v1392_v6, %v1456_v62  ;;  %v1408_v52 = vadd.f32 %v5952_v17, %v1372_v60 }
 0x383   :  { %v4902_v4 = vpop.eup %4901  ;;  %v1277_v54 = vadd.f32 1e-05, %v1245_v33  ;;  %v1524_v18 = vmul.f32 %v5961_v0, %v1488_v31  ;;  %v1359_v11 = vmul.f32 %v5948_v26, %v1323_v12  ;;  %v1603_v32 = vsel %vm85_vm0, %v1537_v2, 0.0 }
 0x384   :  { %v4904_v44 = vpop.eup %4903  ;;  %v6034_v27 = vmul.f32 %v4902_v4, %v5847_v34  ;;  %v1266_v39 = vadd.f32 1e-05, %v1234_v13  ;;  %v1216_v57 = vpop.xlane.xlu1 %1215  ;;  %v1375_v63 = vmul.f32 %v5948_v26, %v1339_v1  ;;  %1604 = vadd.xlane.f32.xlu1 %v1603_v32  ;;  %vm1440_vm14 = vcmp.gt.f32.partialorder %v1408_v52, 0.0 }
 0x385   :  { %v1162_v56 = vpop.xlane.xlu0 %1161  ;;  %v6039_v23 = vmul.f32 %v4904_v44, %v5850_v28  ;;  %4913 = vrsqrt.f32 %v1277_v54  ;;  %v1250_v47 = vmul.f32 0.015625, %v1216_v57  ;;  %v1564_v40 = vsel %vm85_vm0, %v1524_v18, 0.0 }
 0x386   :  { %4915 = vrsqrt.f32 %v1266_v39  ;;  %1565 = vadd.xlane.f32.xlu0 %v1564_v40  ;;  %v1232_v12 = vmul.f32 0.015625, %v1162_v56  ;;  %v1472_v34 = vmul.f32 0.01, %v1408_v52  ;;  %v1395_v6 = vadd.f32 %v5952_v17, %v1359_v11 }
 0x387   :  { %v4906_v29 = vpop.eup %4905  ;;  %v1282_v7 = vadd.f32 1e-05, %v1250_v47  ;;  %v1411_v51 = vadd.f32 %v5952_v17, %v1375_v63  ;;  %v1362_v1 = vmul.f32 %v5948_v26, %v1326_v10  ;;  %v1357_v41 = vmul.f32 %v5948_v26, %v6015_v59 }
 0x388   :  { %v4908_v28 = vpop.eup %4907  ;;  %v6046_v8 = vmul.f32 %v4906_v29, %v5859_v43  ;;  %v1264_v46 = vadd.f32 1e-05, %v1232_v12  ;;  %v1210_v38 = vpop.xlane.xlu1 %1209  ;;  %v1504_v60 = vsel %vm1440_vm14, %v1408_v52, %v1472_v34  ;;  %vm1427_vm15 = vcmp.gt.f32.partialorder %v1395_v6, 0.0 }
 0x389   :  { %v1165_v61 = vpop.xlane.xlu0 %1164  ;;  %v6051_v21 = vmul.f32 %v4908_v28, %v5862_v42  ;;  %4917 = vrsqrt.f32 %v1282_v7  ;;  %v1248_v19 = vmul.f32 0.015625, %v1210_v38  ;;  %v1540_v62 = vmul.f32 %v5961_v0, %v1504_v60 }
 0x38a   :  { %4919 = vrsqrt.f32 %v1264_v46  ;;  %v1459_v10 = vmul.f32 0.01, %v1395_v6  ;;  %v1233_v33 = vmul.f32 0.015625, %v1165_v61  ;;  %vm1443_vm1 = vcmp.gt.f32.partialorder %v1411_v51, 0.0 }
 0x38b   :  { %v4910_v43 = vpop.eup %4909  ;;  %v1280_v55 = vadd.f32 1e-05, %v1248_v19  ;;  %v1612_v13 = vsel %vm85_vm0, %v1540_v62, 0.0  ;;  %v1475_v2 = vmul.f32 0.01, %v1411_v51  ;;  %v1398_v18 = vadd.f32 %v5952_v17, %v1362_v1 }
 0x38c   :  { %v4912_v31 = vpop.eup %4911  ;;  %v1343_v59 = vmul.f32 %v4910_v43, %v5871_v37  ;;  %1613 = vadd.xlane.f32.xlu0 %v1612_v13  ;;  %v1491_v42 = vsel %vm1427_vm15, %v1395_v6, %v1459_v10  ;;  %v1265_v4 = vadd.f32 1e-05, %v1233_v33  ;;  %v1213_v54 = vpop.xlane.xlu1 %1212  ;;  %v1393_v7 = vadd.f32 %v5952_v17, %v1357_v41 }
 0x38d   :  { %v1171_v52 = vpop.xlane.xlu0 %1170  ;;  %v6058_v11 = vmul.f32 %v4912_v31, %v5874_v20  ;;  %4921 = vrsqrt.f32 %v1280_v55  ;;  %v1527_v44 = vmul.f32 %v5961_v0, %v1491_v42  ;;  %v1249_v39 = vmul.f32 0.015625, %v1213_v54 }
 0x38e   :  { %4923 = vrsqrt.f32 %v1265_v4  ;;  %v1507_v57 = vsel %vm1443_vm1, %v1411_v51, %v1475_v2  ;;  %vm1430_vm2 = vcmp.gt.f32.partialorder %v1398_v18, 0.0  ;;  %v1462_v32 = vmul.f32 0.01, %v1398_v18 }
 0x38f   :  { %v4914_v56 = vpop.eup %4913  ;;  %v1573_v37 = vsel %vm85_vm0, %v1527_v44, 0.0  ;;  %v1281_v63 = vadd.f32 1e-05, %v1249_v39  ;;  %v1543_v47 = vmul.f32 %v5961_v0, %v1507_v57  ;;  %v1235_v40 = vmul.f32 0.015625, %v1171_v52 }
 0x390   :  { %v4916_v12 = vpop.eup %4915  ;;  %v6064_v34 = vmul.f32 %v4914_v56, %v5883_v48  ;;  %1574 = vadd.xlane.f32.xlu1 %v1573_v37  ;;  %v1494_v20 = vsel %vm1430_vm2, %v1398_v18, %v1462_v32  ;;  %v1219_v29 = vpop.xlane.xlu1 %1218  ;;  %v1378_v6 = vmul.f32 %v5948_v26, %v6034_v27  ;;  %vm1425_vm3 = vcmp.gt.f32.partialorder %v1393_v7, 0.0 }
 0x391   :  { %v6070_v51 = vmul.f32 %v4916_v12, %v5886_v53  ;;  %4925 = vrsqrt.f32 %v1281_v63  ;;  %v1621_v1 = vsel %vm85_vm0, %v1543_v47, 0.0  ;;  %v1530_v28 = vmul.f32 %v5961_v0, %v1494_v20 }
 0x392   :  { %v1267_v46 = vadd.f32 1e-05, %v1235_v40  ;;  %v1251_v38 = vmul.f32 0.015625, %v1219_v29  ;;  %v1457_v48 = vmul.f32 0.01, %v1393_v7  ;;  %v1414_v41 = vadd.f32 %v5952_v17, %v1378_v6 }
 0x393   :  { %v4918_v60 = vpop.eup %4917  ;;  %v1582_v61 = vsel %vm85_vm0, %v1530_v28, 0.0  ;;  %v1373_v27 = vmul.f32 %v5948_v26, %v6022_v14  ;;  %v1360_v53 = vmul.f32 %v5948_v26, %v6039_v23  ;;  %v1363_v4 = vmul.f32 %v5948_v26, %v6051_v21 }
 0x394   :  { %v4920_v19 = vpop.eup %4919  ;;  %v6081_v62 = vmul.f32 %v4918_v60, %v5895_v35  ;;  %1622 = vadd.xlane.f32.xlu1 %v1621_v1  ;;  %1583 = vadd.xlane.f32.xlu0 %v1582_v61  ;;  %4927 = vrsqrt.f32 %v1267_v46  ;;  %v1283_v10 = vadd.f32 1e-05, %v1251_v38  ;;  %v1489_v33 = vsel %vm1425_vm3, %v1393_v7, %v1457_v48 }
 0x395   :  { %v1328_v43 = vmul.f32 %v4920_v19, %v5898_v49  ;;  %v1525_v55 = vmul.f32 %v5961_v0, %v1489_v33  ;;  %vm1446_vm4 = vcmp.gt.f32.partialorder %v1414_v41, 0.0  ;;  %v1478_v13 = vmul.f32 0.01, %v1414_v41 }
 0x396   :  { %4929 = vrsqrt.f32 %v1283_v10  ;;  %v1409_v14 = vadd.f32 %v5952_v17, %v1373_v27  ;;  %v1396_v23 = vadd.f32 %v5952_v17, %v1360_v53  ;;  %v1376_v35 = vmul.f32 %v5948_v26, %v6046_v8 }
 0x397   :  { %v4922_v2 = vpop.eup %4921  ;;  %v1567_v31 = vsel %vm85_vm0, %v1525_v55, 0.0  ;;  %v1510_v42 = vsel %vm1446_vm4, %v1414_v41, %v1478_v13  ;;  %v1379_v49 = vmul.f32 %v5948_v26, %v1343_v59  ;;  %v1399_v59 = vadd.f32 %v5952_v17, %v1363_v4 }
 0x398   :  { %v4924_v54 = vpop.eup %4923  ;;  %v1344_v18 = vmul.f32 %v4922_v2, %v5907_v50  ;;  %1568 = vadd.xlane.f32.xlu1 %v1567_v31  ;;  %v1546_v52 = vmul.f32 %v5961_v0, %v1510_v42  ;;  %vm1441_vm5 = vcmp.gt.f32.partialorder %v1409_v14, 0.0  ;;  %v1473_v44 = vmul.f32 0.01, %v1409_v14 }
 0x399   :  { %v6096_v39 = vmul.f32 %v4924_v54, %v5910_v5  ;;  %vm1428_vm6 = vcmp.gt.f32.partialorder %v1396_v23, 0.0  ;;  %v1460_v8 = vmul.f32 0.01, %v1396_v23  ;;  %v1412_v57 = vadd.f32 %v5952_v17, %v1376_v35 }
 0x39a   :  { %v1630_v32 = vsel %vm85_vm0, %v1546_v52, 0.0  ;;  %v1505_v21 = vsel %vm1441_vm5, %v1409_v14, %v1473_v44  ;;  %v1415_v56 = vadd.f32 %v5952_v17, %v1379_v49  ;;  %vm1431_vm8 = vcmp.gt.f32.partialorder %v1399_v59, 0.0 }
 0x39b   :  { %v4926_v50 = vpop.eup %4925  ;;  %1631 = vadd.xlane.f32.xlu0 %v1630_v32  ;;  %v1541_v37 = vmul.f32 %v5961_v0, %v1505_v21  ;;  %v1492_v63 = vsel %vm1428_vm6, %v1396_v23, %v1460_v8  ;;  %vm1444_vm7 = vcmp.gt.f32.partialorder %v1412_v57, 0.0  ;;  %v1476_v47 = vmul.f32 0.01, %v1412_v57 }
 0x39c   :  { %v6104_v5 = vmul.f32 %v4926_v50, %v5919_v9  ;;  %v1528_v40 = vmul.f32 %v5961_v0, %v1492_v63  ;;  %v1463_v12 = vmul.f32 0.01, %v1399_v59  ;;  %vm1447_vm9 = vcmp.gt.f32.partialorder %v1415_v56, 0.0 }
 0x39d   :  { %v1615_v20 = vsel %vm85_vm0, %v1541_v37, 0.0  ;;  %v1508_v29 = vsel %vm1444_vm7, %v1412_v57, %v1476_v47  ;;  %v1479_v7 = vmul.f32 0.01, %v1415_v56  ;;  %v1366_v9 = vmul.f32 %v5948_v26, %v6070_v51 }
 0x39e   :  { %v4928_v6 = vpop.eup %4927  ;;  %1616 = vadd.xlane.f32.xlu1 %v1615_v20  ;;  %v1576_v1 = vsel %vm85_vm0, %v1528_v40, 0.0  ;;  %v1544_v28 = vmul.f32 %v5961_v0, %v1508_v29  ;;  %v1495_v46 = vsel %vm1431_vm8, %v1399_v59, %v1463_v12  ;;  %v1361_v61 = vmul.f32 %v5948_v26, %v6058_v11 }
 0x39f   :  { %v1331_v38 = vmul.f32 %v4928_v6, %v5922_v22  ;;  %1577 = vadd.xlane.f32.xlu0 %v1576_v1  ;;  %v1531_v48 = vmul.f32 %v5961_v0, %v1495_v46  ;;  %v1511_v60 = vsel %vm1447_vm9, %v1415_v56, %v1479_v7  ;;  %v1402_v19 = vadd.f32 %v5952_v17, %v1366_v9 }
 0x3a0   :  { %v4930_v41 = vpop.eup %4929  ;;  %v1624_v27 = vsel %vm85_vm0, %v1544_v28, 0.0  ;;  %v1547_v53 = vmul.f32 %v5961_v0, %v1511_v60  ;;  %v1364_v10 = vmul.f32 %v5948_v26, %v1328_v43  ;;  %v1397_v33 = vadd.f32 %v5952_v17, %v1361_v61 }
 0x3a1   :  { %v1347_v51 = vmul.f32 %v4930_v41, %v5931_v45  ;;  %v1585_v22 = vsel %vm85_vm0, %v1531_v48, 0.0  ;;  %v1377_v55 = vmul.f32 %v5948_v26, %v6064_v34  ;;  %vm1434_vm10 = vcmp.gt.f32.partialorder %v1402_v19, 0.0 }
 0x3a2   :  { %1586 = vadd.xlane.f32.xlu1 %v1585_v22  ;;  %v1633_v11 = vsel %vm85_vm0, %v1547_v53, 0.0  ;;  %v1466_v13 = vmul.f32 0.01, %v1402_v19  ;;  %v1400_v14 = vadd.f32 %v5952_v17, %v1364_v10  ;;  %vm1429_vm11 = vcmp.gt.f32.partialorder %v1397_v33, 0.0 }
 0x3a3   :  { %1625 = vadd.xlane.f32.xlu0 %v1624_v27  ;;  %v1461_v23 = vmul.f32 0.01, %v1397_v33  ;;  %v1413_v43 = vadd.f32 %v5952_v17, %v1377_v55  ;;  %v1380_v45 = vmul.f32 %v5948_v26, %v1344_v18  ;;  %v1382_v34 = vmul.f32 %v5948_v26, %v6081_v62 }
 0x3a4   :  { %v1498_v35 = vsel %vm1434_vm10, %v1402_v19, %v1466_v13  ;;  %vm1432_vm12 = vcmp.gt.f32.partialorder %v1400_v14, 0.0  ;;  %v1464_v2 = vmul.f32 0.01, %v1400_v14  ;;  %v1367_v62 = vmul.f32 %v5948_v26, %v1331_v38 }
 0x3a5   :  { %v1534_v31 = vmul.f32 %v5961_v0, %v1498_v35  ;;  %v1493_v42 = vsel %vm1429_vm11, %v1397_v33, %v1461_v23  ;;  %vm1445_vm13 = vcmp.gt.f32.partialorder %v1413_v43, 0.0  ;;  %v1477_v4 = vmul.f32 0.01, %v1413_v43 }
 0x3a6   :  { %1634 = vadd.xlane.f32.xlu1 %v1633_v11  ;;  %v1529_v49 = vmul.f32 %v5961_v0, %v1493_v42  ;;  %v1496_v54 = vsel %vm1432_vm12, %v1400_v14, %v1464_v2  ;;  %v1416_v52 = vadd.f32 %v5952_v17, %v1380_v45  ;;  %v1418_v44 = vadd.f32 %v5952_v17, %v1382_v34 }
 0x3a7   :  { %v1594_v18 = vsel %vm85_vm0, %v1534_v31, 0.0  ;;  %v1532_v8 = vmul.f32 %v5961_v0, %v1496_v54  ;;  %v1509_v57 = vsel %vm1445_vm13, %v1413_v43, %v1477_v4  ;;  %v1403_v37 = vadd.f32 %v5952_v17, %v1367_v62 }
 0x3a8   :  { %1595 = vadd.xlane.f32.xlu0 %v1594_v18  ;;  %v1579_v32 = vsel %vm85_vm0, %v1529_v49, 0.0  ;;  %v1545_v21 = vmul.f32 %v5961_v0, %v1509_v57  ;;  %vm1448_vm14 = vcmp.gt.f32.partialorder %v1416_v52, 0.0  ;;  %v1480_v59 = vmul.f32 0.01, %v1416_v52 }
 0x3a9   :  { %v1588_v56 = vsel %vm85_vm0, %v1532_v8, 0.0  ;;  %vm1450_vm15 = vcmp.gt.f32.partialorder %v1418_v44, 0.0  ;;  %v1482_v50 = vmul.f32 0.01, %v1418_v44  ;;  %v1383_v47 = vmul.f32 %v5948_v26, %v1347_v51 }
 0x3aa   :  { %1580 = vadd.xlane.f32.xlu1 %v1579_v32  ;;  %v1512_v63 = vsel %vm1448_vm14, %v1416_v52, %v1480_v59  ;;  %v1365_v40 = vmul.f32 %v5948_v26, %v6096_v39  ;;  %vm1435_vm1 = vcmp.gt.f32.partialorder %v1403_v37, 0.0  ;;  %v1467_v20 = vmul.f32 0.01, %v1403_v37 }
 0x3ab   :  { %v1548_v12 = vmul.f32 %v5961_v0, %v1512_v63  ;;  %v1514_v29 = vsel %vm1450_vm15, %v1418_v44, %v1482_v50  ;;  %v1419_v7 = vadd.f32 %v5952_v17, %v1383_v47  ;;  %v1381_v1 = vmul.f32 %v5948_v26, %v6104_v5 }
 0x3ac   :  { %1589 = vadd.xlane.f32.xlu0 %v1588_v56  ;;  %v1401_v6 = vadd.f32 %v5952_v17, %v1365_v40  ;;  %v1627_v28 = vsel %vm85_vm0, %v1545_v21, 0.0  ;;  %v1499_v9 = vsel %vm1435_vm1, %v1403_v37, %v1467_v20  ;;  %v4956_v48 = vmov 0  }
 0x3ad   :  { %v1636_v46 = vsel %vm85_vm0, %v1548_v12, 0.0  ;;  %v1535_v39 = vmul.f32 %v5961_v0, %v1499_v9  ;;  %vm1451_vm2 = vcmp.gt.f32.partialorder %v1419_v7, 0.0  ;;  %v1483_v38 = vmul.f32 0.01, %v1419_v7  ;;  %4798 = vset.pattern.permute.xlu0 %v4956_v48  ;;  %4797 = vset.pattern.permute.xlu1 %v4956_v48 }
 0x3ae   :  { %1628 = vadd.xlane.f32.xlu1 %v1627_v28  ;;  %v1550_v60 = vmul.f32 %v5961_v0, %v1514_v29  ;;  %vm1433_vm3 = vcmp.gt.f32.partialorder %v1401_v6, 0.0  ;;  %v1465_v61 = vmul.f32 0.01, %v1401_v6  ;;  %v1417_v41 = vadd.f32 %v5952_v17, %v1381_v1 }
 0x3af   :  { %v1597_v26 = vsel %vm85_vm0, %v1535_v39, 0.0  ;;  %v1515_v5 = vsel %vm1451_vm2, %v1419_v7, %v1483_v38  ;;  %v4957_v13 = vmov 1966171168   ;;  %v6166_v23 = vstv %s7021_s3  ;;  %s4958_s3 = smov [#allocation3]  }
 0x3b0   :  { %1637 = vadd.xlane.f32.xlu0 %v1636_v46  ;;  %v1551_v27 = vmul.f32 %v5961_v0, %v1515_v5  ;;  %v1497_v53 = vsel %vm1433_vm3, %v1401_v6, %v1465_v61  ;;  %v1481_v19 = vmul.f32 0.01, %v1417_v41  ;;  %v1642_v10 = vsel %vm85_vm0, %v1550_v60, 0.0  ;;  %s4619_s6 = sshll.u32 %s4958_s3, 4  ;;  %s4620_s6 = int_to_ptr.vmem [resolvable:$true] %s4619_s6 }
 0x3b1   :  { %vm1449_vm4 = vcmp.gt.f32.partialorder %v1417_v41, 0.0  ;;  %v1533_v22 = vmul.f32 %v5961_v0, %v1497_v53  ;;  %v2743_v14 = vunpack.c.l.s4 %v4957_v13  ;;  %v6169_v35 = vsub.s32 6, %v5429_v58  ;;  %s4932_s7 = scalar_lea.vmem %s4620_s6, 32  ;;  %p4937_p1 = scmp.lt.s32.totalorder %s4620_s6, %s4620_s6 }
 0x3b2   :  { %1598 = vadd.xlane.f32.xlu1 %v1597_v26  ;;  %v1645_v51 = vsel %vm85_vm0, %v1551_v27, 0.0  ;;  %v1513_v17 = vsel %vm1449_vm4, %v1417_v41, %v1481_v19  ;;  %v6172_v2 = vsub.s32 7, %v5429_v58  ;;  %vm4420_vm5 = vcmask 195712   ;;  %p4933_p0 = scmp.ne.s32.totalorder %s4620_s6, %s4932_s7  ;;  %p4938_p2 = scmp.lt.s32.totalorder %s4932_s7, %s4932_s7 }
 0x3b3   :  { %v1591_v33 = vsel %vm85_vm0, %v1533_v22, 0.0  ;;  %v1549_v55 = vmul.f32 %v5961_v0, %v1513_v17  ;;  %v2744_v43 = vunpack.c.0.s8 %v2743_v14  ;;  %vm4427_vm6 = vcmask 261312  }
 0x3b4   :  { %1643 = vadd.xlane.f32.xlu0 %v1642_v10  ;;  %vm4434_vm7 = vcmask 326912   ;;  %vm4441_vm8 = vcmask 392512   ;;  %vm4448_vm9 = vcmask 458112   ;;  %vm4455_vm10 = vcmask 523712   ;;  %p4939_p3 = por %p4938_p2, %p4937_p1 }
 0x3b5   :  { %v1639_v11 = vsel %vm85_vm0, %v1549_v55, 0.0  ;;  %v6176_v34 = vsub.s32 %v2744_v43, %v5429_v58  ;;  %vm4413_vm0 = vcmask 130112   ;;  %vm4462_vm11 = vcmask 589312  }
 0x3b6   :  { %1646 = vadd.xlane.f32.xlu1 %v1645_v51  ;;  %vm4469_vm12 = vcmask 654912   ;;  %vm4476_vm13 = vcmask 720512   ;;  %vm4483_vm14 = vcmask 786112   ;;  %vm4497_vm15 = vcmask 917312   ;;  %p4940_p4 = pnand %p4939_p3, %p4933_p0 }
 0x3b7   :  { %vm4490_vm1 = vcmask 851712   ;;  %vm4504_vm2 = vcmask 982912   ;;  %vm4511_vm3 = vcmask 1048512   ;;  %vm4610_vm4 = vcmp.lt.s32.totalorder %v503_v16, 256 }
 0x3ba   :  { %1592 = vadd.xlane.f32.xlu1 %v1591_v33 }
 0x3be   :  { %1640 = vadd.xlane.f32.xlu1 %v1639_v11 }
 0x3f2   :  { %v1560_v45 = vpop.xlane.xlu0 %1559 }
 0x3f3   :  { %v1652_v0 = vadd.f32 %v6166_v23, %v1560_v45 }
 0x3f5   :  { %v1781_v31 = vrot.slane %v1652_v0, %v5432_v15  ;;  %v1785_v42 = vrot.slane %v1652_v0, %v5440_v3  ;;  %v1789_v4 = vrot.slane %v1652_v0, %v5580_v25  ;;  %v1793_v49 = vrot.slane %v1652_v0, %v5939_v36 }
 0x3f6   :  { %v1797_v54 = vrot.slane %v1652_v0, %v5942_v24  ;;  %v1801_v52 = vrot.slane %v1652_v0, %v5955_v30  ;;  %v1805_v44 = vrot.slane %v1652_v0, %v6169_v35  ;;  %v1809_v18 = vrot.slane %v1652_v0, %v6172_v2 }
 0x3f7   :  { %v2836_v8 = vcombine.low %v1781_v31, %v1785_v42  ;;  %v2837_v57 = vcombine.low %v1789_v4, %v1793_v49 }
 0x3f8   :  { %v2838_v62 = vcombine.low %v1797_v54, %v1801_v52  ;;  %v2839_v32 = vcombine.low %v1805_v44, %v1809_v18 }
 0x3f9   :  { %v1608_v21 = vpop.xlane.xlu0 %1607  ;;  %v2846_v59 = vrot.slane %v2836_v8, %v6176_v34  ;;  %v2853_v56 = vrot.slane %v2837_v57, %v6176_v34 }
 0x3fa   :  { %v1668_v50 = vadd.f32 %v6166_v23, %v1608_v21  ;;  %v2860_v37 = vrot.slane %v2838_v62, %v6176_v34  ;;  %v2867_v63 = vrot.slane %v2839_v32, %v6176_v34 }
 0x3fb   :  { %v2868_v47 = vcombine.low %v2846_v59, %v2853_v56 }
 0x3fc   :  { %v2869_v40 = vcombine.low %v2860_v37, %v2867_v63  ;;  %v2293_v12 = vrot.slane %v1668_v50, %v5432_v15  ;;  %v2297_v20 = vrot.slane %v1668_v50, %v5440_v3  ;;  %v2301_v29 = vrot.slane %v1668_v50, %v5580_v25 }
 0x3fd   :  { %v1554_v7 = vpop.xlane.xlu0 %1553  ;;  %v2876_v6 = vrot.slane %v2868_v47, %v6176_v34  ;;  %v2305_v1 = vrot.slane %v1668_v50, %v5939_v36  ;;  %v2309_v28 = vrot.slane %v1668_v50, %v5942_v24  ;;  %v2313_v46 = vrot.slane %v1668_v50, %v5955_v30 }
 0x3fe   :  { %v1650_v9 = vadd.f32 %v6166_v23, %v1554_v7  ;;  %v2883_v39 = vrot.slane %v2869_v40, %v6176_v34  ;;  %v2317_v38 = vrot.slane %v1668_v50, %v6169_v35  ;;  %v2321_v48 = vrot.slane %v1668_v50, %v6172_v2 }
 0x3ff   :  { %v1563_v60 = vpop.xlane.xlu1 %1562  ;;  %v3620_v61 = vcombine.low %v2293_v12, %v2297_v20  ;;  %v3621_v41 = vcombine.low %v2301_v29, %v2305_v1  ;;  %v3622_v26 = vcombine.low %v2309_v28, %v2313_v46 }
 0x400   :  { %v6203_v5 = vadd.f32 %v6166_v23, %v1563_v60  ;;  %v2884_v27 = vcombine.low %v2876_v6, %v2883_v39  ;;  %v3623_v53 = vcombine.low %v2317_v38, %v2321_v48  ;;  %v1717_v19 = vrot.slane %v1650_v9, %v5432_v15 }
 0x401   :  { %v1602_v10 = vpop.xlane.xlu0 %1601  ;;  %v3630_v51 = vrot.slane %v3620_v61, %v6176_v34  ;;  %v3637_v22 = vrot.slane %v3621_v41, %v6176_v34  ;;  %v3644_v17 = vrot.slane %v3622_v26, %v6176_v34  ;;  %v1721_v33 = vrot.slane %v1650_v9, %v5440_v3 }
 0x402   :  { %v1666_v55 = vadd.f32 %v6166_v23, %v1602_v10  ;;  %4313 = vperm.xlu1 %4797, %v2884_v27   ;;  %v3651_v11 = vrot.slane %v3623_v53, %v6176_v34  ;;  %v1725_v13 = vrot.slane %v1650_v9, %v5580_v25  ;;  %v1729_v14 = vrot.slane %v1650_v9, %v5939_v36 }
 0x403   :  { %v3652_v43 = vcombine.low %v3630_v51, %v3637_v22  ;;  %v1733_v45 = vrot.slane %v1650_v9, %v5942_v24  ;;  %v1737_v0 = vrot.slane %v1650_v9, %v5955_v30  ;;  %v1741_v31 = vrot.slane %v1650_v9, %v6169_v35 }
 0x404   :  { %v3653_v42 = vcombine.low %v3644_v17, %v3651_v11  ;;  %v1745_v4 = vrot.slane %v1650_v9, %v6172_v2  ;;  %v2738_v49 = vcombine.low %v1717_v19, %v1721_v33  ;;  %v2739_v54 = vcombine.low %v1725_v13, %v1729_v14 }
 0x405   :  { %v3660_v52 = vrot.slane %v3652_v43, %v6176_v34  ;;  %v2740_v44 = vcombine.low %v1733_v45, %v1737_v0  ;;  %v2229_v18 = vrot.slane %v1666_v55, %v5432_v15  ;;  %v2233_v8 = vrot.slane %v1666_v55, %v5440_v3  ;;  %v1611_v57 = vpop.xlane.xlu1 %1610 }
 0x406   :  { %v3667_v62 = vrot.slane %v3653_v42, %v6176_v34  ;;  %v2741_v32 = vcombine.low %v1741_v31, %v1745_v4  ;;  %v2748_v21 = vrot.slane %v2738_v49, %v6176_v34  ;;  %v2755_v59 = vrot.slane %v2739_v54, %v6176_v34 }
 0x407   :  { %v1669_v56 = vadd.f32 %v6166_v23, %v1611_v57  ;;  %v2762_v50 = vrot.slane %v2740_v44, %v6176_v34  ;;  %v2237_v37 = vrot.slane %v1666_v55, %v5580_v25  ;;  %v2241_v63 = vrot.slane %v1666_v55, %v5939_v36 }
 0x408   :  { %v3668_v47 = vcombine.low %v3660_v52, %v3667_v62  ;;  %v2769_v40 = vrot.slane %v2741_v32, %v6176_v34  ;;  %v2770_v12 = vcombine.low %v2748_v21, %v2755_v59  ;;  %v2245_v20 = vrot.slane %v1666_v55, %v5942_v24 }
 0x409   :  { %v2249_v29 = vrot.slane %v1666_v55, %v5955_v30  ;;  %v2253_v7 = vrot.slane %v1666_v55, %v6169_v35  ;;  %v2257_v6 = vrot.slane %v1666_v55, %v6172_v2  ;;  %v3522_v1 = vcombine.low %v2229_v18, %v2233_v8  ;;  %v1572_v28 = vpop.xlane.xlu0 %1571  ;;  %v1557_v46 = vpop.xlane.xlu1 %1556 }
 0x40a   :  { %4361 = vperm.xlu1 %4797, %v3668_v47   ;;  %v2771_v9 = vcombine.low %v2762_v50, %v2769_v40  ;;  %v2778_v39 = vrot.slane %v2770_v12, %v6176_v34  ;;  %v3523_v38 = vcombine.low %v2237_v37, %v2241_v63  ;;  %v2325_v48 = vrot.slane %v1669_v56, %v5432_v15 }
 0x40b   :  { %v6236_v60 = vadd.f32 %v6166_v23, %v1572_v28  ;;  %v6239_v61 = vadd.f32 %v6166_v23, %v1557_v46  ;;  %v3524_v41 = vcombine.low %v2245_v20, %v2249_v29  ;;  %v3525_v26 = vcombine.low %v2253_v7, %v2257_v6 }
 0x40c   :  { %v2785_v27 = vrot.slane %v2771_v9, %v6176_v34  ;;  %v3532_v53 = vrot.slane %v3522_v1, %v6176_v34  ;;  %v3539_v19 = vrot.slane %v3523_v38, %v6176_v34  ;;  %v2329_v10 = vrot.slane %v1669_v56, %v5440_v3 }
 0x40d   :  { %v3546_v51 = vrot.slane %v3524_v41, %v6176_v34  ;;  %v3553_v22 = vrot.slane %v3525_v26, %v6176_v34  ;;  %v2333_v17 = vrot.slane %v1669_v56, %v5580_v25  ;;  %v2337_v33 = vrot.slane %v1669_v56, %v5939_v36 }
 0x40e   :  { %v2786_v55 = vcombine.low %v2778_v39, %v2785_v27  ;;  %v3554_v11 = vcombine.low %v3532_v53, %v3539_v19  ;;  %v2341_v13 = vrot.slane %v1669_v56, %v5942_v24  ;;  %v2345_v14 = vrot.slane %v1669_v56, %v5955_v30 }
 0x40f   :  { %v1620_v43 = vpop.xlane.xlu0 %1619  ;;  %v3555_v45 = vcombine.low %v3546_v51, %v3553_v22  ;;  %v2349_v0 = vrot.slane %v1669_v56, %v6169_v35  ;;  %v2353_v31 = vrot.slane %v1669_v56, %v6172_v2  ;;  %v3669_v42 = vcombine.low %v2325_v48, %v2329_v10 }
 0x410   :  { %v6254_v4 = vadd.f32 %v6166_v23, %v1620_v43  ;;  %4307 = vperm.xlu0 %4798, %v2786_v55   ;;  %v3562_v49 = vrot.slane %v3554_v11, %v6176_v34  ;;  %v3670_v54 = vcombine.low %v2333_v17, %v2337_v33  ;;  %v3671_v52 = vcombine.low %v2341_v13, %v2345_v14 }
 0x411   :  { %v3569_v44 = vrot.slane %v3555_v45, %v6176_v34  ;;  %v3672_v18 = vcombine.low %v2349_v0, %v2353_v31  ;;  %v3679_v8 = vrot.slane %v3669_v42, %v6176_v34  ;;  %v1813_v57 = vrot.slane %v6203_v5, %v5432_v15  ;;  %v1605_v62 = vpop.xlane.xlu1 %1604 }
 0x412   :  { %v3686_v32 = vrot.slane %v3670_v54, %v6176_v34  ;;  %v3693_v21 = vrot.slane %v3671_v52, %v6176_v34  ;;  %v1817_v59 = vrot.slane %v6203_v5, %v5440_v3  ;;  %v1821_v56 = vrot.slane %v6203_v5, %v5580_v25 }
 0x413   :  { %v6268_v50 = vadd.f32 %v6166_v23, %v1605_v62  ;;  %v1566_v37 = vpop.xlane.xlu0 %1565  ;;  %v3570_v63 = vcombine.low %v3562_v49, %v3569_v44  ;;  %v3700_v47 = vrot.slane %v3672_v18, %v6176_v34  ;;  %v1825_v40 = vrot.slane %v6203_v5, %v5939_v36 }
 0x414   :  { %v6274_v12 = vadd.f32 %v6166_v23, %v1566_v37  ;;  %v3701_v20 = vcombine.low %v3679_v8, %v3686_v32  ;;  %v1829_v29 = vrot.slane %v6203_v5, %v5942_v24  ;;  %v1833_v7 = vrot.slane %v6203_v5, %v5955_v30 }
 0x415   :  { %4355 = vperm.xlu1 %4797, %v3570_v63   ;;  %v3702_v6 = vcombine.low %v3693_v21, %v3700_v47  ;;  %v1837_v1 = vrot.slane %v6203_v5, %v6169_v35  ;;  %v1841_v28 = vrot.slane %v6203_v5, %v6172_v2  ;;  %v2885_v46 = vcombine.low %v1813_v57, %v1817_v59 }
 0x416   :  { %v3709_v9 = vrot.slane %v3701_v20, %v6176_v34  ;;  %v2886_v39 = vcombine.low %v1821_v56, %v1825_v40  ;;  %v2887_v38 = vcombine.low %v1829_v29, %v1833_v7  ;;  %v1749_v48 = vrot.slane %v6239_v61, %v5432_v15 }
 0x417   :  { %v3716_v41 = vrot.slane %v3702_v6, %v6176_v34  ;;  %v2888_v26 = vcombine.low %v1837_v1, %v1841_v28  ;;  %v2895_v27 = vrot.slane %v2885_v46, %v6176_v34  ;;  %v1753_v53 = vrot.slane %v6239_v61, %v5440_v3 }
 0x418   :  { %v2902_v19 = vrot.slane %v2886_v39, %v6176_v34  ;;  %v2909_v5 = vrot.slane %v2887_v38, %v6176_v34  ;;  %v1757_v10 = vrot.slane %v6239_v61, %v5580_v25  ;;  %v1761_v51 = vrot.slane %v6239_v61, %v5939_v36 }
 0x419   :  { %v1614_v22 = vpop.xlane.xlu0 %1613  ;;  %v3717_v17 = vcombine.low %v3709_v9, %v3716_v41  ;;  %v2916_v33 = vrot.slane %v2888_v26, %v6176_v34  ;;  %v1765_v55 = vrot.slane %v6239_v61, %v5942_v24  ;;  %v1769_v11 = vrot.slane %v6239_v61, %v5955_v30 }
 0x41a   :  { %v6303_v13 = vadd.f32 %v6166_v23, %v1614_v22  ;;  %v2917_v14 = vcombine.low %v2895_v27, %v2902_v19  ;;  %v1773_v43 = vrot.slane %v6239_v61, %v6169_v35  ;;  %v1777_v45 = vrot.slane %v6239_v61, %v6172_v2 }
 0x41b   :  { %4364 = vperm.xlu0 %4798, %v3717_v17   ;;  %v2918_v0 = vcombine.low %v2909_v5, %v2916_v33  ;;  %v2787_v31 = vcombine.low %v1749_v48, %v1753_v53  ;;  %v2788_v42 = vcombine.low %v1757_v10, %v1761_v51  ;;  %v2789_v49 = vcombine.low %v1765_v55, %v1769_v11 }
 0x41c   :  { %v2925_v54 = vrot.slane %v2917_v14, %v6176_v34  ;;  %v2790_v52 = vcombine.low %v1773_v43, %v1777_v45  ;;  %v2261_v44 = vrot.slane %v6268_v50, %v5432_v15  ;;  %v2265_v18 = vrot.slane %v6268_v50, %v5440_v3 }
 0x41d   :  { %v1575_v8 = vpop.xlane.xlu1 %1574  ;;  %v2932_v57 = vrot.slane %v2918_v0, %v6176_v34  ;;  %v2797_v62 = vrot.slane %v2787_v31, %v6176_v34  ;;  %v2804_v61 = vrot.slane %v2788_v42, %v6176_v34  ;;  %v2811_v32 = vrot.slane %v2789_v49, %v6176_v34 }
 0x41e   :  { %v6319_v21 = vadd.f32 %v6166_v23, %v1575_v8  ;;  %v2818_v59 = vrot.slane %v2790_v52, %v6176_v34  ;;  %v2269_v56 = vrot.slane %v6268_v50, %v5580_v25  ;;  %v2273_v37 = vrot.slane %v6268_v50, %v5939_v36 }
 0x41f   :  { %v2933_v63 = vcombine.low %v2925_v54, %v2932_v57  ;;  %v2819_v47 = vcombine.low %v2797_v62, %v2804_v61  ;;  %v2277_v40 = vrot.slane %v6268_v50, %v5942_v24  ;;  %v2281_v20 = vrot.slane %v6268_v50, %v5955_v30 }
 0x420   :  { %v2820_v29 = vcombine.low %v2811_v32, %v2818_v59  ;;  %v2285_v7 = vrot.slane %v6268_v50, %v6169_v35  ;;  %v2289_v6 = vrot.slane %v6268_v50, %v6172_v2  ;;  %v3571_v1 = vcombine.low %v2261_v44, %v2265_v18 }
 0x421   :  { %4316 = vperm.xlu1 %4797, %v2933_v63   ;;  %v1623_v28 = vpop.xlane.xlu1 %1622  ;;  %v1584_v46 = vpop.xlane.xlu0 %1583  ;;  %v2827_v9 = vrot.slane %v2819_v47, %v6176_v34  ;;  %v3572_v39 = vcombine.low %v2269_v56, %v2273_v37  ;;  %v3573_v38 = vcombine.low %v2277_v40, %v2281_v20  ;;  %v1909_v48 = vrot.slane %v6236_v60, %v5432_v15 }
 0x422   :  { %v6338_v41 = vadd.f32 %v6166_v23, %v1623_v28  ;;  %v6341_v26 = vadd.f32 %v6166_v23, %v1584_v46  ;;  %v2834_v27 = vrot.slane %v2820_v29, %v6176_v34  ;;  %v3574_v50 = vcombine.low %v2285_v7, %v2289_v6 }
 0x423   :  { %v3581_v53 = vrot.slane %v3571_v1, %v6176_v34  ;;  %v3588_v19 = vrot.slane %v3572_v39, %v6176_v34  ;;  %v3595_v5 = vrot.slane %v3573_v38, %v6176_v34  ;;  %v1913_v10 = vrot.slane %v6236_v60, %v5440_v3 }
 0x424   :  { %v2835_v51 = vcombine.low %v2827_v9, %v2834_v27  ;;  %v3602_v22 = vrot.slane %v3574_v50, %v6176_v34  ;;  %v1917_v17 = vrot.slane %v6236_v60, %v5580_v25  ;;  %v1921_v33 = vrot.slane %v6236_v60, %v5939_v36 }
 0x425   :  { %v1569_v55 = vpop.xlane.xlu1 %1568  ;;  %v3603_v11 = vcombine.low %v3581_v53, %v3588_v19  ;;  %v1925_v14 = vrot.slane %v6236_v60, %v5942_v24  ;;  %v1929_v43 = vrot.slane %v6236_v60, %v5955_v30  ;;  %v1933_v45 = vrot.slane %v6236_v60, %v6169_v35 }
 0x426   :  { %4310 = vperm.xlu1 %4797, %v2835_v51   ;;  %v6361_v0 = vadd.f32 %v6166_v23, %v1569_v55  ;;  %v3604_v31 = vcombine.low %v3595_v5, %v3602_v22  ;;  %v1937_v42 = vrot.slane %v6236_v60, %v6172_v2  ;;  %v3032_v49 = vcombine.low %v1909_v48, %v1913_v10 }
 0x427   :  { %v3611_v54 = vrot.slane %v3603_v11, %v6176_v34  ;;  %v3033_v52 = vcombine.low %v1917_v17, %v1921_v33  ;;  %v3034_v44 = vcombine.low %v1925_v14, %v1929_v43  ;;  %v2421_v18 = vrot.slane %v6254_v4, %v5432_v15 }
 0x428   :  { %v1632_v8 = vpop.xlane.xlu0 %1631  ;;  %v3618_v57 = vrot.slane %v3604_v31, %v6176_v34  ;;  %v3035_v62 = vcombine.low %v1933_v45, %v1937_v42  ;;  %v3042_v61 = vrot.slane %v3032_v49, %v6176_v34  ;;  %v2425_v32 = vrot.slane %v6254_v4, %v5440_v3 }
 0x429   :  { %v6373_v59 = vadd.f32 %v6166_v23, %v1632_v8  ;;  %v3049_v60 = vrot.slane %v3033_v52, %v6176_v34  ;;  %v3056_v56 = vrot.slane %v3034_v44, %v6176_v34  ;;  %v2429_v37 = vrot.slane %v6254_v4, %v5580_v25 }
 0x42a   :  { %v3619_v63 = vcombine.low %v3611_v54, %v3618_v57  ;;  %v3063_v47 = vrot.slane %v3035_v62, %v6176_v34  ;;  %v2433_v40 = vrot.slane %v6254_v4, %v5939_v36  ;;  %v2437_v20 = vrot.slane %v6254_v4, %v5942_v24 }
 0x42b   :  { %v3064_v29 = vcombine.low %v3042_v61, %v3049_v60  ;;  %v1617_v7 = vpop.xlane.xlu1 %1616  ;;  %v2441_v6 = vrot.slane %v6254_v4, %v5955_v30  ;;  %v2445_v1 = vrot.slane %v6254_v4, %v6169_v35  ;;  %v2449_v28 = vrot.slane %v6254_v4, %v6172_v2 }
 0x42c   :  { %4358 = vperm.xlu0 %4798, %v3619_v63   ;;  %v3065_v46 = vcombine.low %v3056_v56, %v3063_v47  ;;  %v6391_v9 = vadd.f32 %v6166_v23, %v1617_v7  ;;  %v1578_v39 = vpop.xlane.xlu0 %1577  ;;  %v3816_v38 = vcombine.low %v2421_v18, %v2425_v32  ;;  %v3817_v48 = vcombine.low %v2429_v37, %v2433_v40 }
 0x42d   :  { %v3072_v27 = vrot.slane %v3064_v29, %v6176_v34  ;;  %v6395_v50 = vadd.f32 %v6166_v23, %v1578_v39  ;;  %v3818_v53 = vcombine.low %v2437_v20, %v2441_v6  ;;  %v3819_v19 = vcombine.low %v2445_v1, %v2449_v28 }
 0x42e   :  { %v3079_v5 = vrot.slane %v3065_v46, %v6176_v34  ;;  %v3826_v10 = vrot.slane %v3816_v38, %v6176_v34  ;;  %v3833_v4 = vrot.slane %v3817_v48, %v6176_v34  ;;  %v2453_v51 = vrot.slane %v6338_v41, %v5432_v15 }
 0x42f   :  { %v3840_v22 = vrot.slane %v3818_v53, %v6176_v34  ;;  %v3847_v17 = vrot.slane %v3819_v19, %v6176_v34  ;;  %v1587_v33 = vpop.xlane.xlu1 %1586  ;;  %v2457_v55 = vrot.slane %v6338_v41, %v5440_v3  ;;  %v2461_v11 = vrot.slane %v6338_v41, %v5580_v25 }
 0x430   :  { %v3080_v14 = vcombine.low %v3072_v27, %v3079_v5  ;;  %v3848_v43 = vcombine.low %v3826_v10, %v3833_v4  ;;  %v6409_v45 = vadd.f32 %v6166_v23, %v1587_v33  ;;  %v1626_v31 = vpop.xlane.xlu0 %1625  ;;  %v2465_v42 = vrot.slane %v6338_v41, %v5939_v36 }
 0x431   :  { %v3849_v49 = vcombine.low %v3840_v22, %v3847_v17  ;;  %v6414_v54 = vadd.f32 %v6166_v23, %v1626_v31  ;;  %v2469_v52 = vrot.slane %v6338_v41, %v5942_v24  ;;  %v2473_v44 = vrot.slane %v6338_v41, %v5955_v30 }
 0x432   :  { %4325 = vperm.xlu1 %4797, %v3080_v14   ;;  %v3856_v18 = vrot.slane %v3848_v43, %v6176_v34  ;;  %v2477_v8 = vrot.slane %v6338_v41, %v6169_v35  ;;  %v2481_v57 = vrot.slane %v6338_v41, %v6172_v2  ;;  %v3865_v62 = vcombine.low %v2453_v51, %v2457_v55 }
 0x433   :  { %v3863_v61 = vrot.slane %v3849_v49, %v6176_v34  ;;  %v3866_v32 = vcombine.low %v2461_v11, %v2465_v42  ;;  %v3867_v60 = vcombine.low %v2469_v52, %v2473_v44  ;;  %v1845_v56 = vrot.slane %v6274_v12, %v5432_v15  ;;  %v1635_v6 = vpop.xlane.xlu1 %1634 }
 0x434   :  { %v3868_v37 = vcombine.low %v2477_v8, %v2481_v57  ;;  %v3875_v63 = vrot.slane %v3865_v62, %v6176_v34  ;;  %v1849_v47 = vrot.slane %v6274_v12, %v5440_v3  ;;  %v1853_v40 = vrot.slane %v6274_v12, %v5580_v25 }
 0x435   :  { %v3864_v20 = vcombine.low %v3856_v18, %v3863_v61  ;;  %v3882_v41 = vrot.slane %v3866_v32, %v6176_v34  ;;  %v3889_v29 = vrot.slane %v3867_v60, %v6176_v34  ;;  %v1857_v7 = vrot.slane %v6274_v12, %v5939_v36  ;;  %v1596_v1 = vpop.xlane.xlu0 %1595 }
 0x436   :  { %v3896_v28 = vrot.slane %v3868_v37, %v6176_v34  ;;  %v1861_v46 = vrot.slane %v6274_v12, %v5942_v24  ;;  %v1865_v39 = vrot.slane %v6274_v12, %v5955_v30  ;;  %v1869_v38 = vrot.slane %v6274_v12, %v6169_v35 }
 0x437   :  { %4373 = vperm.xlu1 %4797, %v3864_v20   ;;  %v3897_v48 = vcombine.low %v3875_v63, %v3882_v41  ;;  %v1873_v27 = vrot.slane %v6274_v12, %v6172_v2  ;;  %v2934_v53 = vcombine.low %v1845_v56, %v1849_v47  ;;  %v2935_v19 = vcombine.low %v1853_v40, %v1857_v7  ;;  %v1581_v44 = vpop.xlane.xlu1 %1580 }
 0x438   :  { %v3898_v5 = vcombine.low %v3889_v29, %v3896_v28  ;;  %v2936_v10 = vcombine.low %v1861_v46, %v1865_v39  ;;  %v6447_v4 = vadd.f32 %v6166_v23, %v1635_v6  ;;  %v6450_v51 = vadd.f32 %v6166_v23, %v1596_v1 }
 0x439   :  { %v3905_v22 = vrot.slane %v3897_v48, %v6176_v34  ;;  %v2937_v17 = vcombine.low %v1869_v38, %v1873_v27  ;;  %v2944_v33 = vrot.slane %v2934_v53, %v6176_v34  ;;  %v2951_v55 = vrot.slane %v2935_v19, %v6176_v34  ;;  %v1590_v18 = vpop.xlane.xlu0 %1589 }
 0x43a   :  { %v3912_v11 = vrot.slane %v3898_v5, %v6176_v34  ;;  %v2958_v12 = vrot.slane %v2936_v10, %v6176_v34  ;;  %v2357_v14 = vrot.slane %v6303_v13, %v5432_v15  ;;  %v2361_v43 = vrot.slane %v6303_v13, %v5440_v3 }
 0x43b   :  { %v2965_v31 = vrot.slane %v2937_v17, %v6176_v34  ;;  %v2966_v42 = vcombine.low %v2944_v33, %v2951_v55  ;;  %v2365_v49 = vrot.slane %v6303_v13, %v5580_v25  ;;  %v2369_v52 = vrot.slane %v6303_v13, %v5939_v36 }
 0x43c   :  { %v3913_v8 = vcombine.low %v3905_v22, %v3912_v11  ;;  %v2373_v57 = vrot.slane %v6303_v13, %v5942_v24  ;;  %v2377_v62 = vrot.slane %v6303_v13, %v5955_v30  ;;  %v2381_v61 = vrot.slane %v6303_v13, %v6169_v35 }
 0x43d   :  { %v2967_v32 = vcombine.low %v2958_v12, %v2965_v31  ;;  %v2974_v60 = vrot.slane %v2966_v42, %v6176_v34  ;;  %v2385_v56 = vrot.slane %v6303_v13, %v6172_v2  ;;  %v3718_v37 = vcombine.low %v2357_v14, %v2361_v43 }
 0x43e   :  { %4376 = vperm.xlu0 %4798, %v3913_v8   ;;  %v3719_v63 = vcombine.low %v2365_v49, %v2369_v52  ;;  %v3720_v47 = vcombine.low %v2373_v57, %v2377_v62  ;;  %v6476_v40 = vadd.f32 %v6166_v23, %v1581_v44  ;;  %v6479_v20 = vadd.f32 %v6166_v23, %v1590_v18  ;;  %v1629_v57 = vpop.xlane.xlu1 %1628  ;;  %v1638_v62 = vpop.xlane.xlu0 %1637 }
 0x43f   :  { %v2981_v41 = vrot.slane %v2967_v32, %v6176_v34  ;;  %v3721_v29 = vcombine.low %v2381_v61, %v2385_v56  ;;  %v3728_v7 = vrot.slane %v3718_v37, %v6176_v34  ;;  %v2389_v6 = vrot.slane %v6391_v9, %v5432_v15 }
 0x440   :  { %v3735_v13 = vrot.slane %v3719_v63, %v6176_v34  ;;  %v3742_v1 = vrot.slane %v3720_v47, %v6176_v34  ;;  %v2393_v28 = vrot.slane %v6391_v9, %v5440_v3  ;;  %v2397_v46 = vrot.slane %v6391_v9, %v5580_v25 }
 0x441   :  { %v2982_v39 = vcombine.low %v2974_v60, %v2981_v41  ;;  %v3749_v38 = vrot.slane %v3721_v29, %v6176_v34  ;;  %v2401_v48 = vrot.slane %v6391_v9, %v5939_v36  ;;  %v2405_v27 = vrot.slane %v6391_v9, %v5942_v24 }
 0x442   :  { %v3750_v53 = vcombine.low %v3728_v7, %v3735_v13  ;;  %v2409_v19 = vrot.slane %v6391_v9, %v5955_v30  ;;  %v2413_v5 = vrot.slane %v6391_v9, %v6169_v35  ;;  %v2417_v10 = vrot.slane %v6391_v9, %v6172_v2 }
 0x443   :  { %4319 = vperm.xlu1 %4797, %v2982_v39   ;;  %v3751_v22 = vcombine.low %v3742_v1, %v3749_v38  ;;  %v3767_v17 = vcombine.low %v2389_v6, %v2393_v28  ;;  %v3768_v33 = vcombine.low %v2397_v46, %v2401_v48  ;;  %v1941_v55 = vrot.slane %v6319_v21, %v5432_v15 }
 0x444   :  { %v3758_v11 = vrot.slane %v3750_v53, %v6176_v34  ;;  %v3769_v12 = vcombine.low %v2405_v27, %v2409_v19  ;;  %v3770_v14 = vcombine.low %v2413_v5, %v2417_v10  ;;  %v1945_v43 = vrot.slane %v6319_v21, %v5440_v3 }
 0x445   :  { %v3765_v31 = vrot.slane %v3751_v22, %v6176_v34  ;;  %v3777_v42 = vrot.slane %v3767_v17, %v6176_v34  ;;  %v3784_v9 = vrot.slane %v3768_v33, %v6176_v34  ;;  %v1949_v49 = vrot.slane %v6319_v21, %v5580_v25 }
 0x446   :  { %v3791_v52 = vrot.slane %v3769_v12, %v6176_v34  ;;  %v3798_v44 = vrot.slane %v3770_v14, %v6176_v34  ;;  %v1953_v18 = vrot.slane %v6319_v21, %v5939_v36  ;;  %v1957_v8 = vrot.slane %v6319_v21, %v5942_v24 }
 0x447   :  { %v3766_v61 = vcombine.low %v3758_v11, %v3765_v31  ;;  %v3799_v32 = vcombine.low %v3777_v42, %v3784_v9  ;;  %v1961_v60 = vrot.slane %v6319_v21, %v5955_v30  ;;  %v1965_v56 = vrot.slane %v6319_v21, %v6169_v35 }
 0x448   :  { %v3800_v37 = vcombine.low %v3791_v52, %v3798_v44  ;;  %v1969_v63 = vrot.slane %v6319_v21, %v6172_v2  ;;  %v3081_v47 = vcombine.low %v1941_v55, %v1945_v43  ;;  %v3082_v41 = vcombine.low %v1949_v49, %v1953_v18 }
 0x449   :  { %4367 = vperm.xlu1 %4797, %v3766_v61   ;;  %v3807_v29 = vrot.slane %v3799_v32, %v6176_v34  ;;  %v3083_v7 = vcombine.low %v1957_v8, %v1961_v60  ;;  %v6526_v6 = vadd.f32 %v6166_v23, %v1629_v57  ;;  %v6529_v13 = vadd.f32 %v6166_v23, %v1638_v62  ;;  %v1599_v32 = vpop.xlane.xlu1 %1598  ;;  %v1644_v60 = vpop.xlane.xlu0 %1643 }
 0x44a   :  { %v3814_v1 = vrot.slane %v3800_v37, %v6176_v34  ;;  %v3084_v28 = vcombine.low %v1965_v56, %v1969_v63  ;;  %v3091_v46 = vrot.slane %v3081_v47, %v6176_v34  ;;  %v3098_v39 = vrot.slane %v3082_v41, %v6176_v34 }
 0x44b   :  { %v3105_v21 = vrot.slane %v3083_v7, %v6176_v34  ;;  %v1877_v38 = vrot.slane %v6361_v0, %v5432_v15  ;;  %v1881_v48 = vrot.slane %v6361_v0, %v5440_v3  ;;  %v1885_v27 = vrot.slane %v6361_v0, %v5580_v25 }
 0x44c   :  { %v3815_v53 = vcombine.low %v3807_v29, %v3814_v1  ;;  %v3112_v19 = vrot.slane %v3084_v28, %v6176_v34  ;;  %v3113_v5 = vcombine.low %v3091_v46, %v3098_v39  ;;  %v1889_v10 = vrot.slane %v6361_v0, %v5939_v36 }
 0x44d   :  { %v1893_v22 = vrot.slane %v6361_v0, %v5942_v24  ;;  %v1897_v17 = vrot.slane %v6361_v0, %v5955_v30  ;;  %v1901_v33 = vrot.slane %v6361_v0, %v6169_v35  ;;  %v1905_v55 = vrot.slane %v6361_v0, %v6172_v2 }
 0x44e   :  { %4370 = vperm.xlu0 %4798, %v3815_v53   ;;  %v3114_v11 = vcombine.low %v3105_v21, %v3112_v19  ;;  %v3121_v12 = vrot.slane %v3113_v5, %v6176_v34  ;;  %v2983_v14 = vcombine.low %v1877_v38, %v1881_v48  ;;  %v2984_v43 = vcombine.low %v1885_v27, %v1889_v10 }
 0x44f   :  { %v2985_v31 = vcombine.low %v1893_v22, %v1897_v17  ;;  %v2986_v42 = vcombine.low %v1901_v33, %v1905_v55  ;;  %v2549_v9 = vrot.slane %v6373_v59, %v5432_v15  ;;  %v2553_v49 = vrot.slane %v6373_v59, %v5440_v3 }
 0x450   :  { %v3128_v52 = vrot.slane %v3114_v11, %v6176_v34  ;;  %v2993_v44 = vrot.slane %v2983_v14, %v6176_v34  ;;  %v3000_v0 = vrot.slane %v2984_v43, %v6176_v34  ;;  %v2557_v18 = vrot.slane %v6373_v59, %v5580_v25 }
 0x451   :  { %v3007_v8 = vrot.slane %v2985_v31, %v6176_v34  ;;  %v3014_v57 = vrot.slane %v2986_v42, %v6176_v34  ;;  %v2561_v62 = vrot.slane %v6373_v59, %v5939_v36  ;;  %v2565_v61 = vrot.slane %v6373_v59, %v5942_v24 }
 0x452   :  { %v3129_v56 = vcombine.low %v3121_v12, %v3128_v52  ;;  %v3015_v37 = vcombine.low %v2993_v44, %v3000_v0  ;;  %v2569_v63 = vrot.slane %v6373_v59, %v5955_v30  ;;  %v2573_v47 = vrot.slane %v6373_v59, %v6169_v35 }
 0x453   :  { %v3016_v41 = vcombine.low %v3007_v8, %v3014_v57  ;;  %v2577_v29 = vrot.slane %v6373_v59, %v6172_v2  ;;  %v4012_v7 = vcombine.low %v2549_v9, %v2553_v49  ;;  %v4013_v1 = vcombine.low %v2557_v18, %v2561_v62 }
 0x454   :  { %4328 = vperm.xlu1 %4797, %v3129_v56   ;;  %v3023_v28 = vrot.slane %v3015_v37, %v6176_v34  ;;  %v4014_v46 = vcombine.low %v2565_v61, %v2569_v63  ;;  %v6576_v39 = vadd.f32 %v6166_v23, %v1599_v32  ;;  %v6579_v21 = vadd.f32 %v6166_v23, %v1644_v60  ;;  %v1647_v37 = vpop.xlane.xlu1 %1646 }
 0x455   :  { %v3030_v38 = vrot.slane %v3016_v41, %v6176_v34  ;;  %v4015_v48 = vcombine.low %v2573_v47, %v2577_v29  ;;  %v4022_v27 = vrot.slane %v4012_v7, %v6176_v34  ;;  %v4029_v53 = vrot.slane %v4013_v1, %v6176_v34 }
 0x456   :  { %v4036_v59 = vrot.slane %v4014_v46, %v6176_v34  ;;  %v2037_v19 = vrot.slane %v6341_v26, %v5432_v15  ;;  %v2041_v5 = vrot.slane %v6341_v26, %v5440_v3  ;;  %v2045_v10 = vrot.slane %v6341_v26, %v5580_v25 }
 0x457   :  { %v3031_v22 = vcombine.low %v3023_v28, %v3030_v38  ;;  %v4043_v17 = vrot.slane %v4015_v48, %v6176_v34  ;;  %v4044_v33 = vcombine.low %v4022_v27, %v4029_v53  ;;  %v2049_v55 = vrot.slane %v6341_v26, %v5939_v36 }
 0x458   :  { %v2053_v11 = vrot.slane %v6341_v26, %v5942_v24  ;;  %v2057_v12 = vrot.slane %v6341_v26, %v5955_v30  ;;  %v2061_v14 = vrot.slane %v6341_v26, %v6169_v35  ;;  %v2065_v43 = vrot.slane %v6341_v26, %v6172_v2 }
 0x459   :  { %4322 = vperm.xlu1 %4797, %v3031_v22   ;;  %v4045_v31 = vcombine.low %v4036_v59, %v4043_v17  ;;  %v4052_v42 = vrot.slane %v4044_v33, %v6176_v34  ;;  %v3228_v9 = vcombine.low %v2037_v19, %v2041_v5  ;;  %v3229_v49 = vcombine.low %v2045_v10, %v2049_v55 }
 0x45a   :  { %v3230_v52 = vcombine.low %v2053_v11, %v2057_v12  ;;  %v3231_v44 = vcombine.low %v2061_v14, %v2065_v43  ;;  %v2581_v0 = vrot.slane %v6447_v4, %v5432_v15  ;;  %v2585_v18 = vrot.slane %v6447_v4, %v5440_v3 }
 0x45b   :  { %v4059_v8 = vrot.slane %v4045_v31, %v6176_v34  ;;  %v3238_v57 = vrot.slane %v3228_v9, %v6176_v34  ;;  %v3245_v26 = vrot.slane %v3229_v49, %v6176_v34  ;;  %v2589_v62 = vrot.slane %v6447_v4, %v5580_v25 }
 0x45c   :  { %v3252_v61 = vrot.slane %v3230_v52, %v6176_v34  ;;  %v3259_v32 = vrot.slane %v3231_v44, %v6176_v34  ;;  %v2593_v60 = vrot.slane %v6447_v4, %v5939_v36  ;;  %v2597_v56 = vrot.slane %v6447_v4, %v5942_v24 }
 0x45d   :  { %v4060_v63 = vcombine.low %v4052_v42, %v4059_v8  ;;  %v3260_v47 = vcombine.low %v3238_v57, %v3245_v26  ;;  %v2601_v41 = vrot.slane %v6447_v4, %v5955_v30  ;;  %v2605_v29 = vrot.slane %v6447_v4, %v6169_v35 }
 0x45e   :  { %v3261_v7 = vcombine.low %v3252_v61, %v3259_v32  ;;  %v2609_v1 = vrot.slane %v6447_v4, %v6172_v2  ;;  %v4061_v28 = vcombine.low %v2581_v0, %v2585_v18  ;;  %v4062_v46 = vcombine.low %v2589_v62, %v2593_v60 }
 0x45f   :  { %4385 = vperm.xlu0 %4798, %v4060_v63   ;;  %v3268_v38 = vrot.slane %v3260_v47, %v6176_v34  ;;  %v4063_v48 = vcombine.low %v2597_v56, %v2601_v41  ;;  %v6626_v27 = vadd.f32 %v6166_v23, %v1647_v37  ;;  %v2005_v53 = vrot.slane %v6476_v40, %v5432_v15  ;;  %v1593_v47 = vpop.xlane.xlu1 %1592 }
 0x460   :  { %v3275_v59 = vrot.slane %v3261_v7, %v6176_v34  ;;  %v4064_v19 = vcombine.low %v2605_v29, %v2609_v1  ;;  %v4071_v5 = vrot.slane %v4061_v28, %v6176_v34  ;;  %v4078_v10 = vrot.slane %v4062_v46, %v6176_v34 }
 0x461   :  { %v4085_v4 = vrot.slane %v4063_v48, %v6176_v34  ;;  %v2009_v22 = vrot.slane %v6476_v40, %v5440_v3  ;;  %v2013_v17 = vrot.slane %v6476_v40, %v5580_v25  ;;  %v2017_v33 = vrot.slane %v6476_v40, %v5939_v36 }
 0x462   :  { %v3276_v55 = vcombine.low %v3268_v38, %v3275_v59  ;;  %v4092_v11 = vrot.slane %v4064_v19, %v6176_v34  ;;  %v4093_v12 = vcombine.low %v4071_v5, %v4078_v10  ;;  %v2021_v14 = vrot.slane %v6476_v40, %v5942_v24 }
 0x463   :  { %v2025_v43 = vrot.slane %v6476_v40, %v5955_v30  ;;  %v2029_v31 = vrot.slane %v6476_v40, %v6169_v35  ;;  %v2033_v42 = vrot.slane %v6476_v40, %v6172_v2  ;;  %v3179_v9 = vcombine.low %v2005_v53, %v2009_v22 }
 0x464   :  { %4337 = vperm.xlu1 %4797, %v3276_v55   ;;  %v4094_v49 = vcombine.low %v4085_v4, %v4092_v11  ;;  %v4101_v52 = vrot.slane %v4093_v12, %v6176_v34  ;;  %v3180_v44 = vcombine.low %v2013_v17, %v2017_v33  ;;  %v1973_v0 = vrot.slane %v6395_v50, %v5432_v15 }
 0x465   :  { %v3181_v18 = vcombine.low %v2021_v14, %v2025_v43  ;;  %v3182_v8 = vcombine.low %v2029_v31, %v2033_v42  ;;  %v3189_v57 = vrot.slane %v3179_v9, %v6176_v34  ;;  %v1977_v26 = vrot.slane %v6395_v50, %v5440_v3 }
 0x466   :  { %v4108_v62 = vrot.slane %v4094_v49, %v6176_v34  ;;  %v3196_v40 = vrot.slane %v3180_v44, %v6176_v34  ;;  %v1981_v61 = vrot.slane %v6395_v50, %v5580_v25  ;;  %v1985_v32 = vrot.slane %v6395_v50, %v5939_v36 }
 0x467   :  { %v3203_v60 = vrot.slane %v3181_v18, %v6176_v34  ;;  %v3210_v56 = vrot.slane %v3182_v8, %v6176_v34  ;;  %v1989_v37 = vrot.slane %v6395_v50, %v5942_v24  ;;  %v1993_v63 = vrot.slane %v6395_v50, %v5955_v30 }
 0x468   :  { %v4109_v41 = vcombine.low %v4101_v52, %v4108_v62  ;;  %v3211_v29 = vcombine.low %v3189_v57, %v3196_v40  ;;  %v1997_v7 = vrot.slane %v6395_v50, %v6169_v35  ;;  %v2001_v1 = vrot.slane %v6395_v50, %v6172_v2 }
 0x469   :  { %v3212_v28 = vcombine.low %v3203_v60, %v3210_v56  ;;  %v3130_v46 = vcombine.low %v1973_v0, %v1977_v26  ;;  %v3131_v38 = vcombine.low %v1981_v61, %v1985_v32  ;;  %v3132_v48 = vcombine.low %v1989_v37, %v1993_v63  ;;  %v1641_v56 = vpop.xlane.xlu1 %1640 }
 0x46a   :  { %4388 = vperm.xlu0 %4798, %v4109_v41   ;;  %v3219_v53 = vrot.slane %v3211_v29, %v6176_v34  ;;  %v3133_v59 = vcombine.low %v1997_v7, %v2001_v1  ;;  %v6673_v19 = vadd.f32 %v6166_v23, %v1593_v47  ;;  %v2517_v5 = vrot.slane %v6526_v6, %v5432_v15 }
 0x46b   :  { %v3226_v10 = vrot.slane %v3212_v28, %v6176_v34  ;;  %v3140_v4 = vrot.slane %v3130_v46, %v6176_v34  ;;  %v3147_v50 = vrot.slane %v3131_v38, %v6176_v34  ;;  %v3154_v22 = vrot.slane %v3132_v48, %v6176_v34 }
 0x46c   :  { %v3161_v17 = vrot.slane %v3133_v59, %v6176_v34  ;;  %v2521_v33 = vrot.slane %v6526_v6, %v5440_v3  ;;  %v2525_v55 = vrot.slane %v6526_v6, %v5580_v25  ;;  %v2529_v11 = vrot.slane %v6526_v6, %v5939_v36 }
 0x46d   :  { %v3227_v12 = vcombine.low %v3219_v53, %v3226_v10  ;;  %v3162_v14 = vcombine.low %v3140_v4, %v3147_v50  ;;  %v2533_v43 = vrot.slane %v6526_v6, %v5942_v24  ;;  %v2537_v31 = vrot.slane %v6526_v6, %v5955_v30 }
 0x46e   :  { %v3163_v42 = vcombine.low %v3154_v22, %v3161_v17  ;;  %v2541_v9 = vrot.slane %v6526_v6, %v6169_v35  ;;  %v2545_v49 = vrot.slane %v6526_v6, %v6172_v2  ;;  %v3963_v52 = vcombine.low %v2517_v5, %v2521_v33 }
 0x46f   :  { %4334 = vperm.xlu0 %4798, %v3227_v12   ;;  %v3170_v44 = vrot.slane %v3162_v14, %v6176_v34  ;;  %v3964_v0 = vcombine.low %v2525_v55, %v2529_v11  ;;  %v3965_v18 = vcombine.low %v2533_v43, %v2537_v31  ;;  %v2485_v8 = vrot.slane %v6414_v54, %v5432_v15 }
 0x470   :  { %v3177_v57 = vrot.slane %v3163_v42, %v6176_v34  ;;  %v3966_v26 = vcombine.low %v2541_v9, %v2545_v49  ;;  %v3973_v62 = vrot.slane %v3963_v52, %v6176_v34  ;;  %v2489_v40 = vrot.slane %v6414_v54, %v5440_v3 }
 0x471   :  { %v3980_v61 = vrot.slane %v3964_v0, %v6176_v34  ;;  %v3987_v6 = vrot.slane %v3965_v18, %v6176_v34  ;;  %v2493_v32 = vrot.slane %v6414_v54, %v5580_v25  ;;  %v2497_v60 = vrot.slane %v6414_v54, %v5939_v36 }
 0x472   :  { %v3178_v37 = vcombine.low %v3170_v44, %v3177_v57  ;;  %v3994_v63 = vrot.slane %v3966_v26, %v6176_v34  ;;  %v2501_v47 = vrot.slane %v6414_v54, %v5942_v24  ;;  %v2505_v41 = vrot.slane %v6414_v54, %v5955_v30 }
 0x473   :  { %v3995_v29 = vcombine.low %v3973_v62, %v3980_v61  ;;  %v2509_v7 = vrot.slane %v6414_v54, %v6169_v35  ;;  %v2513_v1 = vrot.slane %v6414_v54, %v6172_v2  ;;  %v3914_v28 = vcombine.low %v2485_v8, %v2489_v40 }
 0x474   :  { %4331 = vperm.xlu1 %4797, %v3178_v37   ;;  %v3996_v46 = vcombine.low %v3987_v6, %v3994_v63  ;;  %v3915_v38 = vcombine.low %v2493_v32, %v2497_v60  ;;  %v3916_v48 = vcombine.low %v2501_v47, %v2505_v41  ;;  %v6719_v53 = vadd.f32 %v6166_v23, %v1641_v56 }
 0x475   :  { %v4003_v59 = vrot.slane %v3995_v29, %v6176_v34  ;;  %v3917_v5 = vcombine.low %v2509_v7, %v2513_v1  ;;  %v3924_v10 = vrot.slane %v3914_v28, %v6176_v34  ;;  %v2069_v4 = vrot.slane %v6409_v45, %v5432_v15 }
 0x476   :  { %v4010_v50 = vrot.slane %v3996_v46, %v6176_v34  ;;  %v3931_v54 = vrot.slane %v3915_v38, %v6176_v34  ;;  %v3938_v22 = vrot.slane %v3916_v48, %v6176_v34  ;;  %v2073_v17 = vrot.slane %v6409_v45, %v5440_v3 }
 0x477   :  { %v3945_v23 = vrot.slane %v3917_v5, %v6176_v34  ;;  %v2077_v33 = vrot.slane %v6409_v45, %v5580_v25  ;;  %v2081_v55 = vrot.slane %v6409_v45, %v5939_v36  ;;  %v2085_v11 = vrot.slane %v6409_v45, %v5942_v24 }
 0x478   :  { %v4011_v12 = vcombine.low %v4003_v59, %v4010_v50  ;;  %v3946_v14 = vcombine.low %v3924_v10, %v3931_v54  ;;  %v2089_v43 = vrot.slane %v6409_v45, %v5955_v30  ;;  %v2093_v31 = vrot.slane %v6409_v45, %v6169_v35 }
 0x479   :  { %v3947_v42 = vcombine.low %v3938_v22, %v3945_v23  ;;  %v2097_v9 = vrot.slane %v6409_v45, %v6172_v2  ;;  %v3277_v49 = vcombine.low %v2069_v4, %v2073_v17  ;;  %v3278_v52 = vcombine.low %v2077_v33, %v2081_v55 }
 0x47a   :  { %4382 = vperm.xlu0 %4798, %v4011_v12   ;;  %v3954_v44 = vrot.slane %v3946_v14, %v6176_v34  ;;  %v3279_v0 = vcombine.low %v2085_v11, %v2089_v43  ;;  %v2677_v18 = vrot.slane %v6579_v21, %v5432_v15  ;;  %v2681_v8 = vrot.slane %v6579_v21, %v5440_v3 }
 0x47b   :  { %v3961_v57 = vrot.slane %v3947_v42, %v6176_v34  ;;  %v3280_v26 = vcombine.low %v2093_v31, %v2097_v9  ;;  %v3287_v62 = vrot.slane %v3277_v49, %v6176_v34  ;;  %v3294_v40 = vrot.slane %v3278_v52, %v6176_v34 }
 0x47c   :  { %v3301_v45 = vrot.slane %v3279_v0, %v6176_v34  ;;  %v2685_v61 = vrot.slane %v6579_v21, %v5580_v25  ;;  %v2689_v6 = vrot.slane %v6579_v21, %v5939_v36  ;;  %v2693_v32 = vrot.slane %v6579_v21, %v5942_v24 }
 0x47d   :  { %v3962_v60 = vcombine.low %v3954_v44, %v3961_v57  ;;  %v3308_v56 = vrot.slane %v3280_v26, %v6176_v34  ;;  %v3309_v37 = vcombine.low %v3287_v62, %v3294_v40  ;;  %v2697_v63 = vrot.slane %v6579_v21, %v5955_v30 }
 0x47e   :  { %v2701_v47 = vrot.slane %v6579_v21, %v6169_v35  ;;  %v2705_v41 = vrot.slane %v6579_v21, %v6172_v2  ;;  %v4208_v29 = vcombine.low %v2677_v18, %v2681_v8  ;;  %v4209_v7 = vcombine.low %v2685_v61, %v2689_v6 }
 0x47f   :  { %4379 = vperm.xlu1 %4797, %v3962_v60   ;;  %v3310_v1 = vcombine.low %v3301_v45, %v3308_v56  ;;  %v3317_v28 = vrot.slane %v3309_v37, %v6176_v34  ;;  %v4210_v46 = vcombine.low %v2693_v32, %v2697_v63  ;;  %v2165_v38 = vrot.slane %v6450_v51, %v5432_v15 }
 0x480   :  { %v4211_v48 = vcombine.low %v2701_v47, %v2705_v41  ;;  %v4218_v59 = vrot.slane %v4208_v29, %v6176_v34  ;;  %v4225_v5 = vrot.slane %v4209_v7, %v6176_v34  ;;  %v2169_v10 = vrot.slane %v6450_v51, %v5440_v3 }
 0x481   :  { %v3324_v21 = vrot.slane %v3310_v1, %v6176_v34  ;;  %v4232_v4 = vrot.slane %v4210_v46, %v6176_v34  ;;  %v2173_v50 = vrot.slane %v6450_v51, %v5580_v25  ;;  %v2177_v54 = vrot.slane %v6450_v51, %v5939_v36 }
 0x482   :  { %v4239_v22 = vrot.slane %v4211_v48, %v6176_v34  ;;  %v4240_v17 = vcombine.low %v4218_v59, %v4225_v5  ;;  %v2181_v23 = vrot.slane %v6450_v51, %v5942_v24  ;;  %v2185_v33 = vrot.slane %v6450_v51, %v5955_v30 }
 0x483   :  { %v3325_v55 = vcombine.low %v3317_v28, %v3324_v21  ;;  %v2189_v11 = vrot.slane %v6450_v51, %v6169_v35  ;;  %v2193_v12 = vrot.slane %v6450_v51, %v6172_v2  ;;  %v3424_v14 = vcombine.low %v2165_v38, %v2169_v10 }
 0x484   :  { %v4241_v43 = vcombine.low %v4232_v4, %v4239_v22  ;;  %v4248_v31 = vrot.slane %v4240_v17, %v6176_v34  ;;  %v3425_v42 = vcombine.low %v2173_v50, %v2177_v54  ;;  %v3426_v9 = vcombine.low %v2181_v23, %v2185_v33 }
 0x485   :  { %4340 = vperm.xlu1 %4797, %v3325_v55   ;;  %v3427_v49 = vcombine.low %v2189_v11, %v2193_v12  ;;  %v3434_v52 = vrot.slane %v3424_v14, %v6176_v34  ;;  %v2613_v44 = vrot.slane %v6529_v13, %v5432_v15  ;;  %v2617_v0 = vrot.slane %v6529_v13, %v5440_v3 }
 0x486   :  { %v4255_v18 = vrot.slane %v4241_v43, %v6176_v34  ;;  %v3441_v51 = vrot.slane %v3425_v42, %v6176_v34  ;;  %v3448_v8 = vrot.slane %v3426_v9, %v6176_v34  ;;  %v2621_v57 = vrot.slane %v6529_v13, %v5580_v25 }
 0x487   :  { %v3455_v26 = vrot.slane %v3427_v49, %v6176_v34  ;;  %v2625_v62 = vrot.slane %v6529_v13, %v5939_v36  ;;  %v2629_v40 = vrot.slane %v6529_v13, %v5942_v24  ;;  %v2633_v45 = vrot.slane %v6529_v13, %v5955_v30 }
 0x488   :  { %v4256_v61 = vcombine.low %v4248_v31, %v4255_v18  ;;  %v3456_v6 = vcombine.low %v3434_v52, %v3441_v51  ;;  %v2637_v32 = vrot.slane %v6529_v13, %v6169_v35  ;;  %v2641_v60 = vrot.slane %v6529_v13, %v6172_v2 }
 0x489   :  { %v3457_v56 = vcombine.low %v3448_v8, %v3455_v26  ;;  %v4110_v37 = vcombine.low %v2613_v44, %v2617_v0  ;;  %v4111_v63 = vcombine.low %v2621_v57, %v2625_v62  ;;  %v4112_v47 = vcombine.low %v2629_v40, %v2633_v45 }
 0x48a   :  { %4397 = vperm.xlu0 %4798, %v4256_v61   ;;  %v3464_v41 = vrot.slane %v3456_v6, %v6176_v34  ;;  %v4113_v29 = vcombine.low %v2637_v32, %v2641_v60  ;;  %v2101_v7 = vrot.slane %v6479_v20, %v5432_v15  ;;  %v2105_v1 = vrot.slane %v6479_v20, %v5440_v3 }
 0x48b   :  { %v3471_v28 = vrot.slane %v3457_v56, %v6176_v34  ;;  %v4120_v46 = vrot.slane %v4110_v37, %v6176_v34  ;;  %v4127_v13 = vrot.slane %v4111_v63, %v6176_v34  ;;  %v4134_v38 = vrot.slane %v4112_v47, %v6176_v34 }
 0x48c   :  { %v4141_v48 = vrot.slane %v4113_v29, %v6176_v34  ;;  %v2109_v59 = vrot.slane %v6479_v20, %v5580_v25  ;;  %v2113_v5 = vrot.slane %v6479_v20, %v5939_v36  ;;  %v2117_v10 = vrot.slane %v6479_v20, %v5942_v24 }
 0x48d   :  { %v3472_v21 = vcombine.low %v3464_v41, %v3471_v28  ;;  %v4142_v4 = vcombine.low %v4120_v46, %v4127_v13  ;;  %v2121_v50 = vrot.slane %v6479_v20, %v5955_v30  ;;  %v2125_v54 = vrot.slane %v6479_v20, %v6169_v35 }
 0x48e   :  { %v4143_v22 = vcombine.low %v4134_v38, %v4141_v48  ;;  %v2129_v17 = vrot.slane %v6479_v20, %v6172_v2  ;;  %v3326_v23 = vcombine.low %v2101_v7, %v2105_v1  ;;  %v3327_v33 = vcombine.low %v2109_v59, %v2113_v5 }
 0x48f   :  { %4349 = vperm.xlu1 %4797, %v3472_v21   ;;  %v4150_v55 = vrot.slane %v4142_v4, %v6176_v34  ;;  %v3328_v11 = vcombine.low %v2117_v10, %v2121_v50  ;;  %v2133_v12 = vrot.slane %v6673_v19, %v5432_v15  ;;  %v2137_v14 = vrot.slane %v6673_v19, %v5440_v3 }
 0x490   :  { %v4157_v43 = vrot.slane %v4143_v22, %v6176_v34  ;;  %v3329_v31 = vcombine.low %v2125_v54, %v2129_v17  ;;  %v3336_v42 = vrot.slane %v3326_v23, %v6176_v34  ;;  %v3343_v9 = vrot.slane %v3327_v33, %v6176_v34 }
 0x491   :  { %v3350_v20 = vrot.slane %v3328_v11, %v6176_v34  ;;  %v2141_v49 = vrot.slane %v6673_v19, %v5580_v25  ;;  %v2145_v52 = vrot.slane %v6673_v19, %v5939_v36  ;;  %v2149_v44 = vrot.slane %v6673_v19, %v5942_v24 }
 0x492   :  { %v4158_v0 = vcombine.low %v4150_v55, %v4157_v43  ;;  %v3357_v18 = vrot.slane %v3329_v31, %v6176_v34  ;;  %v3358_v51 = vcombine.low %v3336_v42, %v3343_v9  ;;  %v2153_v8 = vrot.slane %v6673_v19, %v5955_v30 }
 0x493   :  { %v2157_v57 = vrot.slane %v6673_v19, %v6169_v35  ;;  %v2161_v26 = vrot.slane %v6673_v19, %v6172_v2  ;;  %v3375_v62 = vcombine.low %v2133_v12, %v2137_v14  ;;  %v3376_v40 = vcombine.low %v2141_v49, %v2145_v52 }
 0x494   :  { %4391 = vperm.xlu0 %4798, %v4158_v0   ;;  %v3359_v45 = vcombine.low %v3350_v20, %v3357_v18  ;;  %v3366_v61 = vrot.slane %v3358_v51, %v6176_v34  ;;  %v3377_v6 = vcombine.low %v2149_v44, %v2153_v8  ;;  %v2645_v32 = vrot.slane %v6719_v53, %v5432_v15 }
 0x495   :  { %v3378_v60 = vcombine.low %v2157_v57, %v2161_v26  ;;  %v3385_v56 = vrot.slane %v3375_v62, %v6176_v34  ;;  %v3392_v37 = vrot.slane %v3376_v40, %v6176_v34  ;;  %v2649_v63 = vrot.slane %v6719_v53, %v5440_v3 }
 0x496   :  { %v3373_v19 = vrot.slane %v3359_v45, %v6176_v34  ;;  %v3399_v47 = vrot.slane %v3377_v6, %v6176_v34  ;;  %v2653_v41 = vrot.slane %v6719_v53, %v5580_v25  ;;  %v2657_v29 = vrot.slane %v6719_v53, %v5939_v36 }
 0x497   :  { %v3406_v7 = vrot.slane %v3378_v60, %v6176_v34  ;;  %v3407_v1 = vcombine.low %v3385_v56, %v3392_v37  ;;  %v2661_v28 = vrot.slane %v6719_v53, %v5942_v24  ;;  %v2665_v46 = vrot.slane %v6719_v53, %v5955_v30 }
 0x498   :  { %v3374_v13 = vcombine.low %v3366_v61, %v3373_v19  ;;  %v2669_v38 = vrot.slane %v6719_v53, %v6169_v35  ;;  %v2673_v48 = vrot.slane %v6719_v53, %v6172_v2  ;;  %v4159_v59 = vcombine.low %v2645_v32, %v2649_v63 }
 0x499   :  { %v3408_v5 = vcombine.low %v3399_v47, %v3406_v7  ;;  %v3415_v10 = vrot.slane %v3407_v1, %v6176_v34  ;;  %v4160_v21 = vcombine.low %v2653_v41, %v2657_v29  ;;  %v4161_v4 = vcombine.low %v2661_v28, %v2665_v46 }
 0x49a   :  { %4343 = vperm.xlu1 %4797, %v3374_v13   ;;  %v4162_v50 = vcombine.low %v2669_v38, %v2673_v48  ;;  %v4169_v54 = vrot.slane %v4159_v59, %v6176_v34  ;;  %v2197_v22 = vrot.slane %v6576_v39, %v5432_v15  ;;  %v2201_v17 = vrot.slane %v6576_v39, %v5440_v3  ;;  %v4314_v38 = vpop.permute.xlu1 %4313 }
 0x49b   :  { %v3422_v23 = vrot.slane %v3408_v5, %v6176_v34  ;;  %v4176_v53 = vrot.slane %v4160_v21, %v6176_v34  ;;  %v4183_v33 = vrot.slane %v4161_v4, %v6176_v34  ;;  %v2205_v55 = vrot.slane %v6576_v39, %v5580_v25 }
 0x49c   :  { %v4190_v11 = vrot.slane %v4162_v50, %v6176_v34  ;;  %v2209_v12 = vrot.slane %v6576_v39, %v5939_v36  ;;  %v2213_v14 = vrot.slane %v6576_v39, %v5942_v24  ;;  %v2217_v43 = vrot.slane %v6576_v39, %v5955_v30 }
 0x49d   :  { %v3423_v31 = vcombine.low %v3415_v10, %v3422_v23  ;;  %v4191_v42 = vcombine.low %v4169_v54, %v4176_v53  ;;  %v2221_v9 = vrot.slane %v6576_v39, %v6169_v35  ;;  %v2225_v20 = vrot.slane %v6576_v39, %v6172_v2 }
 0x49e   :  { %v4192_v49 = vcombine.low %v4183_v33, %v4190_v11  ;;  %v3473_v52 = vcombine.low %v2197_v22, %v2201_v17  ;;  %v3474_v44 = vcombine.low %v2205_v55, %v2209_v12  ;;  %v3475_v0 = vcombine.low %v2213_v14, %v2217_v43  ;;  %v4362_v48 = vpop.permute.xlu1 %4361  ;;  %v4308_v22 = vpop.permute.xlu0 %4307 }
 0x49f   :  { %4346 = vperm.xlu1 %4797, %v3423_v31   ;;  %v4199_v18 = vrot.slane %v4191_v42, %v6176_v34  ;;  %v3476_v51 = vcombine.low %v2221_v9, %v2225_v20  ;;  %v2709_v8 = vrot.slane %v6626_v27, %v5432_v15  ;;  %v2713_v57 = vrot.slane %v6626_v27, %v5440_v3 }
 0x4a0   :  { %v4206_v26 = vrot.slane %v4192_v49, %v6176_v34  ;;  %v3483_v62 = vrot.slane %v3473_v52, %v6176_v34  ;;  %v3490_v39 = vrot.slane %v3474_v44, %v6176_v34  ;;  %v3497_v40 = vrot.slane %v3475_v0, %v6176_v34 }
 0x4a1   :  { %v3504_v45 = vrot.slane %v3476_v51, %v6176_v34  ;;  %v2717_v61 = vrot.slane %v6626_v27, %v5580_v25  ;;  %v2721_v6 = vrot.slane %v6626_v27, %v5939_v36  ;;  %v2725_v15 = vrot.slane %v6626_v27, %v5942_v24 }
 0x4a2   :  { %v4207_v3 = vcombine.low %v4199_v18, %v4206_v26  ;;  %v3505_v32 = vcombine.low %v3483_v62, %v3490_v39  ;;  %v2729_v60 = vrot.slane %v6626_v27, %v5955_v30  ;;  %v2733_v56 = vrot.slane %v6626_v27, %v6169_v35  ;;  %v4356_v59 = vpop.permute.xlu1 %4355  ;;  %v4365_v17 = vpop.permute.xlu0 %4364 }
 0x4a3   :  { %v3506_v37 = vcombine.low %v3497_v40, %v3504_v45  ;;  %v2737_v63 = vrot.slane %v6626_v27, %v6172_v2  ;;  %v4257_v19 = vcombine.low %v2709_v8, %v2713_v57  ;;  %v4258_v25 = vcombine.low %v2717_v61, %v2721_v6 }
 0x4a4   :  { %4394 = vperm.xlu0 %4798, %v4207_v3   ;;  %v3513_v36 = vrot.slane %v3505_v32, %v6176_v34  ;;  %v4259_v47 = vcombine.low %v2725_v15, %v2729_v60  ;;  %v6938_v14 = vand.u32 127, %v503_v16 }
 0x4a5   :  { %v3520_v24 = vrot.slane %v3506_v37, %v6176_v34  ;;  %v4260_v41 = vcombine.low %v2733_v56, %v2737_v63  ;;  %v4267_v29 = vrot.slane %v4257_v19, %v6176_v34  ;;  %v4274_v30 = vrot.slane %v4258_v25, %v6176_v34 }
 0x4a6   :  { %v4281_v7 = vrot.slane %v4259_v47, %v6176_v34  ;;  %v4317_v5 = vpop.permute.xlu1 %4316  ;;  %v4408_v42 = vadd.s32 4294967288, %v6938_v14  ;;  %v4415_v52 = vadd.s32 4294967280, %v6938_v14  ;;  %v4406_v44 = vsub.s32 %v6938_v14, %v5429_v58 }
 0x4a7   :  { %v3521_v35 = vcombine.low %v3513_v36, %v3520_v24  ;;  %v4288_v1 = vrot.slane %v4260_v41, %v6176_v34  ;;  %v4289_v28 = vcombine.low %v4267_v29, %v4274_v30  ;;  %v4422_v0 = vadd.s32 4294967272, %v6938_v14 }
 0x4a8   :  { %v4411_v9 = vsub.s32 %v4408_v42, %v5429_v58  ;;  %v4429_v51 = vadd.s32 4294967264, %v6938_v14  ;;  %v4418_v8 = vsub.s32 %v4415_v52, %v5429_v58  ;;  %v4436_v26 = vadd.s32 4294967256, %v6938_v14 }
 0x4a9   :  { %4352 = vperm.xlu1 %4797, %v3521_v35   ;;  %v4290_v2 = vcombine.low %v4281_v7, %v4288_v1  ;;  %v4297_v27 = vrot.slane %v4289_v28, %v6176_v34  ;;  %v4407_v62 = vrot.slane %v4308_v22, %v4406_v44  ;;  %v4516_v45 = vrot.slane %v4356_v59, %v4406_v44 }
 0x4aa   :  { %v4311_v10 = vpop.permute.xlu1 %4310  ;;  %v4425_v61 = vsub.s32 %v4422_v0, %v5429_v58  ;;  %v4432_v15 = vsub.s32 %v4429_v51, %v5429_v58  ;;  %v4419_v3 = vrot.slane %v4314_v38, %v4418_v8  ;;  %v4439_v60 = vsub.s32 %v4436_v26, %v5429_v58 }
 0x4ab   :  { %v4304_v46 = vrot.slane %v4290_v2, %v6176_v34  ;;  %v4359_v53 = vpop.permute.xlu0 %4358  ;;  %v4412_v18 = vrot.slane %v4311_v10, %v4411_v9  ;;  %v4525_v56 = vrot.slane %v4362_v48, %v4418_v8  ;;  %v4443_v37 = vadd.s32 4294967248, %v6938_v14 }
 0x4ac   :  { %v4520_v57 = vrot.slane %v4359_v53, %v4411_v9  ;;  %v4426_v63 = vrot.slane %v4317_v5, %v4425_v61  ;;  %v4530_v19 = vrot.slane %v4365_v17, %v4425_v61  ;;  %v4457_v41 = vadd.s32 4294967232, %v6938_v14 }
 0x4ad   :  { %v4305_v13 = vcombine.low %v4297_v27, %v4304_v46  ;;  %v4414_v6 = vsel %vm4413_vm0, %v4412_v18, %v4407_v62  ;;  %v4450_v7 = vadd.s32 4294967240, %v6938_v14  ;;  %v4446_v28 = vsub.s32 %v4443_v37, %v5429_v58 }
 0x4ae   :  { %v4521_v32 = vsel %vm4413_vm0, %v4520_v57, %v4516_v45  ;;  %v4421_v25 = vsel %vm4420_vm5, %v4419_v3, %v4414_v6  ;;  %v4464_v46 = vadd.s32 4294967224, %v6938_v14  ;;  %v4460_v48 = vsub.s32 %v4457_v41, %v5429_v58 }
 0x4af   :  { %4400 = vperm.xlu0 %4798, %v4305_v13   ;;  %v4526_v36 = vsel %vm4420_vm5, %v4525_v56, %v4521_v32  ;;  %v4428_v2 = vsel %vm4427_vm6, %v4426_v63, %v4421_v25  ;;  %v4453_v59 = vsub.s32 %v4450_v7, %v5429_v58  ;;  %v4471_v53 = vadd.s32 4294967216, %v6938_v14 }
 0x4b0   :  { %v4531_v27 = vsel %vm4427_vm6, %v4530_v19, %v4526_v36  ;;  %v4492_v0 = vadd.s32 4294967192, %v6938_v14  ;;  %v4485_v18 = vadd.s32 4294967200, %v6938_v14  ;;  %v4506_v6 = vadd.s32 4294967176, %v6938_v14 }
 0x4b1   :  { %v6927_v21 = vpop.permute.xlu1 %4325  ;;  %v4474_v62 = vsub.s32 %v4471_v53, %v5429_v58  ;;  %v4499_v37 = vadd.s32 4294967184, %v6938_v14 }
 0x4b2   :  { %v4509_v36 = vsub.s32 %v4506_v6, %v5429_v58 }
 0x4b6   :  { %v6929_v4 = vpop.permute.xlu1 %4373 }
 0x4bd   :  { %v6933_v55 = vpop.permute.xlu0 %4376 }
 0x4c2   :  { %v4320_v50 = vpop.permute.xlu1 %4319 }
 0x4c3   :  { %v4433_v47 = vrot.slane %v4320_v50, %v4432_v15  ;;  %v4447_v50 = vrot.slane %v6927_v21, %v4446_v28  ;;  %v4550_v21 = vrot.slane %v6933_v55, %v4453_v59 }
 0x4c5   :  { %v4435_v13 = vsel %vm4434_vm7, %v4433_v47, %v4428_v2 }
 0x4c8   :  { %v4368_v54 = vpop.permute.xlu1 %4367 }
 0x4c9   :  { %v4535_v24 = vrot.slane %v4368_v54, %v4432_v15  ;;  %v4545_v54 = vrot.slane %v6929_v4, %v4446_v28  ;;  %v4488_v15 = vsub.s32 %v4485_v18, %v5429_v58 }
 0x4cb   :  { %v4536_v38 = vsel %vm4434_vm7, %v4535_v24, %v4531_v27 }
 0x4cd   :  { %v4371_v11 = vpop.permute.xlu0 %4370 }
 0x4ce   :  { %v4540_v35 = vrot.slane %v4371_v11, %v4439_v60  ;;  %v4467_v11 = vsub.s32 %v4464_v46, %v5429_v58 }
 0x4d0   :  { %v4541_v5 = vsel %vm4441_vm8, %v4540_v35, %v4536_v38 }
 0x4d1   :  { %v4546_v42 = vsel %vm4448_vm9, %v4545_v54, %v4541_v5 }
 0x4d2   :  { %v4551_v57 = vsel %vm4455_vm10, %v4550_v21, %v4546_v42 }
 0x4d3   :  { %v6931_v23 = vpop.permute.xlu1 %4328 }
 0x4d4   :  { %v4454_v4 = vrot.slane %v6931_v23, %v4453_v59  ;;  %v4495_v23 = vsub.s32 %v4492_v0, %v5429_v58 }
 0x4d8   :  { %v4323_v33 = vpop.permute.xlu1 %4322 }
 0x4d9   :  { %v4440_v1 = vrot.slane %v4323_v33, %v4439_v60  ;;  %v4478_v33 = vadd.s32 4294967208, %v6938_v14 }
 0x4db   :  { %v4442_v10 = vsel %vm4441_vm8, %v4440_v1, %v4435_v13  ;;  %v4481_v55 = vsub.s32 %v4478_v33, %v5429_v58 }
 0x4dc   :  { %v4449_v9 = vsel %vm4448_vm9, %v4447_v50, %v4442_v10 }
 0x4dd   :  { %v4456_v51 = vsel %vm4455_vm10, %v4454_v4, %v4449_v9 }
 0x4de   :  { %v6940_v43 = vpop.permute.xlu0 %4385 }
 0x4df   :  { %v4565_v60 = vrot.slane %v6940_v43, %v4474_v62 }
 0x4e3   :  { %v6935_v12 = vpop.permute.xlu1 %4337 }
 0x4e4   :  { %v4475_v56 = vrot.slane %v6935_v12, %v4474_v62  ;;  %v4502_v12 = vsub.s32 %v4499_v37, %v5429_v58 }
 0x4e9   :  { %v6946_v20 = vpop.permute.xlu0 %4388 }
 0x4ea   :  { %v4570_v7 = vrot.slane %v6946_v20, %v4481_v55 }
 0x4ee   :  { %v6957_v39 = vpop.permute.xlu0 %4334 }
 0x4ef   :  { %v4468_v8 = vrot.slane %v6957_v39, %v4467_v11 }
 0x4f3   :  { %v6942_v31 = vpop.permute.xlu1 %4331 }
 0x4f4   :  { %v4461_v52 = vrot.slane %v6942_v31, %v4460_v48 }
 0x4f6   :  { %v4463_v45 = vsel %vm4462_vm11, %v4461_v52, %v4456_v51 }
 0x4f7   :  { %v4470_v3 = vsel %vm4469_vm12, %v4468_v8, %v4463_v45 }
 0x4f8   :  { %v4477_v24 = vsel %vm4476_vm13, %v4475_v56, %v4470_v3 }
 0x4f9   :  { %v4383_v29 = vpop.permute.xlu0 %4382 }
 0x4fa   :  { %v4560_v26 = vrot.slane %v4383_v29, %v4467_v11 }
 0x4fe   :  { %v6948_v49 = vpop.permute.xlu1 %4379 }
 0x4ff   :  { %v4555_v44 = vrot.slane %v6948_v49, %v4460_v48 }
 0x501   :  { %v4556_v31 = vsel %vm4462_vm11, %v4555_v44, %v4551_v57 }
 0x502   :  { %v4561_v39 = vsel %vm4469_vm12, %v4560_v26, %v4556_v31 }
 0x503   :  { %v4566_v47 = vsel %vm4476_vm13, %v4565_v60, %v4561_v39 }
 0x504   :  { %v6959_v40 = vpop.permute.xlu1 %4340  ;;  %v4571_v14 = vsel %vm4483_vm14, %v4570_v7, %v4566_v47 }
 0x505   :  { %v4482_v32 = vrot.slane %v6959_v40, %v4481_v55 }
 0x507   :  { %v4484_v40 = vsel %vm4483_vm14, %v4482_v32, %v4477_v24 }
 0x509   :  { %v6975_v22 = vpop.permute.xlu0 %4397 }
 0x50a   :  { %v4585_v13 = vrot.slane %v6975_v22, %v4502_v12 }
 0x50e   :  { %v6966_v30 = vpop.permute.xlu1 %4349 }
 0x50f   :  { %v4503_v2 = vrot.slane %v6966_v30, %v4502_v12 }
 0x513   :  { %v4392_v49 = vpop.permute.xlu0 %4391 }
 0x514   :  { %v4575_v41 = vrot.slane %v4392_v49, %v4488_v15 }
 0x516   :  { %v4576_v27 = vsel %vm4490_vm1, %v4575_v41, %v4571_v14 }
 0x519   :  { %v4344_v17 = vpop.permute.xlu1 %4343 }
 0x51a   :  { %v4489_v63 = vrot.slane %v4344_v17, %v4488_v15 }
 0x51c   :  { %v4491_v35 = vsel %vm4490_vm1, %v4489_v63, %v4484_v40 }
 0x51e   :  { %v4347_v61 = vpop.permute.xlu1 %4346 }
 0x51f   :  { %v4496_v25 = vrot.slane %v4347_v61, %v4495_v23 }
 0x521   :  { %v4498_v1 = vsel %vm4497_vm15, %v4496_v25, %v4491_v35 }
 0x522   :  { %v4505_v20 = vsel %vm4504_vm2, %v4503_v2, %v4498_v1 }
 0x523   :  { %v4395_v19 = vpop.permute.xlu0 %4394 }
 0x524   :  { %v4580_v43 = vrot.slane %v4395_v19, %v4495_v23 }
 0x526   :  { %v4581_v46 = vsel %vm4497_vm15, %v4580_v43, %v4576_v27 }
 0x527   :  { %v4586_v5 = vsel %vm4504_vm2, %v4585_v13, %v4581_v46 }
 0x528   :  { %v4353_v29 = vpop.permute.xlu1 %4352 }
 0x529   :  { %v4510_v28 = vrot.slane %v4353_v29, %v4509_v36 }
 0x52b   :  { %v4512_v48 = vsel %vm4511_vm3, %v4510_v28, %v4505_v20 }
 0x52e   :  { %v4401_v38 = vpop.permute.xlu0 %4400 }
 0x52f   :  { %v4590_v59 = vrot.slane %v4401_v38, %v4509_v36 }
 0x531   :  { %v4591_v10 = vsel %vm4511_vm3, %v4590_v59, %v4586_v5 }
 0x532   :  { %v4592_v58 = vcombine.low %v4512_v48, %v4591_v10 }
 0x534   :  { %v4599_v50 = vrot.slane %v4592_v58, %v6176_v34 }
 0x536   :  { %v4606_v30 = vrot.slane %v4599_v50, %v6176_v34 }
 0x538   :  { %4612 = vst.msk [vmem:[#allocation3] sm:$0x3] %vm4610_vm4, %v4606_v30 }
 0x539   :  { %4943 = shalt.err (!%p4940_p4)
}
 0x53a   :  { %s4944_s10 = scalar_lea.hbm %s7022_s4, 32 }
 0x53b   :  { %p4945_p5 = scmp.ne.s32.totalorder %s7022_s4, %s4944_s10  ;;  %p4948_p6 = scmp.lt.u32.totalorder %s4944_s10, %s7022_s4 }
 0x53d   :  { %p4950_p7 = pnand %p4948_p6, %p4945_p5 }
 0x53f   :  { %4953 = shalt.err (!%p4950_p7)
}
 0x540   :  { %4622 = dma.vmem_to_hbm [thread:$0]  %s4620_s6, 32, %s7022_s4, [#allocation4]  }
 0x541   :  { %4954 = dma.done.wait [#allocation4], 32  }
 0x542   :  { %4955 = vsyncadd [#allocation4], 4294967264 }
 0x543   :  { %4626 = vsyncpa [#allocation4], 1 }

</bundles_post_ra>
